<compile_context>
chip_gen: v7x
topology: tpu7x:2x2x1
jax: 0.10.0
libtpu: 0.0.40
codegen_flags: <defaults>
</compile_context>

<pallas_src>
import functools

import jax
import jax.numpy as jnp
from jax.experimental import pallas as pl
from jax.experimental.pallas import tpu as pltpu


def _gru_nn_kernel(x_ref,      # (T*Bp, Ip)  bf16, time-major, batch/K-padded
                   w_ih_ref,   # (Ip, 3H)    bf16, GRU input weights (r|z|n)
                   w_hh_ref,   # (H, 3H)     bf16, GRU hidden weights (r|z|n)
                   b_gi_ref,   # (1, 3H)     f32, b_ih with b_hh[r|z] folded in
                   b_hn_ref,   # (1, H)      f32, hidden n-gate bias
                   w1_ref,     # (H, 512)    bf16, fc1
                   b1_ref,     # (1, 512)    f32
                   w2_ref,     # (512, OUTP) bf16, fc2 zero-padded to 128 lanes
                   b2_ref,     # (1, OUTP)   f32
                   out_ref,    # (Bp, OUTP)  f32
                   gi_scr,     # (T*Bp, 3H)  f32 VMEM scratch
                   *, hidden, seq_len, batch):
    H, T, Bp = hidden, seq_len, batch

    # Hoisted input projection: ONE (T*Bp, Ip) @ (Ip, 3H) bf16 matmul off the
    # serial chain, accumulated in f32 and staged to VMEM scratch so the big
    # value is not held in vregs across the unrolled recurrence.
    gi_scr[...] = (jnp.dot(x_ref[...], w_ih_ref[...],
                           preferred_element_type=jnp.float32)
                   + b_gi_ref[...])

    w_hh = w_hh_ref[...]                                     # bf16 (H, 3H)
    b_hn = jnp.broadcast_to(b_hn_ref[...], (Bp, H))          # hoisted once

    # Statically unrolled recurrence (T is small and static); only h @ W_hh
    # stays on the serial chain.  Gate slices are lane-tile aligned (H=256).
    # TODO(synk): on v6e/v7x, w_hh could be kept resident in MXU staging regs
    # via pltpu.matmul_push_rhs/acc_lhs/pop to avoid re-feeding 256x768 of
    # weights each of the T steps; not done here for portability (v5e).
    h = jnp.zeros((Bp, H), jnp.float32)
    for t in range(T):
        gi = gi_scr[t * Bp:(t + 1) * Bp, :]                  # static, 8-aligned
        gh = jnp.dot(h.astype(jnp.bfloat16), w_hh,
                     preferred_element_type=jnp.float32)
        r = jax.nn.sigmoid(gi[:, :H] + gh[:, :H])
        z = jax.nn.sigmoid(gi[:, H:2 * H] + gh[:, H:2 * H])
        n = jnp.tanh(gi[:, 2 * H:] + r * (gh[:, 2 * H:] + b_hn))
        h = n + z * (h - n)                                  # = (1-z)*n + z*h

    # MLP head on the final hidden state.
    a1 = jnp.maximum(
        jnp.dot(h.astype(jnp.bfloat16), w1_ref[...],
                preferred_element_type=jnp.float32) + b1_ref[...], 0.0)
    # TODO(synk): dropout(p=0.5) is identity in eval mode; training-mode
    # dropout is not implemented.
    out_ref[...] = (
        jnp.dot(a1.astype(jnp.bfloat16), w2_ref[...],
                preferred_element_type=jnp.float32)
        + b2_ref[...]).astype(out_ref.dtype)


def prepare_params(params, *, out_pad=128):
    """One-time, load-time weight preparation (off the per-call path)."""
    H = params["w_hh"].shape[1]        # w_hh: (3H, H)
    I = params["w_ih"].shape[1]        # 144
    FC1 = params["w_fc1"].shape[0]     # 512
    OUT = params["w_fc2"].shape[0]     # 3
    Ip = ((I + 127) // 128) * 128      # pad K of the input projection -> 256

    w_ih = jnp.zeros((Ip, 3 * H), jnp.bfloat16).at[:I, :].set(
        params["w_ih"].T.astype(jnp.bfloat16))                    # (Ip, 3H)
    w_hh = params["w_hh"].T.astype(jnp.bfloat16)                  # (H, 3H)

    b_ih = params["b_ih"].astype(jnp.float32)
    b_hh = params["b_hh"].astype(jnp.float32)
    # Fold hidden r/z biases into the hoisted projection bias; keep b_hn
    # separate (it sits inside r * (W_hn h + b_hn) in the PyTorch GRU).
    b_gi = b_ih.at[:2 * H].add(b_hh[:2 * H])[None, :]             # (1, 3H)
    b_hn = b_hh[2 * H:][None, :]                                  # (1, H)

    w1 = params["w_fc1"].T.astype(jnp.bfloat16)                   # (H, 512)
    b1 = params["b_fc1"][None, :].astype(jnp.float32)             # (1, 512)
    # Zero-pad fc2 to 128 output lanes so the final store is unmasked.
    w2 = jnp.zeros((FC1, out_pad), jnp.bfloat16).at[:, :OUT].set(
        params["w_fc2"].T.astype(jnp.bfloat16))                   # (512, OUTP)
    b2 = jnp.zeros((1, out_pad), jnp.float32).at[:, :OUT].set(
        params["b_fc2"][None, :].astype(jnp.float32))             # (1, OUTP)

    return {"w_ih": w_ih, "w_hh": w_hh, "b_gi": b_gi, "b_hn": b_hn,
            "w1": w1, "b1": b1, "w2": w2, "b2": b2}


@functools.partial(jax.jit, static_argnames=("out_dim",))
def gru_nn_forward(x, prepped, out_dim=3):
    """x: (B, T, I) float32, prepped = prepare_params(...). Returns (B, out)."""
    B, T, I = x.shape
    H = prepped["w_hh"].shape[0]
    Ip = prepped["w_ih"].shape[0]
    OUTP = prepped["w2"].shape[1]

    Bp = ((B + 7) // 8) * 8            # pad batch to the 8-row sublane width
    # NOTE: at Bp=8 a single ungridded call on one TC is optimal; for serving,
    # batch multiple requests up to Bp=128-256 rows to fill the MXU M dim.

    # Only cheap per-call layout work: time-major, batch+K zero-pad, bf16 cast.
    x_tm = jnp.transpose(x, (1, 0, 2)).astype(jnp.bfloat16)       # (T, B, I)
    x_tm = jnp.pad(x_tm, ((0, 0), (0, Bp - B), (0, Ip - I)))      # (T, Bp, Ip)
    x2d = x_tm.reshape(T * Bp, Ip)

    kernel = functools.partial(_gru_nn_kernel, hidden=H, seq_len=T, batch=Bp)
    vmem = pl.BlockSpec(memory_space=pltpu.MemorySpace.VMEM)

    out_padded = pl.pallas_call(
        kernel,
        out_shape=jax.ShapeDtypeStruct((Bp, OUTP), jnp.float32),
        in_specs=[vmem] * 9,           # everything resident in VMEM, no grid
        out_specs=vmem,
        scratch_shapes=[pltpu.VMEM((T * Bp, 3 * H), jnp.float32)],
    )(x2d, prepped["w_ih"], prepped["w_hh"], prepped["b_gi"], prepped["b_hn"],
      prepped["w1"], prepped["b1"], prepped["w2"], prepped["b2"])

    return out_padded[:B, :out_dim]


def gru_nn_reference(x, params):
    """Pure-JAX reference (lax.scan) mirroring torch.nn.GRU + MLP head."""
    H = params["w_hh"].shape[1]        # w_hh: (3H, H)
    B = x.shape[0]
    x_tm = jnp.transpose(x, (1, 0, 2)).astype(jnp.float32)        # (T, B, I)

    def step(h, x_t):
        gi = x_t @ params["w_ih"].T + params["b_ih"]
        gh = h @ params["w_hh"].T + params["b_hh"]
        i_r, i_z, i_n = jnp.split(gi, 3, axis=-1)
        h_r, h_z, h_n = jnp.split(gh, 3, axis=-1)
        r = jax.nn.sigmoid(i_r + h_r)
        z = jax.nn.sigmoid(i_z + h_z)
        n = jnp.tanh(i_n + r * h_n)
        h_new = (1.0 - z) * n + z * h
        return h_new, None

    h0 = jnp.zeros((B, H), jnp.float32)
    h_T, _ = jax.lax.scan(step, h0, x_tm)
    a1 = jnp.maximum(h_T @ params["w_fc1"].T + params["b_fc1"], 0.0)
    return a1 @ params["w_fc2"].T + params["b_fc2"]


def init_params(key, hidden=256, input_size=144, fc1=512, out=3):
    ks = jax.random.split(key, 8)
    s_g = 1.0 / jnp.sqrt(hidden)
    s_1 = 1.0 / jnp.sqrt(hidden)
    s_2 = 1.0 / jnp.sqrt(fc1)
    u = lambda k, shape, s: jax.random.uniform(k, shape, jnp.float32, -s, s)
    return {
        "w_ih": u(ks[0], (3 * hidden, input_size), s_g),
        "w_hh": u(ks[1], (3 * hidden, hidden), s_g),
        "b_ih": u(ks[2], (3 * hidden,), s_g),
        "b_hh": u(ks[3], (3 * hidden,), s_g),
        "w_fc1": u(ks[4], (fc1, hidden), s_1),
        "b_fc1": u(ks[5], (fc1,), s_1),
        "w_fc2": u(ks[6], (out, fc1), s_2),
        "b_fc2": u(ks[7], (out,), s_2),
    }


if __name__ == "__main__":
    key = jax.random.PRNGKey(0)
    k_p, k_x = jax.random.split(key)

    B, T, I, H = 2, 8, 144, 256
    params = init_params(k_p, hidden=H, input_size=I)
    x = jax.random.normal(k_x, (B, T, I), jnp.float32)

    # One-time weight preparation (load time), then the jitted forward call.
    prepped = jax.tree_util.tree_map(jax.block_until_ready,
                                     prepare_params(params))
    out = jax.block_until_ready(gru_nn_forward(x, prepped, out_dim=3))
    ref = gru_nn_reference(x, params)

    assert out.shape == (B, 3), out.shape
    # Tolerance covers bf16 MXU operands in the kernel vs. the XLA reference's
    # default-precision (also bf16-pass) matmuls.
    assert jnp.allclose(out, ref, atol=2e-2, rtol=2e-2), (out, ref)
    print("KERNEL_OK")
</pallas_src>

<mosaic_0001>
module attributes {stable_mosaic.version = 11 : i64} {
  func.func @_gru_nn_kernel(%arg0: memref<64x256xbf16, #tpu.memory_space<vmem>>, %arg1: memref<256x768xbf16, #tpu.memory_space<vmem>>, %arg2: memref<256x768xbf16, #tpu.memory_space<vmem>>, %arg3: memref<1x768xf32, #tpu.memory_space<vmem>>, %arg4: memref<1x256xf32, #tpu.memory_space<vmem>>, %arg5: memref<256x512xbf16, #tpu.memory_space<vmem>>, %arg6: memref<1x512xf32, #tpu.memory_space<vmem>>, %arg7: memref<512x128xbf16, #tpu.memory_space<vmem>>, %arg8: memref<1x128xf32, #tpu.memory_space<vmem>>, %arg9: memref<8x128xf32, #tpu.memory_space<vmem>>, %arg10: memref<64x768xf32, #tpu.memory_space<vmem>>) attributes {dimension_semantics = [], scalar_prefetch = 0 : i64, scratch_operands = 1 : i64, tpu.core_type = #tpu.core_type<tc>} {
    %c0 = arith.constant 0 : index
    %c0_0 = arith.constant 0 : index
    %0 = vector.load %arg0[%c0, %c0_0] : memref<64x256xbf16, #tpu.memory_space<vmem>>, vector<64x256xbf16>
    %c0_1 = arith.constant 0 : index
    %c0_2 = arith.constant 0 : index
    %1 = vector.load %arg1[%c0_1, %c0_2] : memref<256x768xbf16, #tpu.memory_space<vmem>>, vector<256x768xbf16>
    %cst = arith.constant dense<0.000000e+00> : vector<64x768xf32>
    %2 = tpu.matmul %0, %1, %cst {dimension_numbers = #tpu.dot_dimension_numbers<[1], [0], [0], [1], [0, 0, 1, 1], [], []>} : vector<64x256xbf16>, vector<256x768xbf16>, vector<64x768xf32> -> vector<64x768xf32>
    %c0_3 = arith.constant 0 : index
    %c0_4 = arith.constant 0 : index
    %3 = vector.load %arg3[%c0_3, %c0_4] : memref<1x768xf32, #tpu.memory_space<vmem>>, vector<1x768xf32>
    %4 = vector.broadcast %3 : vector<1x768xf32> to vector<64x768xf32>
    %5 = arith.addf %2, %4 : vector<64x768xf32>
    %c0_5 = arith.constant 0 : index
    %c0_6 = arith.constant 0 : index
    %6 = vector.load %arg10[%c0_5, %c0_6] : memref<64x768xf32, #tpu.memory_space<vmem>>, vector<64x768xf32>
    tpu.vector_store %arg10[%c0_5, %c0_6], %5 {strides = array<i32>} : memref<64x768xf32, #tpu.memory_space<vmem>>, vector<64x768xf32>,
    %c0_7 = arith.constant 0 : index
    %c0_8 = arith.constant 0 : index
    %7 = vector.load %arg2[%c0_7, %c0_8] : memref<256x768xbf16, #tpu.memory_space<vmem>>, vector<256x768xbf16>
    %c0_9 = arith.constant 0 : index
    %c0_10 = arith.constant 0 : index
    %8 = vector.load %arg4[%c0_9, %c0_10] : memref<1x256xf32, #tpu.memory_space<vmem>>, vector<1x256xf32>
    %9 = vector.shape_cast %8 : vector<1x256xf32> to vector<1x256xf32>
    %10 = vector.broadcast %9 : vector<1x256xf32> to vector<8x256xf32>
    %cst_11 = arith.constant 0.000000e+00 : f32
    %11 = vector.broadcast %cst_11 : f32 to vector<8x256xf32>
    %c0_12 = arith.constant 0 : index
    %c0_13 = arith.constant 0 : index
    %12 = vector.load %arg10[%c0_12, %c0_13] : memref<64x768xf32, #tpu.memory_space<vmem>>, vector<8x768xf32>
    %13 = arith.truncf %11 : vector<8x256xf32> to vector<8x256xbf16>
    %cst_14 = arith.constant dense<0.000000e+00> : vector<8x768xf32>
    %14 = tpu.matmul %13, %7, %cst_14 {dimension_numbers = #tpu.dot_dimension_numbers<[1], [0], [0], [1], [0, 0, 1, 1], [], []>} : vector<8x256xbf16>, vector<256x768xbf16>, vector<8x768xf32> -> vector<8x768xf32>
    %15 = vector.extract_strided_slice %12 {offsets = [0, 0], sizes = [8, 256], strides = [1, 1]} : vector<8x768xf32> to vector<8x256xf32>
    %16 = vector.extract_strided_slice %14 {offsets = [0, 0], sizes = [8, 256], strides = [1, 1]} : vector<8x768xf32> to vector<8x256xf32>
    %17 = arith.addf %15, %16 : vector<8x256xf32>
    %18 = arith.negf %17 : vector<8x256xf32>
    %19 = math.exp %18 : vector<8x256xf32>
    %cst_15 = arith.constant 1.000000e+00 : f32
    %20 = vector.broadcast %cst_15 : f32 to vector<8x256xf32>
    %21 = arith.addf %20, %19 : vector<8x256xf32>
    %22 = arith.divf %20, %21 : vector<8x256xf32>
    %23 = vector.extract_strided_slice %12 {offsets = [0, 256], sizes = [8, 256], strides = [1, 1]} : vector<8x768xf32> to vector<8x256xf32>
    %24 = vector.extract_strided_slice %14 {offsets = [0, 256], sizes = [8, 256], strides = [1, 1]} : vector<8x768xf32> to vector<8x256xf32>
    %25 = arith.addf %23, %24 : vector<8x256xf32>
    %26 = arith.negf %25 : vector<8x256xf32>
    %27 = math.exp %26 : vector<8x256xf32>
    %cst_16 = arith.constant 1.000000e+00 : f32
    %28 = vector.broadcast %cst_16 : f32 to vector<8x256xf32>
    %29 = arith.addf %28, %27 : vector<8x256xf32>
    %30 = arith.divf %28, %29 : vector<8x256xf32>
    %31 = vector.extract_strided_slice %12 {offsets = [0, 512], sizes = [8, 256], strides = [1, 1]} : vector<8x768xf32> to vector<8x256xf32>
    %32 = vector.extract_strided_slice %14 {offsets = [0, 512], sizes = [8, 256], strides = [1, 1]} : vector<8x768xf32> to vector<8x256xf32>
    %33 = arith.addf %32, %10 : vector<8x256xf32>
    %34 = arith.mulf %22, %33 : vector<8x256xf32>
    %35 = arith.addf %31, %34 : vector<8x256xf32>
    %36 = math.tanh %35 : vector<8x256xf32>
    %37 = arith.subf %11, %36 : vector<8x256xf32>
    %38 = arith.mulf %30, %37 : vector<8x256xf32>
    %39 = arith.addf %36, %38 : vector<8x256xf32>
    %c8 = arith.constant 8 : index
    %c0_17 = arith.constant 0 : index
    %40 = vector.load %arg10[%c8, %c0_17] : memref<64x768xf32, #tpu.memory_space<vmem>>, vector<8x768xf32>
    %41 = arith.truncf %39 : vector<8x256xf32> to vector<8x256xbf16>
    %cst_18 = arith.constant dense<0.000000e+00> : vector<8x768xf32>
    %42 = tpu.matmul %41, %7, %cst_18 {dimension_numbers = #tpu.dot_dimension_numbers<[1], [0], [0], [1], [0, 0, 1, 1], [], []>} : vector<8x256xbf16>, vector<256x768xbf16>, vector<8x768xf32> -> vector<8x768xf32>
    %43 = vector.extract_strided_slice %40 {offsets = [0, 0], sizes = [8, 256], strides = [1, 1]} : vector<8x768xf32> to vector<8x256xf32>
    %44 = vector.extract_strided_slice %42 {offsets = [0, 0], sizes = [8, 256], strides = [1, 1]} : vector<8x768xf32> to vector<8x256xf32>
    %45 = arith.addf %43, %44 : vector<8x256xf32>
    %46 = arith.negf %45 : vector<8x256xf32>
    %47 = math.exp %46 : vector<8x256xf32>
    %cst_19 = arith.constant 1.000000e+00 : f32
    %48 = vector.broadcast %cst_19 : f32 to vector<8x256xf32>
    %49 = arith.addf %48, %47 : vector<8x256xf32>
    %50 = arith.divf %48, %49 : vector<8x256xf32>
    %51 = vector.extract_strided_slice %40 {offsets = [0, 256], sizes = [8, 256], strides = [1, 1]} : vector<8x768xf32> to vector<8x256xf32>
    %52 = vector.extract_strided_slice %42 {offsets = [0, 256], sizes = [8, 256], strides = [1, 1]} : vector<8x768xf32> to vector<8x256xf32>
    %53 = arith.addf %51, %52 : vector<8x256xf32>
    %54 = arith.negf %53 : vector<8x256xf32>
    %55 = math.exp %54 : vector<8x256xf32>
    %cst_20 = arith.constant 1.000000e+00 : f32
    %56 = vector.broadcast %cst_20 : f32 to vector<8x256xf32>
    %57 = arith.addf %56, %55 : vector<8x256xf32>
    %58 = arith.divf %56, %57 : vector<8x256xf32>
    %59 = vector.extract_strided_slice %40 {offsets = [0, 512], sizes = [8, 256], strides = [1, 1]} : vector<8x768xf32> to vector<8x256xf32>
    %60 = vector.extract_strided_slice %42 {offsets = [0, 512], sizes = [8, 256], strides = [1, 1]} : vector<8x768xf32> to vector<8x256xf32>
    %61 = arith.addf %60, %10 : vector<8x256xf32>
    %62 = arith.mulf %50, %61 : vector<8x256xf32>
    %63 = arith.addf %59, %62 : vector<8x256xf32>
    %64 = math.tanh %63 : vector<8x256xf32>
    %65 = arith.subf %39, %64 : vector<8x256xf32>
    %66 = arith.mulf %58, %65 : vector<8x256xf32>
    %67 = arith.addf %64, %66 : vector<8x256xf32>
    %c16 = arith.constant 16 : index
    %c0_21 = arith.constant 0 : index
    %68 = vector.load %arg10[%c16, %c0_21] : memref<64x768xf32, #tpu.memory_space<vmem>>, vector<8x768xf32>
    %69 = arith.truncf %67 : vector<8x256xf32> to vector<8x256xbf16>
    %cst_22 = arith.constant dense<0.000000e+00> : vector<8x768xf32>
    %70 = tpu.matmul %69, %7, %cst_22 {dimension_numbers = #tpu.dot_dimension_numbers<[1], [0], [0], [1], [0, 0, 1, 1], [], []>} : vector<8x256xbf16>, vector<256x768xbf16>, vector<8x768xf32> -> vector<8x768xf32>
    %71 = vector.extract_strided_slice %68 {offsets = [0, 0], sizes = [8, 256], strides = [1, 1]} : vector<8x768xf32> to vector<8x256xf32>
    %72 = vector.extract_strided_slice %70 {offsets = [0, 0], sizes = [8, 256], strides = [1, 1]} : vector<8x768xf32> to vector<8x256xf32>
    %73 = arith.addf %71, %72 : vector<8x256xf32>
    %74 = arith.negf %73 : vector<8x256xf32>
    %75 = math.exp %74 : vector<8x256xf32>
    %cst_23 = arith.constant 1.000000e+00 : f32
    %76 = vector.broadcast %cst_23 : f32 to vector<8x256xf32>
    %77 = arith.addf %76, %75 : vector<8x256xf32>
    %78 = arith.divf %76, %77 : vector<8x256xf32>
    %79 = vector.extract_strided_slice %68 {offsets = [0, 256], sizes = [8, 256], strides = [1, 1]} : vector<8x768xf32> to vector<8x256xf32>
    %80 = vector.extract_strided_slice %70 {offsets = [0, 256], sizes = [8, 256], strides = [1, 1]} : vector<8x768xf32> to vector<8x256xf32>
    %81 = arith.addf %79, %80 : vector<8x256xf32>
    %82 = arith.negf %81 : vector<8x256xf32>
    %83 = math.exp %82 : vector<8x256xf32>
    %cst_24 = arith.constant 1.000000e+00 : f32
    %84 = vector.broadcast %cst_24 : f32 to vector<8x256xf32>
    %85 = arith.addf %84, %83 : vector<8x256xf32>
    %86 = arith.divf %84, %85 : vector<8x256xf32>
    %87 = vector.extract_strided_slice %68 {offsets = [0, 512], sizes = [8, 256], strides = [1, 1]} : vector<8x768xf32> to vector<8x256xf32>
    %88 = vector.extract_strided_slice %70 {offsets = [0, 512], sizes = [8, 256], strides = [1, 1]} : vector<8x768xf32> to vector<8x256xf32>
    %89 = arith.addf %88, %10 : vector<8x256xf32>
    %90 = arith.mulf %78, %89 : vector<8x256xf32>
    %91 = arith.addf %87, %90 : vector<8x256xf32>
    %92 = math.tanh %91 : vector<8x256xf32>
    %93 = arith.subf %67, %92 : vector<8x256xf32>
    %94 = arith.mulf %86, %93 : vector<8x256xf32>
    %95 = arith.addf %92, %94 : vector<8x256xf32>
    %c24 = arith.constant 24 : index
    %c0_25 = arith.constant 0 : index
    %96 = vector.load %arg10[%c24, %c0_25] : memref<64x768xf32, #tpu.memory_space<vmem>>, vector<8x768xf32>
    %97 = arith.truncf %95 : vector<8x256xf32> to vector<8x256xbf16>
    %cst_26 = arith.constant dense<0.000000e+00> : vector<8x768xf32>
    %98 = tpu.matmul %97, %7, %cst_26 {dimension_numbers = #tpu.dot_dimension_numbers<[1], [0], [0], [1], [0, 0, 1, 1], [], []>} : vector<8x256xbf16>, vector<256x768xbf16>, vector<8x768xf32> -> vector<8x768xf32>
    %99 = vector.extract_strided_slice %96 {offsets = [0, 0], sizes = [8, 256], strides = [1, 1]} : vector<8x768xf32> to vector<8x256xf32>
    %100 = vector.extract_strided_slice %98 {offsets = [0, 0], sizes = [8, 256], strides = [1, 1]} : vector<8x768xf32> to vector<8x256xf32>
    %101 = arith.addf %99, %100 : vector<8x256xf32>
    %102 = arith.negf %101 : vector<8x256xf32>
    %103 = math.exp %102 : vector<8x256xf32>
    %cst_27 = arith.constant 1.000000e+00 : f32
    %104 = vector.broadcast %cst_27 : f32 to vector<8x256xf32>
    %105 = arith.addf %104, %103 : vector<8x256xf32>
    %106 = arith.divf %104, %105 : vector<8x256xf32>
    %107 = vector.extract_strided_slice %96 {offsets = [0, 256], sizes = [8, 256], strides = [1, 1]} : vector<8x768xf32> to vector<8x256xf32>
    %108 = vector.extract_strided_slice %98 {offsets = [0, 256], sizes = [8, 256], strides = [1, 1]} : vector<8x768xf32> to vector<8x256xf32>
    %109 = arith.addf %107, %108 : vector<8x256xf32>
    %110 = arith.negf %109 : vector<8x256xf32>
    %111 = math.exp %110 : vector<8x256xf32>
    %cst_28 = arith.constant 1.000000e+00 : f32
    %112 = vector.broadcast %cst_28 : f32 to vector<8x256xf32>
    %113 = arith.addf %112, %111 : vector<8x256xf32>
    %114 = arith.divf %112, %113 : vector<8x256xf32>
    %115 = vector.extract_strided_slice %96 {offsets = [0, 512], sizes = [8, 256], strides = [1, 1]} : vector<8x768xf32> to vector<8x256xf32>
    %116 = vector.extract_strided_slice %98 {offsets = [0, 512], sizes = [8, 256], strides = [1, 1]} : vector<8x768xf32> to vector<8x256xf32>
    %117 = arith.addf %116, %10 : vector<8x256xf32>
    %118 = arith.mulf %106, %117 : vector<8x256xf32>
    %119 = arith.addf %115, %118 : vector<8x256xf32>
    %120 = math.tanh %119 : vector<8x256xf32>
    %121 = arith.subf %95, %120 : vector<8x256xf32>
    %122 = arith.mulf %114, %121 : vector<8x256xf32>
    %123 = arith.addf %120, %122 : vector<8x256xf32>
    %c32 = arith.constant 32 : index
    %c0_29 = arith.constant 0 : index
    %124 = vector.load %arg10[%c32, %c0_29] : memref<64x768xf32, #tpu.memory_space<vmem>>, vector<8x768xf32>
    %125 = arith.truncf %123 : vector<8x256xf32> to vector<8x256xbf16>
    %cst_30 = arith.constant dense<0.000000e+00> : vector<8x768xf32>
    %126 = tpu.matmul %125, %7, %cst_30 {dimension_numbers = #tpu.dot_dimension_numbers<[1], [0], [0], [1], [0, 0, 1, 1], [], []>} : vector<8x256xbf16>, vector<256x768xbf16>, vector<8x768xf32> -> vector<8x768xf32>
    %127 = vector.extract_strided_slice %124 {offsets = [0, 0], sizes = [8, 256], strides = [1, 1]} : vector<8x768xf32> to vector<8x256xf32>
    %128 = vector.extract_strided_slice %126 {offsets = [0, 0], sizes = [8, 256], strides = [1, 1]} : vector<8x768xf32> to vector<8x256xf32>
    %129 = arith.addf %127, %128 : vector<8x256xf32>
    %130 = arith.negf %129 : vector<8x256xf32>
    %131 = math.exp %130 : vector<8x256xf32>
    %cst_31 = arith.constant 1.000000e+00 : f32
    %132 = vector.broadcast %cst_31 : f32 to vector<8x256xf32>
    %133 = arith.addf %132, %131 : vector<8x256xf32>
    %134 = arith.divf %132, %133 : vector<8x256xf32>
    %135 = vector.extract_strided_slice %124 {offsets = [0, 256], sizes = [8, 256], strides = [1, 1]} : vector<8x768xf32> to vector<8x256xf32>
    %136 = vector.extract_strided_slice %126 {offsets = [0, 256], sizes = [8, 256], strides = [1, 1]} : vector<8x768xf32> to vector<8x256xf32>
    %137 = arith.addf %135, %136 : vector<8x256xf32>
    %138 = arith.negf %137 : vector<8x256xf32>
    %139 = math.exp %138 : vector<8x256xf32>
    %cst_32 = arith.constant 1.000000e+00 : f32
    %140 = vector.broadcast %cst_32 : f32 to vector<8x256xf32>
    %141 = arith.addf %140, %139 : vector<8x256xf32>
    %142 = arith.divf %140, %141 : vector<8x256xf32>
    %143 = vector.extract_strided_slice %124 {offsets = [0, 512], sizes = [8, 256], strides = [1, 1]} : vector<8x768xf32> to vector<8x256xf32>
    %144 = vector.extract_strided_slice %126 {offsets = [0, 512], sizes = [8, 256], strides = [1, 1]} : vector<8x768xf32> to vector<8x256xf32>
    %145 = arith.addf %144, %10 : vector<8x256xf32>
    %146 = arith.mulf %134, %145 : vector<8x256xf32>
    %147 = arith.addf %143, %146 : vector<8x256xf32>
    %148 = math.tanh %147 : vector<8x256xf32>
    %149 = arith.subf %123, %148 : vector<8x256xf32>
    %150 = arith.mulf %142, %149 : vector<8x256xf32>
    %151 = arith.addf %148, %150 : vector<8x256xf32>
    %c40 = arith.constant 40 : index
    %c0_33 = arith.constant 0 : index
    %152 = vector.load %arg10[%c40, %c0_33] : memref<64x768xf32, #tpu.memory_space<vmem>>, vector<8x768xf32>
    %153 = arith.truncf %151 : vector<8x256xf32> to vector<8x256xbf16>
    %cst_34 = arith.constant dense<0.000000e+00> : vector<8x768xf32>
    %154 = tpu.matmul %153, %7, %cst_34 {dimension_numbers = #tpu.dot_dimension_numbers<[1], [0], [0], [1], [0, 0, 1, 1], [], []>} : vector<8x256xbf16>, vector<256x768xbf16>, vector<8x768xf32> -> vector<8x768xf32>
    %155 = vector.extract_strided_slice %152 {offsets = [0, 0], sizes = [8, 256], strides = [1, 1]} : vector<8x768xf32> to vector<8x256xf32>
    %156 = vector.extract_strided_slice %154 {offsets = [0, 0], sizes = [8, 256], strides = [1, 1]} : vector<8x768xf32> to vector<8x256xf32>
    %157 = arith.addf %155, %156 : vector<8x256xf32>
    %158 = arith.negf %157 : vector<8x256xf32>
    %159 = math.exp %158 : vector<8x256xf32>
    %cst_35 = arith.constant 1.000000e+00 : f32
    %160 = vector.broadcast %cst_35 : f32 to vector<8x256xf32>
    %161 = arith.addf %160, %159 : vector<8x256xf32>
    %162 = arith.divf %160, %161 : vector<8x256xf32>
    %163 = vector.extract_strided_slice %152 {offsets = [0, 256], sizes = [8, 256], strides = [1, 1]} : vector<8x768xf32> to vector<8x256xf32>
    %164 = vector.extract_strided_slice %154 {offsets = [0, 256], sizes = [8, 256], strides = [1, 1]} : vector<8x768xf32> to vector<8x256xf32>
    %165 = arith.addf %163, %164 : vector<8x256xf32>
    %166 = arith.negf %165 : vector<8x256xf32>
    %167 = math.exp %166 : vector<8x256xf32>
    %cst_36 = arith.constant 1.000000e+00 : f32
    %168 = vector.broadcast %cst_36 : f32 to vector<8x256xf32>
    %169 = arith.addf %168, %167 : vector<8x256xf32>
    %170 = arith.divf %168, %169 : vector<8x256xf32>
    %171 = vector.extract_strided_slice %152 {offsets = [0, 512], sizes = [8, 256], strides = [1, 1]} : vector<8x768xf32> to vector<8x256xf32>
    %172 = vector.extract_strided_slice %154 {offsets = [0, 512], sizes = [8, 256], strides = [1, 1]} : vector<8x768xf32> to vector<8x256xf32>
    %173 = arith.addf %172, %10 : vector<8x256xf32>
    %174 = arith.mulf %162, %173 : vector<8x256xf32>
    %175 = arith.addf %171, %174 : vector<8x256xf32>
    %176 = math.tanh %175 : vector<8x256xf32>
    %177 = arith.subf %151, %176 : vector<8x256xf32>
    %178 = arith.mulf %170, %177 : vector<8x256xf32>
    %179 = arith.addf %176, %178 : vector<8x256xf32>
    %c48 = arith.constant 48 : index
    %c0_37 = arith.constant 0 : index
    %180 = vector.load %arg10[%c48, %c0_37] : memref<64x768xf32, #tpu.memory_space<vmem>>, vector<8x768xf32>
    %181 = arith.truncf %179 : vector<8x256xf32> to vector<8x256xbf16>
    %cst_38 = arith.constant dense<0.000000e+00> : vector<8x768xf32>
    %182 = tpu.matmul %181, %7, %cst_38 {dimension_numbers = #tpu.dot_dimension_numbers<[1], [0], [0], [1], [0, 0, 1, 1], [], []>} : vector<8x256xbf16>, vector<256x768xbf16>, vector<8x768xf32> -> vector<8x768xf32>
    %183 = vector.extract_strided_slice %180 {offsets = [0, 0], sizes = [8, 256], strides = [1, 1]} : vector<8x768xf32> to vector<8x256xf32>
    %184 = vector.extract_strided_slice %182 {offsets = [0, 0], sizes = [8, 256], strides = [1, 1]} : vector<8x768xf32> to vector<8x256xf32>
    %185 = arith.addf %183, %184 : vector<8x256xf32>
    %186 = arith.negf %185 : vector<8x256xf32>
    %187 = math.exp %186 : vector<8x256xf32>
    %cst_39 = arith.constant 1.000000e+00 : f32
    %188 = vector.broadcast %cst_39 : f32 to vector<8x256xf32>
    %189 = arith.addf %188, %187 : vector<8x256xf32>
    %190 = arith.divf %188, %189 : vector<8x256xf32>
    %191 = vector.extract_strided_slice %180 {offsets = [0, 256], sizes = [8, 256], strides = [1, 1]} : vector<8x768xf32> to vector<8x256xf32>
    %192 = vector.extract_strided_slice %182 {offsets = [0, 256], sizes = [8, 256], strides = [1, 1]} : vector<8x768xf32> to vector<8x256xf32>
    %193 = arith.addf %191, %192 : vector<8x256xf32>
    %194 = arith.negf %193 : vector<8x256xf32>
    %195 = math.exp %194 : vector<8x256xf32>
    %cst_40 = arith.constant 1.000000e+00 : f32
    %196 = vector.broadcast %cst_40 : f32 to vector<8x256xf32>
    %197 = arith.addf %196, %195 : vector<8x256xf32>
    %198 = arith.divf %196, %197 : vector<8x256xf32>
    %199 = vector.extract_strided_slice %180 {offsets = [0, 512], sizes = [8, 256], strides = [1, 1]} : vector<8x768xf32> to vector<8x256xf32>
    %200 = vector.extract_strided_slice %182 {offsets = [0, 512], sizes = [8, 256], strides = [1, 1]} : vector<8x768xf32> to vector<8x256xf32>
    %201 = arith.addf %200, %10 : vector<8x256xf32>
    %202 = arith.mulf %190, %201 : vector<8x256xf32>
    %203 = arith.addf %199, %202 : vector<8x256xf32>
    %204 = math.tanh %203 : vector<8x256xf32>
    %205 = arith.subf %179, %204 : vector<8x256xf32>
    %206 = arith.mulf %198, %205 : vector<8x256xf32>
    %207 = arith.addf %204, %206 : vector<8x256xf32>
    %c56 = arith.constant 56 : index
    %c0_41 = arith.constant 0 : index
    %208 = vector.load %arg10[%c56, %c0_41] : memref<64x768xf32, #tpu.memory_space<vmem>>, vector<8x768xf32>
    %209 = arith.truncf %207 : vector<8x256xf32> to vector<8x256xbf16>
    %cst_42 = arith.constant dense<0.000000e+00> : vector<8x768xf32>
    %210 = tpu.matmul %209, %7, %cst_42 {dimension_numbers = #tpu.dot_dimension_numbers<[1], [0], [0], [1], [0, 0, 1, 1], [], []>} : vector<8x256xbf16>, vector<256x768xbf16>, vector<8x768xf32> -> vector<8x768xf32>
    %211 = vector.extract_strided_slice %208 {offsets = [0, 0], sizes = [8, 256], strides = [1, 1]} : vector<8x768xf32> to vector<8x256xf32>
    %212 = vector.extract_strided_slice %210 {offsets = [0, 0], sizes = [8, 256], strides = [1, 1]} : vector<8x768xf32> to vector<8x256xf32>
    %213 = arith.addf %211, %212 : vector<8x256xf32>
    %214 = arith.negf %213 : vector<8x256xf32>
    %215 = math.exp %214 : vector<8x256xf32>
    %cst_43 = arith.constant 1.000000e+00 : f32
    %216 = vector.broadcast %cst_43 : f32 to vector<8x256xf32>
    %217 = arith.addf %216, %215 : vector<8x256xf32>
    %218 = arith.divf %216, %217 : vector<8x256xf32>
    %219 = vector.extract_strided_slice %208 {offsets = [0, 256], sizes = [8, 256], strides = [1, 1]} : vector<8x768xf32> to vector<8x256xf32>
    %220 = vector.extract_strided_slice %210 {offsets = [0, 256], sizes = [8, 256], strides = [1, 1]} : vector<8x768xf32> to vector<8x256xf32>
    %221 = arith.addf %219, %220 : vector<8x256xf32>
    %222 = arith.negf %221 : vector<8x256xf32>
    %223 = math.exp %222 : vector<8x256xf32>
    %cst_44 = arith.constant 1.000000e+00 : f32
    %224 = vector.broadcast %cst_44 : f32 to vector<8x256xf32>
    %225 = arith.addf %224, %223 : vector<8x256xf32>
    %226 = arith.divf %224, %225 : vector<8x256xf32>
    %227 = vector.extract_strided_slice %208 {offsets = [0, 512], sizes = [8, 256], strides = [1, 1]} : vector<8x768xf32> to vector<8x256xf32>
    %228 = vector.extract_strided_slice %210 {offsets = [0, 512], sizes = [8, 256], strides = [1, 1]} : vector<8x768xf32> to vector<8x256xf32>
    %229 = arith.addf %228, %10 : vector<8x256xf32>
    %230 = arith.mulf %218, %229 : vector<8x256xf32>
    %231 = arith.addf %227, %230 : vector<8x256xf32>
    %232 = math.tanh %231 : vector<8x256xf32>
    %233 = arith.subf %207, %232 : vector<8x256xf32>
    %234 = arith.mulf %226, %233 : vector<8x256xf32>
    %235 = arith.addf %232, %234 : vector<8x256xf32>
    %236 = arith.truncf %235 : vector<8x256xf32> to vector<8x256xbf16>
    %c0_45 = arith.constant 0 : index
    %c0_46 = arith.constant 0 : index
    %237 = vector.load %arg5[%c0_45, %c0_46] : memref<256x512xbf16, #tpu.memory_space<vmem>>, vector<256x512xbf16>
    %cst_47 = arith.constant dense<0.000000e+00> : vector<8x512xf32>
    %238 = tpu.matmul %236, %237, %cst_47 {dimension_numbers = #tpu.dot_dimension_numbers<[1], [0], [0], [1], [0, 0, 1, 1], [], []>} : vector<8x256xbf16>, vector<256x512xbf16>, vector<8x512xf32> -> vector<8x512xf32>
    %c0_48 = arith.constant 0 : index
    %c0_49 = arith.constant 0 : index
    %239 = vector.load %arg6[%c0_48, %c0_49] : memref<1x512xf32, #tpu.memory_space<vmem>>, vector<1x512xf32>
    %240 = vector.broadcast %239 : vector<1x512xf32> to vector<8x512xf32>
    %241 = arith.addf %238, %240 : vector<8x512xf32>
    %cst_50 = arith.constant 0.000000e+00 : f32
    %242 = vector.broadcast %cst_50 : f32 to vector<8x512xf32>
    %243 = arith.maximumf %241, %242 : vector<8x512xf32>
    %244 = arith.truncf %243 : vector<8x512xf32> to vector<8x512xbf16>
    %c0_51 = arith.constant 0 : index
    %c0_52 = arith.constant 0 : index
    %245 = vector.load %arg7[%c0_51, %c0_52] : memref<512x128xbf16, #tpu.memory_space<vmem>>, vector<512x128xbf16>
    %cst_53 = arith.constant dense<0.000000e+00> : vector<8x128xf32>
    %246 = tpu.matmul %244, %245, %cst_53 {dimension_numbers = #tpu.dot_dimension_numbers<[1], [0], [0], [1], [0, 0, 1, 1], [], []>} : vector<8x512xbf16>, vector<512x128xbf16>, vector<8x128xf32> -> vector<8x128xf32>
    %c0_54 = arith.constant 0 : index
    %c0_55 = arith.constant 0 : index
    %247 = vector.load %arg8[%c0_54, %c0_55] : memref<1x128xf32, #tpu.memory_space<vmem>>, vector<1x128xf32>
    %248 = vector.broadcast %247 : vector<1x128xf32> to vector<8x128xf32>
    %249 = arith.addf %246, %248 : vector<8x128xf32>
    %c0_56 = arith.constant 0 : index
    %c0_57 = arith.constant 0 : index
    %250 = vector.load %arg9[%c0_56, %c0_57] : memref<8x128xf32, #tpu.memory_space<vmem>>, vector<8x128xf32>
    tpu.vector_store %arg9[%c0_56, %c0_57], %249 {strides = array<i32>} : memref<8x128xf32, #tpu.memory_space<vmem>>, vector<8x128xf32>,
    return
  }
}

</mosaic_0001>

<bundles_post_ra>
// kernel: gru_nn_forward.1
= control target key start
LH: loop header
LB: loop body
LE: loop exit
PB: predicated region body
PF: predicated region fallthrough
CT: control target
= control target key end

     0   :  { %14 = vsyncpa [#allocation4], 0  ;;  %s6876_s0 = inlined_call_operand.vmem [shape: bf16[64,256], index: 0, kind: input, shape index: {}]   ;;  %s6877_s1 = inlined_call_operand.hbm [shape: bf16[256,768], index: 1, kind: input, shape index: {}]   ;;  %s6878_s2 = inlined_call_operand.hbm [shape: bf16[256,768], index: 2, kind: input, shape index: {}]   ;;  %s6879_s3 = inlined_call_operand.vmem [shape: f32[1,768], index: 3, kind: input, shape index: {}]   ;;  %s6880_s4 = inlined_call_operand.vmem [shape: f32[1,256], index: 4, kind: input, shape index: {}]   ;;  %s6881_s5 = inlined_call_operand.hbm [shape: bf16[256,512], index: 5, kind: input, shape index: {}]   ;;  %s6882_s6 = inlined_call_operand.vmem [shape: f32[1,512], index: 6, kind: input, shape index: {}]   ;;  %s6883_s7 = inlined_call_operand.hbm [shape: bf16[512,128], index: 7, kind: input, shape index: {}]   ;;  %s6884_s8 = inlined_call_operand.vmem [shape: f32[1,128], index: 8, kind: input, shape index: {}]   ;;  %s6885_s9 = inlined_call_operand.vmem [shape: f32[8,128], index: 9, kind: output, shape index: {}]  }
   0x1   :  { %15 = vsyncpa [#allocation6], 0 }
   0x2   :  { %16 = vsyncpa [#allocation9], 0  ;;  %s5086_s30 = smov [#allocation5]   ;;  %s5087_s11 = smov [#allocation3]  }
   0x3   :  { %s36_s10 = sshll.u32 %s5086_s30, 4  ;;  %s24_s12 = sshll.u32 %s5087_s11, 4  ;;  %s37_s10 = int_to_ptr.vmem [resolvable:$true] %s36_s10  ;;  %s5147_s12 = int_to_ptr.vmem [resolvable:$true] %s24_s12 }
   0x4   :  { %s4992_s15 = scalar_lea.hbm %s6878_s2, 12288 }
   0x5   :  { %p4993_p0 = scmp.ne.s32.totalorder %s6878_s2, %s4992_s15  ;;  %p4996_p1 = scmp.lt.u32.totalorder %s4992_s15, %s6878_s2 }
   0x7   :  { %p4998_p2 = pnand %p4996_p1, %p4993_p0 }
   0x9   :  { %5001 = shalt.err (!%p4998_p2)
}
   0xa   :  { %s5002_s20 = scalar_lea.vmem %s37_s10, 12288  ;;  %p5007_p4 = scmp.lt.s32.totalorder %s37_s10, %s37_s10 }
   0xb   :  { %p5003_p3 = scmp.ne.s32.totalorder %s37_s10, %s5002_s20  ;;  %p5008_p5 = scmp.lt.s32.totalorder %s5002_s20, %s5002_s20 }
   0xd   :  { %p5009_p6 = por %p5008_p5, %p5007_p4 }
   0xf   :  { %p5010_p7 = pnand %p5009_p6, %p5003_p3 }
  0x11   :  { %5013 = shalt.err (!%p5010_p7)
}
  0x12   :  { %s5088_s21 = smov 384   ;;  %s5089_s22 = smov 24  }
  0x13   :  { %42 = dma.hbm_to_vmem [thread:$0]  %s6878_s2, 12288, %s37_s10, [#allocation6], %s5088_s21, %s5088_s21, %s5089_s22  }
  0x14   :  { %s5014_s27 = scalar_lea.hbm %s6877_s1, 12288 }
  0x15   :  { %p5015_p8 = scmp.ne.s32.totalorder %s6877_s1, %s5014_s27  ;;  %p5018_p9 = scmp.lt.u32.totalorder %s5014_s27, %s6877_s1 }
  0x17   :  { %p5020_p10 = pnand %p5018_p9, %p5015_p8 }
  0x19   :  { %5023 = shalt.err (!%p5020_p10)
}
  0x1a   :  { %s5024_s13 = scalar_lea.vmem %s5147_s12, 12288  ;;  %p5029_p12 = scmp.lt.s32.totalorder %s5147_s12, %s5147_s12 }
  0x1b   :  { %p5025_p11 = scmp.ne.s32.totalorder %s5147_s12, %s5024_s13  ;;  %p5030_p13 = scmp.lt.s32.totalorder %s5024_s13, %s5024_s13 }
  0x1d   :  { %p5031_p0 = por %p5030_p13, %p5029_p12 }
  0x1f   :  { %p5032_p1 = pnand %p5031_p0, %p5025_p11 }
  0x21   :  { %5035 = shalt.err (!%p5032_p1)
}
  0x22   :  { %30 = dma.hbm_to_vmem [thread:$0]  %s6877_s1, 12288, %s5147_s12, [#allocation4], %s5088_s21, %s5088_s21, %s5089_s22  }
  0x23   :  { %s5090_s14 = smov [#allocation7]   ;;  %s5036_s18 = scalar_lea.hbm %s6881_s5, 8192 }
  0x24   :  { %s52_s15 = sshll.u32 %s5090_s14, 4  ;;  %p5037_p2 = scmp.ne.s32.totalorder %s6881_s5, %s5036_s18  ;;  %s53_s15 = int_to_ptr.vmem [resolvable:$true] %s52_s15 }
  0x25   :  { %p5040_p3 = scmp.lt.u32.totalorder %s5036_s18, %s6881_s5 }
  0x27   :  { %p5042_p4 = pnand %p5040_p3, %p5037_p2 }
  0x29   :  { %5045 = shalt.err (!%p5042_p4)
}
  0x2a   :  { %s5046_s25 = scalar_lea.vmem %s53_s15, 8192  ;;  %p5051_p6 = scmp.lt.s32.totalorder %s53_s15, %s53_s15 }
  0x2b   :  { %p5047_p5 = scmp.ne.s32.totalorder %s53_s15, %s5046_s25  ;;  %p5052_p7 = scmp.lt.s32.totalorder %s5046_s25, %s5046_s25 }
  0x2d   :  { %p5053_p8 = por %p5052_p7, %p5051_p6 }
  0x2f   :  { %p5054_p9 = pnand %p5053_p8, %p5047_p5 }
  0x31   :  { %5057 = shalt.err (!%p5054_p9)
}
  0x32   :  { %s5091_s1 = smov 256   ;;  %s5092_s12 = smov 16  }
  0x33   :  { %58 = dma.hbm_to_vmem [thread:$0]  %s6881_s5, 8192, %s53_s15, [#allocation6], %s5091_s1, %s5091_s1, %s5092_s12  }
  0x34   :  { %s5093_s26 = smov [#allocation8]   ;;  %s5058_s30 = scalar_lea.hbm %s6883_s7, 4096 }
  0x35   :  { %s66_s27 = sshll.u32 %s5093_s26, 4  ;;  %p5059_p10 = scmp.ne.s32.totalorder %s6883_s7, %s5058_s30  ;;  %s67_s27 = int_to_ptr.vmem [resolvable:$true] %s66_s27 }
  0x36   :  { %p5062_p11 = scmp.lt.u32.totalorder %s5058_s30, %s6883_s7 }
  0x38   :  { %p5064_p12 = pnand %p5062_p11, %p5059_p10 }
  0x3a   :  { %5067 = shalt.err (!%p5064_p12)
}
  0x3b   :  { %s5068_s14 = scalar_lea.vmem %s67_s27, 4096  ;;  %p5073_p0 = scmp.lt.s32.totalorder %s67_s27, %s67_s27 }
  0x3c   :  { %p5069_p13 = scmp.ne.s32.totalorder %s67_s27, %s5068_s14  ;;  %p5074_p1 = scmp.lt.s32.totalorder %s5068_s14, %s5068_s14 }
  0x3e   :  { %p5075_p2 = por %p5074_p1, %p5073_p0 }
  0x40   :  { %p5076_p3 = pnand %p5075_p2, %p5069_p13 }
  0x42   :  { %5079 = shalt.err (!%p5076_p3)
}
  0x43   :  { %s5094_s5 = smov 64   ;;  %s5095_s15 = smov 4  }
  0x44   :  { %72 = dma.hbm_to_vmem [thread:$0]  %s6883_s7, 4096, %s67_s27, [#allocation9], %s5094_s5, %s5094_s5, %s5095_s15  }
  0x45   :  { %5080 = dma.done.wait [#allocation4], 12288  }
  0x46   :  { %5081 = vsyncadd [#allocation4], 4294955008 }
  0x47   :  { %5082 = dma.done.wait [#allocation6], 20480  }
  0x48   :  { %5083 = vsyncadd [#allocation6], 4294946816 }
  0x49   :  { %5084 = dma.done.wait [#allocation9], 4096  }
  0x4a   :  { %5085 = vsyncadd [#allocation9], 4294963200  ;;  %v4214_v0 = vld [vmem:[#allocation3 + $0x4] ss:$24 sps:$4 sm:$0xff]   ;;  %v4218_v2 = vld [vmem:[#allocation3] ss:$24 sps:$4 sm:$0xff]  }
  0x4b   :  { %v4216_v1 = vld [vmem:[#allocation3 + $0xc] ss:$24 sps:$4 sm:$0xff]   ;;  %744 = vmatprep.subr.bf16.mxu0 %v4214_v0  ;;  %v4219_v3 = vld [vmem:[#allocation3 + $0x8] ss:$24 sps:$4 sm:$0xff]   ;;  %v4222_v5 = vld [vmem:[#allocation3 + $0x3c] ss:$24 sps:$4 sm:$0xff]  }
  0x4c   :  { %817 = vmatprep.subr.bf16.mxu1 %v4216_v1  ;;  %v4220_v4 = vld [vmem:[#allocation3 + $0x34] ss:$24 sps:$4 sm:$0xff]   ;;  %745 = vmatpush1.bf16.msra.mxu0 %v4218_v2  ;;  %v4224_v6 = vld [vmem:[#allocation3 + $0x30] ss:$24 sps:$4 sm:$0xff]   ;;  %v4226_v8 = vld [vmem:[#allocation3 + $0x64] ss:$24 sps:$4 sm:$0xff]  }
  0x4d   :  { %818 = vmatpush1.bf16.msra.mxu1 %v4219_v3  ;;  %746 = vmatprep.subr.bf16.mxu0 %v4220_v4  ;;  %v4225_v7 = vld [vmem:[#allocation3 + $0x38] ss:$24 sps:$4 sm:$0xff]   ;;  %v4228_v9 = vld [vmem:[#allocation3 + $0x6c] ss:$24 sps:$4 sm:$0xff]   ;;  %v4231_v11 = vld [vmem:[#allocation3 + $0x68] ss:$24 sps:$4 sm:$0xff]  }
  0x4e   :  { %819 = vmatprep.subr.bf16.mxu1 %v4222_v5  ;;  %v4230_v10 = vld [vmem:[#allocation3 + $0x60] ss:$24 sps:$4 sm:$0xff]   ;;  %v4232_v12 = vld [vmem:[#allocation3 + $0x94] ss:$24 sps:$4 sm:$0xff]   ;;  %v4236_v14 = vld [vmem:[#allocation3 + $0x90] ss:$24 sps:$4 sm:$0xff]  }
  0x4f   :  { %v4234_v13 = vld [vmem:[#allocation3 + $0x9c] ss:$24 sps:$4 sm:$0xff]   ;;  %v4237_v15 = vld [vmem:[#allocation3 + $0x98] ss:$24 sps:$4 sm:$0xff]   ;;  %v4240_v17 = vld [vmem:[#allocation3 + $0xcc] ss:$24 sps:$4 sm:$0xff]  }
  0x50   :  { %747 = vmatpush1.bf16.msra.mxu0 %v4224_v6  ;;  %v4238_v16 = vld [vmem:[#allocation3 + $0xc4] ss:$24 sps:$4 sm:$0xff]   ;;  %v4242_v18 = vld [vmem:[#allocation3 + $0xc0] ss:$24 sps:$4 sm:$0xff]   ;;  %v4244_v20 = vld [vmem:[#allocation3 + $0xf4] ss:$24 sps:$4 sm:$0xff]  }
  0x51   :  { %820 = vmatpush1.bf16.msra.mxu1 %v4225_v7  ;;  %748 = vmatprep.subr.bf16.mxu0 %v4226_v8  ;;  %v4243_v19 = vld [vmem:[#allocation3 + $0xc8] ss:$24 sps:$4 sm:$0xff]   ;;  %v4246_v21 = vld [vmem:[#allocation3 + $0xfc] ss:$24 sps:$4 sm:$0xff]   ;;  %v4249_v23 = vld [vmem:[#allocation3 + $0xf8] ss:$24 sps:$4 sm:$0xff]  }
  0x52   :  { %821 = vmatprep.subr.bf16.mxu1 %v4228_v9  ;;  %v4248_v22 = vld [vmem:[#allocation3 + $0xf0] ss:$24 sps:$4 sm:$0xff]   ;;  %v4250_v24 = vld [vmem:[#allocation3 + $0x124] ss:$24 sps:$4 sm:$0xff]   ;;  %v4254_v26 = vld [vmem:[#allocation3 + $0x120] ss:$24 sps:$4 sm:$0xff]  }
  0x53   :  { %v4252_v25 = vld [vmem:[#allocation3 + $0x12c] ss:$24 sps:$4 sm:$0xff]   ;;  %v4255_v27 = vld [vmem:[#allocation3 + $0x128] ss:$24 sps:$4 sm:$0xff]   ;;  %v4258_v29 = vld [vmem:[#allocation3 + $0x15c] ss:$24 sps:$4 sm:$0xff]  }
  0x54   :  { %749 = vmatpush1.bf16.msra.mxu0 %v4230_v10  ;;  %v4256_v28 = vld [vmem:[#allocation3 + $0x154] ss:$24 sps:$4 sm:$0xff]   ;;  %v4260_v30 = vld [vmem:[#allocation3 + $0x150] ss:$24 sps:$4 sm:$0xff]   ;;  %v4262_v32 = vld [vmem:[#allocation3 + $0x184] ss:$24 sps:$4 sm:$0xff]  }
  0x55   :  { %822 = vmatpush1.bf16.msra.mxu1 %v4231_v11  ;;  %750 = vmatprep.subr.bf16.mxu0 %v4232_v12  ;;  %v4261_v31 = vld [vmem:[#allocation3 + $0x158] ss:$24 sps:$4 sm:$0xff]   ;;  %v4264_v33 = vld [vmem:[#allocation3 + $0x18c] ss:$24 sps:$4 sm:$0xff]   ;;  %v4267_v35 = vld [vmem:[#allocation3 + $0x188] ss:$24 sps:$4 sm:$0xff]  }
  0x56   :  { %823 = vmatprep.subr.bf16.mxu1 %v4234_v13  ;;  %v4266_v34 = vld [vmem:[#allocation3 + $0x180] ss:$24 sps:$4 sm:$0xff]   ;;  %v4268_v36 = vld [vmem:[#allocation3 + $0x1b4] ss:$24 sps:$4 sm:$0xff]   ;;  %v4272_v38 = vld [vmem:[#allocation3 + $0x1b0] ss:$24 sps:$4 sm:$0xff]  }
  0x57   :  { %v4270_v37 = vld [vmem:[#allocation3 + $0x1bc] ss:$24 sps:$4 sm:$0xff]   ;;  %v4273_v39 = vld [vmem:[#allocation3 + $0x1b8] ss:$24 sps:$4 sm:$0xff]   ;;  %v4276_v41 = vld [vmem:[#allocation3 + $0x1ec] ss:$24 sps:$4 sm:$0xff]  }
  0x58   :  { %751 = vmatpush1.bf16.msra.mxu0 %v4236_v14  ;;  %v4274_v40 = vld [vmem:[#allocation3 + $0x1e4] ss:$24 sps:$4 sm:$0xff]   ;;  %v4278_v42 = vld [vmem:[#allocation3 + $0x1e0] ss:$24 sps:$4 sm:$0xff]   ;;  %v4280_v44 = vld [vmem:[#allocation3 + $0x214] ss:$24 sps:$4 sm:$0xff]  }
  0x59   :  { %824 = vmatpush1.bf16.msra.mxu1 %v4237_v15  ;;  %752 = vmatprep.subr.bf16.mxu0 %v4238_v16  ;;  %v4279_v43 = vld [vmem:[#allocation3 + $0x1e8] ss:$24 sps:$4 sm:$0xff]   ;;  %v4282_v45 = vld [vmem:[#allocation3 + $0x21c] ss:$24 sps:$4 sm:$0xff]   ;;  %v4285_v47 = vld [vmem:[#allocation3 + $0x218] ss:$24 sps:$4 sm:$0xff]  }
  0x5a   :  { %825 = vmatprep.subr.bf16.mxu1 %v4240_v17  ;;  %v4284_v46 = vld [vmem:[#allocation3 + $0x210] ss:$24 sps:$4 sm:$0xff]   ;;  %v5205_v48 = vld [vmem:[%s6876_s0 + $0x4] ss:$8 sps:$4 sm:$0xff]   ;;  %v4290_v51 = vld [vmem:[#allocation3 + $0x240] ss:$24 sps:$4 sm:$0xff]  }
  0x5b   :  { %v4286_v49 = vld [vmem:[#allocation3 + $0x244] ss:$24 sps:$4 sm:$0xff]   ;;  %776 = vmatprep.mubr.bf16.mxu0 %v5205_v48  ;;  %849 = vmatprep.mubr.bf16.mxu1 %v5205_v48  ;;  %v4291_v52 = vld [vmem:[#allocation3 + $0x248] ss:$24 sps:$4 sm:$0xff]   ;;  %v4292_v53 = vld [vmem:[#allocation3 + $0x274] ss:$24 sps:$4 sm:$0xff]  }
  0x5c   :  { %753 = vmatpush1.bf16.msra.mxu0 %v4242_v18  ;;  %v4288_v50 = vld [vmem:[#allocation3 + $0x24c] ss:$24 sps:$4 sm:$0xff]   ;;  %v4294_v54 = vld [vmem:[#allocation3 + $0x27c] ss:$24 sps:$4 sm:$0xff]   ;;  %v4296_v55 = vld [vmem:[#allocation3 + $0x270] ss:$24 sps:$4 sm:$0xff]  }
  0x5d   :  { %826 = vmatpush1.bf16.msra.mxu1 %v4243_v19  ;;  %754 = vmatprep.subr.bf16.mxu0 %v4244_v20  ;;  %v4297_v56 = vld [vmem:[#allocation3 + $0x278] ss:$24 sps:$4 sm:$0xff]   ;;  %v4298_v57 = vld [vmem:[#allocation3 + $0x2a4] ss:$24 sps:$4 sm:$0xff]   ;;  %v4303_v60 = vld [vmem:[#allocation3 + $0x2a8] ss:$24 sps:$4 sm:$0xff]  }
  0x5e   :  { %827 = vmatprep.subr.bf16.mxu1 %v4246_v21  ;;  %v4300_v58 = vld [vmem:[#allocation3 + $0x2ac] ss:$24 sps:$4 sm:$0xff]   ;;  %v4302_v59 = vld [vmem:[#allocation3 + $0x2a0] ss:$24 sps:$4 sm:$0xff]   ;;  %v4306_v62 = vld [vmem:[#allocation3 + $0x2dc] ss:$24 sps:$4 sm:$0xff]  }
  0x5f   :  { %v4304_v61 = vld [vmem:[#allocation3 + $0x2d4] ss:$24 sps:$4 sm:$0xff]   ;;  %v4308_v63 = vld [vmem:[#allocation3 + $0x2d0] ss:$24 sps:$4 sm:$0xff]   ;;  %v4316_v2 = vld [vmem:[#allocation5 + $0x4] ss:$24 sps:$4 sm:$0xff]  }
  0x60   :  { %755 = vmatpush1.bf16.msra.mxu0 %v4248_v22  ;;  %v4309_v0 = vld [vmem:[#allocation3 + $0x2d8] ss:$24 sps:$4 sm:$0xff]   ;;  %v4315_v1 = vld [vmem:[#allocation3 + $0x14] ss:$24 sps:$4 sm:$0xff]   ;;  %v5212_v3 = vld [vmem:[%s6876_s0] ss:$8 sps:$4 sm:$0xff]  }
  0x61   :  { %828 = vmatpush1.bf16.msra.mxu1 %v4249_v23  ;;  %756 = vmatprep.subr.bf16.mxu0 %v4250_v24  ;;  %v4313_v4 = vld [vmem:[#allocation3 + $0x10] ss:$24 sps:$4 sm:$0xff]   ;;  %v4318_v5 = vld [vmem:[#allocation5] ss:$24 sps:$4 sm:$0xff]   ;;  %v4321_v6 = vld [vmem:[#allocation3 + $0x44] ss:$24 sps:$4 sm:$0xff]  }
  0x62   :  { %829 = vmatprep.subr.bf16.mxu1 %v4252_v25  ;;  %v4322_v7 = vld [vmem:[#allocation5 + $0x34] ss:$24 sps:$4 sm:$0xff]   ;;  %v4319_v8 = vld [vmem:[#allocation3 + $0x40] ss:$24 sps:$4 sm:$0xff]   ;;  %v4324_v9 = vld [vmem:[#allocation5 + $0x30] ss:$24 sps:$4 sm:$0xff]  }
  0x63   :  { %v4327_v10 = vld [vmem:[#allocation3 + $0x74] ss:$24 sps:$4 sm:$0xff]   ;;  %v5216_v11 = vld [vmem:[#allocation5 + $0x64] ss:$24 sps:$4 sm:$0xff]   ;;  %v4325_v12 = vld [vmem:[#allocation3 + $0x70] ss:$24 sps:$4 sm:$0xff]  }
  0x64   :  { %757 = vmatpush1.bf16.msra.mxu0 %v4254_v26  ;;  %v5218_v13 = vld [vmem:[#allocation5 + $0x60] ss:$24 sps:$4 sm:$0xff]   ;;  %v5223_v14 = vld [vmem:[%s6876_s0 + $0x14] ss:$8 sps:$4 sm:$0xff]   ;;  %v5235_v19 = vld [vmem:[#allocation5 + $0x90] ss:$24 sps:$4 sm:$0xff]  }
  0x65   :  { %830 = vmatpush1.bf16.msra.mxu1 %v4255_v27  ;;  %758 = vmatprep.subr.bf16.mxu0 %v4256_v28  ;;  %v5228_v15 = vld [vmem:[%s6876_s0 + $0x10] ss:$8 sps:$4 sm:$0xff]   ;;  %v4333_v16 = vld [vmem:[#allocation3 + $0xa4] ss:$24 sps:$4 sm:$0xff]   ;;  %v5231_v17 = vld [vmem:[#allocation5 + $0x94] ss:$24 sps:$4 sm:$0xff]  }
  0x66   :  { %831 = vmatprep.subr.bf16.mxu1 %v4258_v29  ;;  %v4331_v18 = vld [vmem:[#allocation3 + $0xa0] ss:$24 sps:$4 sm:$0xff]   ;;  %v4339_v20 = vld [vmem:[#allocation3 + $0xd4] ss:$24 sps:$4 sm:$0xff]   ;;  %v5240_v21 = vld [vmem:[#allocation5 + $0xc4] ss:$24 sps:$4 sm:$0xff]  }
  0x67   :  { %v5246_v22 = vld [vmem:[%s6876_s0 + $0x24] ss:$8 sps:$4 sm:$0xff]   ;;  %v4337_v23 = vld [vmem:[#allocation3 + $0xd0] ss:$24 sps:$4 sm:$0xff]   ;;  %v5248_v24 = vld [vmem:[#allocation5 + $0xc0] ss:$24 sps:$4 sm:$0xff]  }
  0x68   :  { %759 = vmatpush1.bf16.msra.mxu0 %v4260_v30  ;;  %v5254_v25 = vld [vmem:[%s6876_s0 + $0x20] ss:$8 sps:$4 sm:$0xff]   ;;  %v4345_v26 = vld [vmem:[#allocation3 + $0x104] ss:$24 sps:$4 sm:$0xff]   ;;  %v5259_v27 = vld [vmem:[#allocation5 + $0xf4] ss:$24 sps:$4 sm:$0xff]  }
  0x69   :  { %832 = vmatpush1.bf16.msra.mxu1 %v4261_v31  ;;  %760 = vmatprep.subr.bf16.mxu0 %v4262_v32  ;;  %v4343_v28 = vld [vmem:[#allocation3 + $0x100] ss:$24 sps:$4 sm:$0xff]   ;;  %v5261_v29 = vld [vmem:[#allocation5 + $0xf0] ss:$24 sps:$4 sm:$0xff]   ;;  %v4351_v30 = vld [vmem:[#allocation3 + $0x134] ss:$24 sps:$4 sm:$0xff]  }
  0x6a   :  { %833 = vmatprep.subr.bf16.mxu1 %v4264_v33  ;;  %v5269_v31 = vld [vmem:[%s6876_s0 + $0x34] ss:$8 sps:$4 sm:$0xff]   ;;  %v4349_v33 = vld [vmem:[#allocation3 + $0x130] ss:$24 sps:$4 sm:$0xff]  }
  0x6b   :  { %v5272_v32 = vld [vmem:[#allocation5 + $0x124] ss:$24 sps:$4 sm:$0xff]  }
  0x6c   :  { %761 = vmatpush1.bf16.msra.mxu0 %v4266_v34  ;;  %v5276_v34 = vld [vmem:[#allocation5 + $0x120] ss:$24 sps:$4 sm:$0xff]  }
  0x6d   :  { %834 = vmatpush1.bf16.msra.mxu1 %v4267_v35  ;;  %762 = vmatprep.subr.bf16.mxu0 %v4268_v36  ;;  %v5281_v35 = vld [vmem:[%s6876_s0 + $0x30] ss:$8 sps:$4 sm:$0xff]   ;;  %v4357_v36 = vld [vmem:[#allocation3 + $0x164] ss:$24 sps:$4 sm:$0xff]  }
  0x6e   :  { %835 = vmatprep.subr.bf16.mxu1 %v4270_v37  ;;  %v5285_v37 = vld [vmem:[#allocation5 + $0x154] ss:$24 sps:$4 sm:$0xff]  }
  0x70   :  { %763 = vmatpush1.bf16.msra.mxu0 %v4272_v38  ;;  %v4355_v38 = vld [vmem:[#allocation3 + $0x160] ss:$24 sps:$4 sm:$0xff]  }
  0x71   :  { %836 = vmatpush1.bf16.msra.mxu1 %v4273_v39  ;;  %764 = vmatprep.subr.bf16.mxu0 %v4274_v40  ;;  %v5290_v39 = vld [vmem:[#allocation5 + $0x150] ss:$24 sps:$4 sm:$0xff]   ;;  %v4363_v40 = vld [vmem:[#allocation3 + $0x194] ss:$24 sps:$4 sm:$0xff]  }
  0x72   :  { %837 = vmatprep.subr.bf16.mxu1 %v4276_v41  ;;  %v5293_v41 = vld [vmem:[#allocation5 + $0x184] ss:$24 sps:$4 sm:$0xff]  }
  0x74   :  { %765 = vmatpush1.bf16.msra.mxu0 %v4278_v42  ;;  %v6886_v42 = vmov 0  }
  0x75   :  { %838 = vmatpush1.bf16.msra.mxu1 %v4279_v43  ;;  %766 = vmatprep.subr.bf16.mxu0 %v4280_v44  ;;  %v4361_v43 = vld [vmem:[#allocation3 + $0x190] ss:$24 sps:$4 sm:$0xff]   ;;  %v5297_v44 = vld [vmem:[#allocation5 + $0x180] ss:$24 sps:$4 sm:$0xff]  }
  0x76   :  { %839 = vmatprep.subr.bf16.mxu1 %v4282_v45  ;;  %v4369_v45 = vld [vmem:[#allocation3 + $0x1c4] ss:$24 sps:$4 sm:$0xff]  }
  0x78   :  { %767 = vmatpush1.bf16.msra.mxu0 %v4284_v46  ;;  %v5301_v46 = vld [vmem:[#allocation5 + $0x1b4] ss:$24 sps:$4 sm:$0xff]  }
  0x79   :  { %840 = vmatpush1.bf16.msra.mxu1 %v4285_v47  ;;  %768 = vmatprep.subr.bf16.mxu0 %v4286_v49  ;;  %v4367_v47 = vld [vmem:[#allocation3 + $0x1c0] ss:$24 sps:$4 sm:$0xff]   ;;  %v4378_v49 = vld [vmem:[#allocation3 + $0x1f4] ss:$24 sps:$4 sm:$0xff]  }
  0x7a   :  { %841 = vmatprep.subr.bf16.mxu1 %v4288_v50  ;;  %v5307_v50 = vld [vmem:[#allocation5 + $0x1e4] ss:$24 sps:$4 sm:$0xff]  }
  0x7c   :  { %769 = vmatpush1.bf16.msra.mxu0 %v4290_v51  ;;  %v4376_v51 = vld [vmem:[#allocation3 + $0x1f0] ss:$24 sps:$4 sm:$0xff]  }
  0x7d   :  { %842 = vmatpush1.bf16.msra.mxu1 %v4291_v52  ;;  %770 = vmatprep.subr.bf16.mxu0 %v4292_v53  ;;  %v5309_v52 = vld [vmem:[#allocation5 + $0x1e0] ss:$24 sps:$4 sm:$0xff]   ;;  %v4384_v53 = vld [vmem:[#allocation3 + $0x224] ss:$24 sps:$4 sm:$0xff]  }
  0x7e   :  { %843 = vmatprep.subr.bf16.mxu1 %v4294_v54  ;;  %v5313_v54 = vld [vmem:[#allocation5 + $0x214] ss:$24 sps:$4 sm:$0xff]  }
  0x80   :  { %771 = vmatpush1.bf16.msra.mxu0 %v4296_v55  ;;  %v4382_v55 = vld [vmem:[#allocation3 + $0x220] ss:$24 sps:$4 sm:$0xff]  }
  0x81   :  { %844 = vmatpush1.bf16.msra.mxu1 %v4297_v56  ;;  %772 = vmatprep.subr.bf16.mxu0 %v4298_v57  ;;  %v5316_v56 = vld [vmem:[#allocation5 + $0x210] ss:$24 sps:$4 sm:$0xff]   ;;  %v4393_v57 = vld [vmem:[#allocation3 + $0x254] ss:$24 sps:$4 sm:$0xff]  }
  0x82   :  { %845 = vmatprep.subr.bf16.mxu1 %v4300_v58  ;;  %v5319_v58 = vld [vmem:[#allocation5 + $0x244] ss:$24 sps:$4 sm:$0xff]  }
  0x84   :  { %773 = vmatpush1.bf16.msra.mxu0 %v4302_v59  ;;  %v4391_v59 = vld [vmem:[#allocation3 + $0x250] ss:$24 sps:$4 sm:$0xff]  }
  0x85   :  { %846 = vmatpush1.bf16.msra.mxu1 %v4303_v60  ;;  %774 = vmatprep.subr.bf16.mxu0 %v4304_v61  ;;  %v5321_v60 = vld [vmem:[#allocation5 + $0x240] ss:$24 sps:$4 sm:$0xff]   ;;  %v4399_v61 = vld [vmem:[#allocation3 + $0x284] ss:$24 sps:$4 sm:$0xff]  }
  0x86   :  { %847 = vmatprep.subr.bf16.mxu1 %v4306_v62  ;;  %v5325_v62 = vld [vmem:[#allocation5 + $0x274] ss:$24 sps:$4 sm:$0xff]  }
  0x88   :  { %775 = vmatpush1.bf16.msra.mxu0 %v4308_v63  ;;  %v4397_v63 = vld [vmem:[#allocation3 + $0x280] ss:$24 sps:$4 sm:$0xff]  }
  0x89   :  { %848 = vmatpush1.bf16.msra.mxu1 %v4309_v0  ;;  %890 = vmatprep.subr.bf16.mxu0 %v4315_v1  ;;  %v5328_v0 = vld [vmem:[#allocation5 + $0x270] ss:$24 sps:$4 sm:$0xff]   ;;  %v4408_v1 = vld [vmem:[#allocation3 + $0x2b4] ss:$24 sps:$4 sm:$0xff]  }
  0x8a   :  { %1605 = vmatprep.subr.bf16.mxu1 %v4316_v2  ;;  %v5331_v2 = vld [vmem:[#allocation5 + $0x2a4] ss:$24 sps:$4 sm:$0xff]  }
  0x8b   :  { %777 = vmatmul.mubr.bf16.vlgmr.msra.gmra.mrb[0].mxu0 %v5212_v3 }
  0x8c   :  { %850 = vmatmul.mubr.bf16.vlgmr.msra.gmra.mrb[0].mxu1 %v5212_v3  ;;  %891 = vmatpush1.bf16.msra.mxu0 %v4313_v4  ;;  %v4406_v4 = vld [vmem:[#allocation3 + $0x2b0] ss:$24 sps:$4 sm:$0xff]  }
  0x8d   :  { %1606 = vmatpush1.bf16.msra.mxu1 %v4318_v5  ;;  %892 = vmatprep.subr.bf16.mxu0 %v4321_v6  ;;  %v5333_v5 = vld [vmem:[#allocation5 + $0x2a0] ss:$24 sps:$4 sm:$0xff]   ;;  %v4414_v6 = vld [vmem:[#allocation3 + $0x2e4] ss:$24 sps:$4 sm:$0xff]  }
  0x8e   :  { %1607 = vmatprep.subr.bf16.mxu1 %v4322_v7  ;;  %786 = vmatprep.mubr.bf16.mxu0 %v5223_v14  ;;  %v5337_v7 = vld [vmem:[#allocation5 + $0x2d4] ss:$24 sps:$4 sm:$0xff]  }
  0x8f   :  { %859 = vmatprep.mubr.bf16.mxu1 %v5223_v14  ;;  %7066 = vst [vmem:[#allocation13_spill] sm:$0xff] %v5337_v7 }
  0x90   :  { %893 = vmatpush1.bf16.msra.mxu0 %v4319_v8  ;;  %v4412_v8 = vld [vmem:[#allocation3 + $0x2e0] ss:$24 sps:$4 sm:$0xff]  }
  0x91   :  { %1608 = vmatpush1.bf16.msra.mxu1 %v4324_v9  ;;  %894 = vmatprep.subr.bf16.mxu0 %v4327_v10  ;;  %v5340_v9 = vld [vmem:[#allocation5 + $0x2d0] ss:$24 sps:$4 sm:$0xff]   ;;  %v5342_v10 = vld [vmem:[#allocation5 + $0xc] ss:$24 sps:$4 sm:$0xff]  }
  0x92   :  { %1609 = vmatprep.subr.bf16.mxu1 %v5216_v11  ;;  %7067 = vst [vmem:[#allocation14_spill] sm:$0xff] %v5340_v9 }
  0x93   :  { %787 = vmatmul.mubr.bf16.gmra.mrb[4].mxu0 %v5228_v15 }
  0x94   :  { %860 = vmatmul.mubr.bf16.gmra.mrb[4].mxu1 %v5228_v15  ;;  %895 = vmatpush1.bf16.msra.mxu0 %v4325_v12  ;;  %v5345_v12 = vld [vmem:[#allocation5 + $0x14] ss:$24 sps:$4 sm:$0xff]  }
  0x95   :  { %1610 = vmatpush1.bf16.msra.mxu1 %v5218_v13  ;;  %896 = vmatprep.subr.bf16.mxu0 %v4333_v16  ;;  %7068 = vst [vmem:[#allocation15_spill] sm:$0xff] %v5345_v12  ;;  %v5347_v16 = vld [vmem:[#allocation5 + $0x8] ss:$24 sps:$4 sm:$0xff]  }
  0x96   :  { %1611 = vmatprep.subr.bf16.mxu1 %v5231_v17  ;;  %796 = vmatprep.mubr.bf16.mxu0 %v5246_v22 }
  0x97   :  { %869 = vmatprep.mubr.bf16.mxu1 %v5246_v22 }
  0x98   :  { %897 = vmatpush1.bf16.msra.mxu0 %v4331_v18  ;;  %v4423_v18 = vld [vmem:[#allocation5 + $0x10] ss:$24 sps:$4 sm:$0xff]  }
  0x99   :  { %1612 = vmatpush1.bf16.msra.mxu1 %v5235_v19  ;;  %898 = vmatprep.subr.bf16.mxu0 %v4339_v20  ;;  %v5350_v20 = vld [vmem:[#allocation5 + $0x3c] ss:$24 sps:$4 sm:$0xff]  }
  0x9a   :  { %1613 = vmatprep.subr.bf16.mxu1 %v5240_v21 }
  0x9b   :  { %797 = vmatmul.mubr.bf16.gmra.mrb[8].mxu0 %v5254_v25 }
  0x9c   :  { %870 = vmatmul.mubr.bf16.gmra.mrb[8].mxu1 %v5254_v25  ;;  %899 = vmatpush1.bf16.msra.mxu0 %v4337_v23  ;;  %v5354_v23 = vld [vmem:[#allocation5 + $0x44] ss:$24 sps:$4 sm:$0xff]  }
  0x9d   :  { %1614 = vmatpush1.bf16.msra.mxu1 %v5248_v24  ;;  %900 = vmatprep.subr.bf16.mxu0 %v4345_v26  ;;  %7069 = vst [vmem:[#allocation16_spill] sm:$0xff] %v5354_v23  ;;  %v5359_v26 = vld [vmem:[#allocation5 + $0x38] ss:$24 sps:$4 sm:$0xff]  }
  0x9e   :  { %1615 = vmatprep.subr.bf16.mxu1 %v5259_v27  ;;  %806 = vmatprep.mubr.bf16.mxu0 %v5269_v31 }
  0x9f   :  { %879 = vmatprep.mubr.bf16.mxu1 %v5269_v31 }
  0xa0   :  { %901 = vmatpush1.bf16.msra.mxu0 %v4343_v28  ;;  %v5361_v28 = vld [vmem:[#allocation5 + $0x40] ss:$24 sps:$4 sm:$0xff]  }
  0xa1   :  { %1616 = vmatpush1.bf16.msra.mxu1 %v5261_v29  ;;  %902 = vmatprep.subr.bf16.mxu0 %v4351_v30  ;;  %7070 = vst [vmem:[#allocation17_spill] sm:$0xff] %v5361_v28  ;;  %v5365_v30 = vld [vmem:[#allocation5 + $0x6c] ss:$24 sps:$4 sm:$0xff]  }
  0xa2   :  { %1617 = vmatprep.subr.bf16.mxu1 %v5272_v32 }
  0xa3   :  { %807 = vmatmul.mubr.bf16.gmra.mrb[12].mxu0 %v5281_v35 }
  0xa4   :  { %880 = vmatmul.mubr.bf16.gmra.mrb[12].mxu1 %v5281_v35  ;;  %903 = vmatpush1.bf16.msra.mxu0 %v4349_v33  ;;  %v5367_v33 = vld [vmem:[#allocation5 + $0x74] ss:$24 sps:$4 sm:$0xff]  }
  0xa5   :  { %1618 = vmatpush1.bf16.msra.mxu1 %v5276_v34  ;;  %904 = vmatprep.subr.bf16.mxu0 %v4357_v36  ;;  %7071 = vst [vmem:[#allocation18_spill] sm:$0xff] %v5367_v33  ;;  %v5369_v36 = vld [vmem:[#allocation5 + $0x68] ss:$24 sps:$4 sm:$0xff]  }
  0xa6   :  { %1619 = vmatprep.subr.bf16.mxu1 %v5285_v37  ;;  %922 = vmatprep.mubr.bf16.mxu0 %v5205_v48  ;;  %v5304_v48 = vld [vmem:[#allocation5 + $0x1b0] ss:$24 sps:$4 sm:$0xff]  }
  0xa7   :  { %1637 = vmatprep.mubr.bf16.mxu1 %v6886_v42 }
  0xa8   :  { %905 = vmatpush1.bf16.msra.mxu0 %v4355_v38  ;;  %v5375_v38 = vld [vmem:[#allocation5 + $0x9c] ss:$24 sps:$4 sm:$0xff]  }
  0xa9   :  { %1620 = vmatpush1.bf16.msra.mxu1 %v5290_v39  ;;  %906 = vmatprep.subr.bf16.mxu0 %v4363_v40  ;;  %v5377_v40 = vld [vmem:[#allocation5 + $0xa4] ss:$24 sps:$4 sm:$0xff]  }
  0xaa   :  { %1621 = vmatprep.subr.bf16.mxu1 %v5293_v41  ;;  %7073 = vst [vmem:[#allocation20_spill] sm:$0xff] %v5377_v40 }
  0xac   :  { %907 = vmatpush1.bf16.msra.mxu0 %v4361_v43  ;;  %v5383_v43 = vld [vmem:[#allocation5 + $0x98] ss:$24 sps:$4 sm:$0xff]  }
  0xad   :  { %1622 = vmatpush1.bf16.msra.mxu1 %v5297_v44  ;;  %908 = vmatprep.subr.bf16.mxu0 %v4369_v45  ;;  %v5385_v45 = vld [vmem:[#allocation5 + $0xa0] ss:$24 sps:$4 sm:$0xff]  }
  0xae   :  { %1623 = vmatprep.subr.bf16.mxu1 %v5301_v46  ;;  %7074 = vst [vmem:[#allocation21_spill] sm:$0xff] %v5385_v45 }
  0xb0   :  { %909 = vmatpush1.bf16.msra.mxu0 %v4367_v47  ;;  %v5387_v47 = vld [vmem:[#allocation5 + $0xcc] ss:$24 sps:$4 sm:$0xff]  }
  0xb1   :  { %1624 = vmatpush1.bf16.msra.mxu1 %v5304_v48  ;;  %910 = vmatprep.subr.bf16.mxu0 %v4378_v49  ;;  %v5396_v49 = vld [vmem:[#allocation5 + $0xc8] ss:$24 sps:$4 sm:$0xff]  }
  0xb2   :  { %1625 = vmatprep.subr.bf16.mxu1 %v5307_v50 }
  0xb4   :  { %911 = vmatpush1.bf16.msra.mxu0 %v4376_v51  ;;  %v5398_v51 = vld [vmem:[#allocation5 + $0xd0] ss:$24 sps:$4 sm:$0xff]  }
  0xb5   :  { %1626 = vmatpush1.bf16.msra.mxu1 %v5309_v52  ;;  %912 = vmatprep.subr.bf16.mxu0 %v4384_v53  ;;  %7076 = vst [vmem:[#allocation23_spill] sm:$0xff] %v5398_v51  ;;  %v5401_v53 = vld [vmem:[#allocation5 + $0xfc] ss:$24 sps:$4 sm:$0xff]  }
  0xb6   :  { %1627 = vmatprep.subr.bf16.mxu1 %v5313_v54 }
  0xb8   :  { %913 = vmatpush1.bf16.msra.mxu0 %v4382_v55  ;;  %v5403_v55 = vld [vmem:[#allocation5 + $0x104] ss:$24 sps:$4 sm:$0xff]  }
  0xb9   :  { %1628 = vmatpush1.bf16.msra.mxu1 %v5316_v56  ;;  %914 = vmatprep.subr.bf16.mxu0 %v4393_v57  ;;  %7077 = vst [vmem:[#allocation24_spill] sm:$0xff] %v5403_v55  ;;  %v5411_v57 = vld [vmem:[#allocation5 + $0x100] ss:$24 sps:$4 sm:$0xff]  }
  0xba   :  { %1629 = vmatprep.subr.bf16.mxu1 %v5319_v58  ;;  %7078 = vst [vmem:[#allocation25_spill] sm:$0xff] %v5411_v57 }
  0xbc   :  { %915 = vmatpush1.bf16.msra.mxu0 %v4391_v59  ;;  %v5413_v59 = vld [vmem:[#allocation5 + $0x12c] ss:$24 sps:$4 sm:$0xff]  }
  0xbd   :  { %1630 = vmatpush1.bf16.msra.mxu1 %v5321_v60  ;;  %916 = vmatprep.subr.bf16.mxu0 %v4399_v61  ;;  %v5415_v61 = vld [vmem:[#allocation5 + $0x134] ss:$24 sps:$4 sm:$0xff]  }
  0xbe   :  { %1631 = vmatprep.subr.bf16.mxu1 %v5325_v62  ;;  %7079 = vst [vmem:[#allocation26_spill] sm:$0xff] %v5415_v61 }
  0xc0   :  { %917 = vmatpush1.bf16.msra.mxu0 %v4397_v63  ;;  %v5424_v63 = vld [vmem:[#allocation5 + $0x130] ss:$24 sps:$4 sm:$0xff]  }
  0xc1   :  { %1632 = vmatpush1.bf16.msra.mxu1 %v5328_v0  ;;  %918 = vmatprep.subr.bf16.mxu0 %v4408_v1  ;;  %7080 = vst [vmem:[#allocation27_spill] sm:$0xff] %v5424_v63  ;;  %v5427_v1 = vld [vmem:[#allocation5 + $0x15c] ss:$24 sps:$4 sm:$0xff]  }
  0xc2   :  { %1633 = vmatprep.subr.bf16.mxu1 %v5331_v2 }
  0xc4   :  { %919 = vmatpush1.bf16.msra.mxu0 %v4406_v4  ;;  %v5429_v4 = vld [vmem:[#allocation5 + $0x164] ss:$24 sps:$4 sm:$0xff]  }
  0xc5   :  { %1634 = vmatpush1.bf16.msra.mxu1 %v5333_v5  ;;  %920 = vmatprep.subr.bf16.mxu0 %v4414_v6  ;;  %7081 = vst [vmem:[#allocation28_spill] sm:$0xff] %v5429_v4  ;;  %v5437_v6 = vld [vmem:[#allocation5 + $0x160] ss:$24 sps:$4 sm:$0xff]  }
  0xc6   :  { %1635 = vmatprep.subr.bf16.mxu1 %v5337_v7  ;;  %7082 = vst [vmem:[#allocation29_spill] sm:$0xff] %v5437_v6  ;;  %v5537_v7 = vld [vmem:[#allocation5 + $0x2e0] ss:$24 sps:$4 sm:$0xff]  }
  0xc7   :  { %7099 = vst [vmem:[#allocation45_spill] sm:$0xff] %v5537_v7 }
  0xc8   :  { %921 = vmatpush1.bf16.msra.mxu0 %v4412_v8  ;;  %v5439_v8 = vld [vmem:[#allocation5 + $0x18c] ss:$24 sps:$4 sm:$0xff]  }
  0xc9   :  { %1636 = vmatpush1.bf16.msra.mxu1 %v5340_v9  ;;  %1646 = vmatprep.subr.bf16.mxu0 %v5342_v10  ;;  %v5531_v9 = vld [vmem:[#allocation5 + $0x2e4] ss:$24 sps:$4 sm:$0xff]  }
  0xca   :  { %1687 = vmatprep.subr.bf16.mxu1 %v5345_v12  ;;  %v5525_v12 = vld [vmem:[#allocation5 + $0x2b0] ss:$24 sps:$4 sm:$0xff]   ;;  %7098 = vst [vmem:[#allocation44_spill] sm:$0xff] %v5531_v9 }
  0xcb   :  { %923 = vmatmul.mubr.bf16.vlgmr.msra.gmra.mrb[16].mxu0 %v5212_v3  ;;  %v5371_v3 = vld [vmem:[#allocation5 + $0x70] ss:$24 sps:$4 sm:$0xff]   ;;  %7097 = vst [vmem:[#allocation43_spill] sm:$0xff] %v5525_v12 }
  0xcc   :  { %1638 = vmatmul.mubr.bf16.vlgmr.msra.gmra.mrb[16].mxu1 %v6886_v42  ;;  %1647 = vmatpush1.bf16.msra.mxu0 %v5347_v16  ;;  %7072 = vst [vmem:[#allocation19_spill] sm:$0xff] %v5371_v3 }
  0xcd   :  { %1688 = vmatpush1.bf16.msra.mxu1 %v4423_v18  ;;  %1648 = vmatprep.subr.bf16.mxu0 %v5350_v20  ;;  %v5441_v18 = vld [vmem:[#allocation5 + $0x194] ss:$24 sps:$4 sm:$0xff]  }
  0xce   :  { %1689 = vmatprep.subr.bf16.mxu1 %v5354_v23  ;;  %932 = vmatprep.mubr.bf16.mxu0 %v5223_v14  ;;  %v5389_v14 = vld [vmem:[#allocation5 + $0xd4] ss:$24 sps:$4 sm:$0xff]   ;;  %7083 = vst [vmem:[#allocation30_spill] sm:$0xff] %v5441_v18 }
  0xcf   :  { %1719 = vmatprep.mubr.bf16.mxu1 %v6886_v42  ;;  %7075 = vst [vmem:[#allocation22_spill] sm:$0xff] %v5389_v14  ;;  %v5450_v42 = vld [vmem:[#allocation5 + $0x190] ss:$24 sps:$4 sm:$0xff]   ;;  %v5519_v23 = vld [vmem:[#allocation5 + $0x2b4] ss:$24 sps:$4 sm:$0xff]  }
  0xd0   :  { %1649 = vmatpush1.bf16.msra.mxu0 %v5359_v26  ;;  %7084 = vst [vmem:[#allocation31_spill] sm:$0xff] %v5450_v42  ;;  %7096 = vst [vmem:[#allocation42_spill] sm:$0xff] %v5519_v23 }
  0xd1   :  { %1690 = vmatpush1.bf16.msra.mxu1 %v5361_v28  ;;  %1650 = vmatprep.subr.bf16.mxu0 %v5365_v30  ;;  %v5507_v28 = vld [vmem:[#allocation5 + $0x284] ss:$24 sps:$4 sm:$0xff]  }
  0xd2   :  { %1691 = vmatprep.subr.bf16.mxu1 %v5367_v33  ;;  %v5505_v33 = vld [vmem:[#allocation5 + $0x27c] ss:$24 sps:$4 sm:$0xff]   ;;  %7094 = vst [vmem:[#allocation40_spill] sm:$0xff] %v5507_v28 }
  0xd3   :  { %933 = vmatmul.mubr.bf16.gmra.mrb[20].mxu0 %v5228_v15  ;;  %v5409_v15 = vld [vmem:[#allocation5 + $0xf8] ss:$24 sps:$4 sm:$0xff]  }
  0xd4   :  { %1651 = vmatpush1.bf16.msra.mxu0 %v5369_v36  ;;  %942 = vmatprep.mubr.bf16.mxu0 %v5246_v22  ;;  %v5422_v22 = vld [vmem:[#allocation5 + $0x128] ss:$24 sps:$4 sm:$0xff]  }
  0xd5   :  { %1692 = vmatpush1.bf16.msra.mxu1 %v5371_v3  ;;  %1652 = vmatprep.subr.bf16.mxu0 %v5375_v38  ;;  %v5491_v3 = vld [vmem:[#allocation5 + $0x254] ss:$24 sps:$4 sm:$0xff]  }
  0xd6   :  { %1693 = vmatprep.subr.bf16.mxu1 %v5377_v40  ;;  %v5487_v40 = vld [vmem:[#allocation5 + $0x220] ss:$24 sps:$4 sm:$0xff]   ;;  %7092 = vst [vmem:[#allocation38_spill] sm:$0xff] %v5491_v3 }
  0xd7   :  { %7091 = vst [vmem:[#allocation37_spill] sm:$0xff] %v5487_v40 }
  0xd8   :  { %1653 = vmatpush1.bf16.msra.mxu0 %v5383_v43 }
  0xd9   :  { %1694 = vmatpush1.bf16.msra.mxu1 %v5385_v45  ;;  %1654 = vmatprep.subr.bf16.mxu0 %v5387_v47  ;;  %v5479_v45 = vld [vmem:[#allocation5 + $0x224] ss:$24 sps:$4 sm:$0xff]  }
  0xda   :  { %1695 = vmatprep.subr.bf16.mxu1 %v5389_v14  ;;  %v5475_v14 = vld [vmem:[#allocation5 + $0x1f0] ss:$24 sps:$4 sm:$0xff]   ;;  %7090 = vst [vmem:[#allocation36_spill] sm:$0xff] %v5479_v45 }
  0xdb   :  { %943 = vmatmul.mubr.bf16.gmra.mrb[24].mxu0 %v5254_v25  ;;  %v5435_v25 = vld [vmem:[#allocation5 + $0x158] ss:$24 sps:$4 sm:$0xff]   ;;  %7089 = vst [vmem:[#allocation35_spill] sm:$0xff] %v5475_v14 }
  0xdc   :  { %1655 = vmatpush1.bf16.msra.mxu0 %v5396_v49  ;;  %952 = vmatprep.mubr.bf16.mxu0 %v5269_v31  ;;  %v5448_v31 = vld [vmem:[#allocation5 + $0x188] ss:$24 sps:$4 sm:$0xff]  }
  0xdd   :  { %1696 = vmatpush1.bf16.msra.mxu1 %v5398_v51  ;;  %1656 = vmatprep.subr.bf16.mxu0 %v5401_v53  ;;  %v5467_v51 = vld [vmem:[#allocation5 + $0x1f4] ss:$24 sps:$4 sm:$0xff]  }
  0xde   :  { %1697 = vmatprep.subr.bf16.mxu1 %v5403_v55  ;;  %v5455_v55 = vld [vmem:[#allocation5 + $0x1c4] ss:$24 sps:$4 sm:$0xff]   ;;  %7088 = vst [vmem:[#allocation34_spill] sm:$0xff] %v5467_v51 }
  0xdf   :  { %7086 = vst [vmem:[#allocation32_spill] sm:$0xff] %v5455_v55 }
  0xe0   :  { %1657 = vmatpush1.bf16.msra.mxu0 %v5409_v15 }
  0xe1   :  { %1698 = vmatpush1.bf16.msra.mxu1 %v5411_v57  ;;  %1658 = vmatprep.subr.bf16.mxu0 %v5413_v59  ;;  %v5453_v57 = vld [vmem:[#allocation5 + $0x1bc] ss:$24 sps:$4 sm:$0xff]  }
  0xe2   :  { %1699 = vmatprep.subr.bf16.mxu1 %v5415_v61  ;;  %v7085_v61 = vmov 0  }
  0xe3   :  { %953 = vmatmul.mubr.bf16.gmra.mrb[28].mxu0 %v5281_v35  ;;  %v5461_v35 = vld [vmem:[#allocation5 + $0x1b8] ss:$24 sps:$4 sm:$0xff]  }
  0xe4   :  { %1659 = vmatpush1.bf16.msra.mxu0 %v5422_v22  ;;  %1678 = vmatprep.mubr.bf16.mxu0 %v7085_v61 }
  0xe5   :  { %1700 = vmatpush1.bf16.msra.mxu1 %v5424_v63  ;;  %1660 = vmatprep.subr.bf16.mxu0 %v5427_v1  ;;  %v5465_v63 = vld [vmem:[#allocation5 + $0x1ec] ss:$24 sps:$4 sm:$0xff]  }
  0xe6   :  { %1701 = vmatprep.subr.bf16.mxu1 %v5429_v4  ;;  %v5463_v4 = vld [vmem:[#allocation5 + $0x1c0] ss:$24 sps:$4 sm:$0xff]  }
  0xe7   :  { %7087 = vst [vmem:[#allocation33_spill] sm:$0xff] %v5463_v4 }
  0xe8   :  { %1661 = vmatpush1.bf16.msra.mxu0 %v5435_v25 }
  0xe9   :  { %1702 = vmatpush1.bf16.msra.mxu1 %v5437_v6  ;;  %1662 = vmatprep.subr.bf16.mxu0 %v5439_v8  ;;  %v5473_v6 = vld [vmem:[#allocation5 + $0x1e8] ss:$24 sps:$4 sm:$0xff]  }
  0xea   :  { %1703 = vmatprep.subr.bf16.mxu1 %v5441_v18  ;;  %v5477_v18 = vld [vmem:[#allocation5 + $0x21c] ss:$24 sps:$4 sm:$0xff]  }
  0xec   :  { %1663 = vmatpush1.bf16.msra.mxu0 %v5448_v31 }
  0xed   :  { %1704 = vmatpush1.bf16.msra.mxu1 %v5450_v42  ;;  %1664 = vmatprep.subr.bf16.mxu0 %v5453_v57  ;;  %v5485_v42 = vld [vmem:[#allocation5 + $0x218] ss:$24 sps:$4 sm:$0xff]  }
  0xee   :  { %1705 = vmatprep.subr.bf16.mxu1 %v5455_v55  ;;  %v5489_v55 = vld [vmem:[#allocation5 + $0x24c] ss:$24 sps:$4 sm:$0xff]  }
  0xf0   :  { %1665 = vmatpush1.bf16.msra.mxu0 %v5461_v35 }
  0xf1   :  { %1706 = vmatpush1.bf16.msra.mxu1 %v5463_v4  ;;  %1666 = vmatprep.subr.bf16.mxu0 %v5465_v63  ;;  %v5501_v4 = vld [vmem:[#allocation5 + $0x250] ss:$24 sps:$4 sm:$0xff]  }
  0xf2   :  { %1707 = vmatprep.subr.bf16.mxu1 %v5467_v51  ;;  %v5499_v51 = vld [vmem:[#allocation5 + $0x248] ss:$24 sps:$4 sm:$0xff]   ;;  %7093 = vst [vmem:[#allocation39_spill] sm:$0xff] %v5501_v4 }
  0xf4   :  { %1667 = vmatpush1.bf16.msra.mxu0 %v5473_v6 }
  0xf5   :  { %1708 = vmatpush1.bf16.msra.mxu1 %v5475_v14  ;;  %1668 = vmatprep.subr.bf16.mxu0 %v5477_v18  ;;  %v5513_v14 = vld [vmem:[#allocation5 + $0x280] ss:$24 sps:$4 sm:$0xff]  }
  0xf6   :  { %1709 = vmatprep.subr.bf16.mxu1 %v5479_v45  ;;  %v5511_v45 = vld [vmem:[#allocation5 + $0x278] ss:$24 sps:$4 sm:$0xff]   ;;  %7095 = vst [vmem:[#allocation41_spill] sm:$0xff] %v5513_v14 }
  0xf8   :  { %1669 = vmatpush1.bf16.msra.mxu0 %v5485_v42 }
  0xf9   :  { %1710 = vmatpush1.bf16.msra.mxu1 %v5487_v40  ;;  %1670 = vmatprep.subr.bf16.mxu0 %v5489_v55  ;;  %v5517_v40 = vld [vmem:[#allocation5 + $0x2ac] ss:$24 sps:$4 sm:$0xff]  }
  0xfa   :  { %1711 = vmatprep.subr.bf16.mxu1 %v5491_v3  ;;  %v5523_v3 = vld [vmem:[#allocation5 + $0x2a8] ss:$24 sps:$4 sm:$0xff]  }
  0xfc   :  { %1671 = vmatpush1.bf16.msra.mxu0 %v5499_v51 }
  0xfd   :  { %1712 = vmatpush1.bf16.msra.mxu1 %v5501_v4  ;;  %1672 = vmatprep.subr.bf16.mxu0 %v5505_v33  ;;  %v5529_v4 = vld [vmem:[#allocation5 + $0x2dc] ss:$24 sps:$4 sm:$0xff]  }
  0xfe   :  { %1713 = vmatprep.subr.bf16.mxu1 %v5507_v28  ;;  %v5535_v28 = vld [vmem:[#allocation5 + $0x2d8] ss:$24 sps:$4 sm:$0xff]  }
 0x100   :  { %1673 = vmatpush1.bf16.msra.mxu0 %v5511_v45 }
 0x101   :  { %1714 = vmatpush1.bf16.msra.mxu1 %v5513_v14  ;;  %1674 = vmatprep.subr.bf16.mxu0 %v5517_v40 }
 0x102   :  { %1715 = vmatprep.subr.bf16.mxu1 %v5519_v23  ;;  %v5543_v23 = vld [vmem:[#allocation5 + $0x4] ss:$24 sps:$4 sm:$0xff]  }
 0x104   :  { %1675 = vmatpush1.bf16.msra.mxu0 %v5523_v3 }
 0x105   :  { %1716 = vmatpush1.bf16.msra.mxu1 %v5525_v12  ;;  %1676 = vmatprep.subr.bf16.mxu0 %v5529_v4  ;;  %v5549_v12 = vld [vmem:[#allocation5] ss:$24 sps:$4 sm:$0xff]  }
 0x106   :  { %1717 = vmatprep.subr.bf16.mxu1 %v5531_v9  ;;  %v5553_v9 = vld [vmem:[#allocation5 + $0x34] ss:$24 sps:$4 sm:$0xff]  }
 0x108   :  { %1677 = vmatpush1.bf16.msra.mxu0 %v5535_v28 }
 0x109   :  { %1718 = vmatpush1.bf16.msra.mxu1 %v5537_v7  ;;  %1778 = vmatprep.subr.bf16.mxu0 %v5543_v23  ;;  %v5557_v7 = vld [vmem:[#allocation5 + $0x30] ss:$24 sps:$4 sm:$0xff]  }
 0x10a   :  { %1819 = vmatprep.subr.bf16.mxu1 %v5342_v10 }
 0x10b   :  { %1679 = vmatmul.mubr.bf16.vlgmr.msra.gmra.mrb[32].mxu0 %v7085_v61 }
 0x10c   :  { %1720 = vmatmul.mubr.bf16.vlgmr.msra.gmra.mrb[20].mxu1 %v7085_v61  ;;  %1779 = vmatpush1.bf16.msra.mxu0 %v5549_v12 }
 0x10d   :  { %1820 = vmatpush1.bf16.msra.mxu1 %v5347_v16  ;;  %1780 = vmatprep.subr.bf16.mxu0 %v5553_v9 }
 0x10e   :  { %1821 = vmatprep.subr.bf16.mxu1 %v5350_v20 }
 0x110   :  { %1781 = vmatpush1.bf16.msra.mxu0 %v5557_v7 }
 0x111   :  { %1822 = vmatpush1.bf16.msra.mxu1 %v5359_v26  ;;  %1782 = vmatprep.subr.bf16.mxu0 %v5216_v11  ;;  %v7100_v11 = vld [vmem:[#allocation13_spill] sm:$0xff] }
 0x112   :  { %1823 = vmatprep.subr.bf16.mxu1 %v5365_v30 }
 0x114   :  { %1783 = vmatpush1.bf16.msra.mxu0 %v5218_v13  ;;  %v7101_v13 = vld [vmem:[#allocation14_spill] sm:$0xff] }
 0x115   :  { %1824 = vmatpush1.bf16.msra.mxu1 %v5369_v36  ;;  %1784 = vmatprep.subr.bf16.mxu0 %v5231_v17  ;;  %v7102_v17 = vld [vmem:[#allocation15_spill] sm:$0xff] }
 0x116   :  { %1825 = vmatprep.subr.bf16.mxu1 %v5375_v38 }
 0x118   :  { %1785 = vmatpush1.bf16.msra.mxu0 %v5235_v19  ;;  %v194_v19 = vlaneseq }
 0x119   :  { %1826 = vmatpush1.bf16.msra.mxu1 %v5383_v43  ;;  %1786 = vmatprep.subr.bf16.mxu0 %v5240_v21 }
 0x11a   :  { %1827 = vmatprep.subr.bf16.mxu1 %v5387_v47  ;;  %v5619_v21 = vshrl.u32 %v194_v19, 7 }
 0x11c   :  { %1787 = vmatpush1.bf16.msra.mxu0 %v5248_v24  ;;  %7103 = vst [vmem:[#allocation13_spill] sm:$0xff] %v5619_v21  ;;  %v5622_v24 = vsub.s32 0, %v5619_v21 }
 0x11d   :  { %1828 = vmatpush1.bf16.msra.mxu1 %v5396_v49  ;;  %1788 = vmatprep.subr.bf16.mxu0 %v5259_v27  ;;  %v6928_v27 = vsub.s32 2, %v5619_v21 }
 0x11e   :  { %1829 = vmatprep.subr.bf16.mxu1 %v5401_v53  ;;  %7104 = vst [vmem:[#allocation14_spill] sm:$0xff] %v5622_v24 }
 0x120   :  { %1789 = vmatpush1.bf16.msra.mxu0 %v5261_v29  ;;  %v5628_v29 = vld [vmem:[%s6879_s3] sm:$0x3f] }
 0x121   :  { %1830 = vmatpush1.bf16.msra.mxu1 %v5409_v15  ;;  %1790 = vmatprep.subr.bf16.mxu0 %v5272_v32  ;;  %v6929_v32 = vsub.s32 3, %v5619_v21 }
 0x122   :  { %1831 = vmatprep.subr.bf16.mxu1 %v5413_v59 }
 0x124   :  { %1791 = vmatpush1.bf16.msra.mxu0 %v5276_v34  ;;  %v5632_v34 = vsub.s32 1, %v5619_v21 }
 0x125   :  { %1832 = vmatpush1.bf16.msra.mxu1 %v5422_v22  ;;  %1792 = vmatprep.subr.bf16.mxu0 %v5285_v37  ;;  %v5636_v37 = vrot.slane %v5628_v29, %v5622_v24 }
 0x126   :  { %1833 = vmatprep.subr.bf16.mxu1 %v5427_v1  ;;  %7105 = vst [vmem:[#allocation15_spill] sm:$0xff] %v5632_v34 }
 0x128   :  { %1793 = vmatpush1.bf16.msra.mxu0 %v5290_v39  ;;  %v5641_v39 = vrot.slane %v5628_v29, %v6928_v27 }
 0x129   :  { %1834 = vmatpush1.bf16.msra.mxu1 %v5435_v25  ;;  %1794 = vmatprep.subr.bf16.mxu0 %v5293_v41 }
 0x12a   :  { %1835 = vmatprep.subr.bf16.mxu1 %v5439_v8 }
 0x12c   :  { %1795 = vmatpush1.bf16.msra.mxu0 %v5297_v44 }
 0x12d   :  { %1836 = vmatpush1.bf16.msra.mxu1 %v5448_v31  ;;  %1796 = vmatprep.subr.bf16.mxu0 %v5301_v46  ;;  %v5650_v46 = vrot.slane %v5628_v29, %v6929_v32 }
 0x12e   :  { %1837 = vmatprep.subr.bf16.mxu1 %v5453_v57 }
 0x130   :  { %1797 = vmatpush1.bf16.msra.mxu0 %v5304_v48 }
 0x131   :  { %1838 = vmatpush1.bf16.msra.mxu1 %v5461_v35  ;;  %1798 = vmatprep.subr.bf16.mxu0 %v5307_v50 }
 0x132   :  { %1839 = vmatprep.subr.bf16.mxu1 %v5465_v63 }
 0x134   :  { %1799 = vmatpush1.bf16.msra.mxu0 %v5309_v52  ;;  %v201_v52 = vrot.slane %v5628_v29, %v5632_v34 }
 0x135   :  { %1840 = vmatpush1.bf16.msra.mxu1 %v5473_v6  ;;  %1800 = vmatprep.subr.bf16.mxu0 %v5313_v54 }
 0x136   :  { %1841 = vmatprep.subr.bf16.mxu1 %v5477_v18 }
 0x138   :  { %1801 = vmatpush1.bf16.msra.mxu0 %v5316_v56 }
 0x139   :  { %1842 = vmatpush1.bf16.msra.mxu1 %v5485_v42  ;;  %1802 = vmatprep.subr.bf16.mxu0 %v5319_v58 }
 0x13a   :  { %1843 = vmatprep.subr.bf16.mxu1 %v5489_v55 }
 0x13c   :  { %1803 = vmatpush1.bf16.msra.mxu0 %v5321_v60 }
 0x13d   :  { %1844 = vmatpush1.bf16.msra.mxu1 %v5499_v51  ;;  %1804 = vmatprep.subr.bf16.mxu0 %v5325_v62 }
 0x13e   :  { %1845 = vmatprep.subr.bf16.mxu1 %v5505_v33 }
 0x140   :  { %1805 = vmatpush1.bf16.msra.mxu0 %v5328_v0 }
 0x141   :  { %1846 = vmatpush1.bf16.msra.mxu1 %v5511_v45  ;;  %1806 = vmatprep.subr.bf16.mxu0 %v5331_v2 }
 0x142   :  { %1847 = vmatprep.subr.bf16.mxu1 %v5517_v40 }
 0x144   :  { %1807 = vmatpush1.bf16.msra.mxu0 %v5333_v5 }
 0x145   :  { %1848 = vmatpush1.bf16.msra.mxu1 %v5523_v3  ;;  %1808 = vmatprep.subr.bf16.mxu0 %v7100_v11 }
 0x146   :  { %1849 = vmatprep.subr.bf16.mxu1 %v5529_v4 }
 0x148   :  { %1809 = vmatpush1.bf16.msra.mxu0 %v7101_v13 }
 0x149   :  { %1850 = vmatpush1.bf16.msra.mxu1 %v5535_v28  ;;  %1860 = vmatprep.subr.bf16.mxu0 %v7102_v17 }
 0x14a   :  { %1951 = vmatprep.subr.bf16.mxu1 %v5543_v23 }
 0x15e   :  { %v5643_v41 = vpop.f32.mrb[0].mxu0 }
 0x15f   :  { %v5645_v44 = vpop.f32.mrb[0].mxu1  ;;  %v5652_v48 = vpop.f32.mrb[1].mxu0 }
 0x160   :  { %v5654_v50 = vpop.f32.mrb[1].mxu1  ;;  %v782_v54 = vpop.f32.mrb[2].mxu0 }
 0x161   :  { %v855_v56 = vpop.f32.mrb[2].mxu1  ;;  %v5659_v58 = vadd.f32 %v782_v54, %v5636_v37  ;;  %v784_v60 = vpop.f32.mrb[3].mxu0 }
 0x162   :  { %v5662_v62 = vadd.f32 %v855_v56, %v5641_v39  ;;  %v857_v0 = vpop.f32.mrb[3].mxu1  ;;  %v5664_v2 = vadd.f32 %v784_v60, %v201_v52 }
 0x163   :  { %v5667_v5 = vadd.f32 %v857_v0, %v5650_v46 }
 0x166   :  { %v788_v10 = vpop.f32.mrb[4].mxu0 }
 0x167   :  { %v861_v16 = vpop.f32.mrb[4].mxu1  ;;  %v5670_v20 = vadd.f32 %v788_v10, %v5636_v37  ;;  %v790_v26 = vpop.f32.mrb[5].mxu0 }
 0x168   :  { %v5673_v30 = vadd.f32 %v861_v16, %v5641_v39  ;;  %v863_v36 = vpop.f32.mrb[5].mxu1  ;;  %v5675_v38 = vadd.f32 %v790_v26, %v201_v52  ;;  %v792_v43 = vpop.f32.mrb[6].mxu0 }
 0x169   :  { %7106 = vst [vmem:[#allocation46_spill] sm:$0xff] %v5670_v20  ;;  %v5678_v47 = vadd.f32 %v863_v36, %v5650_v46  ;;  %v865_v49 = vpop.f32.mrb[6].mxu1  ;;  %v5681_v53 = vadd.f32 %v792_v43, %v5636_v37  ;;  %v794_v61 = vpop.f32.mrb[7].mxu0  ;;  %v5917_v20 = vld [vmem:[#allocation5 + $0x240] ss:$24 sps:$4 sm:$0xff]  }
 0x16a   :  { %7107 = vst [vmem:[#allocation47_spill] sm:$0xff] %v5673_v30  ;;  %7108 = vst [vmem:[#allocation48_spill] sm:$0xff] %v5675_v38  ;;  %v5684_v11 = vadd.f32 %v865_v49, %v5641_v39  ;;  %v867_v13 = vpop.f32.mrb[7].mxu1  ;;  %v5686_v17 = vadd.f32 %v794_v61, %v201_v52  ;;  %v5909_v38 = vld [vmem:[#allocation5 + $0x210] ss:$24 sps:$4 sm:$0xff]  }
 0x16b   :  { %7109 = vst [vmem:[#allocation49_spill] sm:$0xff] %v5678_v47  ;;  %7110 = vst [vmem:[#allocation50_spill] sm:$0xff] %v5681_v53  ;;  %v5689_v19 = vadd.f32 %v867_v13, %v5650_v46  ;;  %v5904_v47 = vld [vmem:[#allocation5 + $0x214] ss:$24 sps:$4 sm:$0xff]   ;;  %v5912_v30 = vld [vmem:[#allocation5 + $0x244] ss:$24 sps:$4 sm:$0xff]  }
 0x16c   :  { %7111 = vst [vmem:[#allocation51_spill] sm:$0xff] %v5684_v11  ;;  %7112 = vst [vmem:[#allocation52_spill] sm:$0xff] %v5686_v17 }
 0x16d   :  { %7113 = vst [vmem:[#allocation53_spill] sm:$0xff] %v5689_v19 }
 0x16e   :  { %v798_v54 = vpop.f32.mrb[8].mxu0 }
 0x16f   :  { %v871_v56 = vpop.f32.mrb[8].mxu1  ;;  %v5692_v60 = vadd.f32 %v798_v54, %v5636_v37  ;;  %v800_v0 = vpop.f32.mrb[9].mxu0 }
 0x170   :  { %v5695_v10 = vadd.f32 %v871_v56, %v5641_v39  ;;  %v873_v16 = vpop.f32.mrb[9].mxu1  ;;  %v5697_v26 = vadd.f32 %v800_v0, %v201_v52  ;;  %v802_v36 = vpop.f32.mrb[10].mxu0 }
 0x171   :  { %7114 = vst [vmem:[#allocation54_spill] sm:$0xff] %v5692_v60  ;;  %v5700_v43 = vadd.f32 %v873_v16, %v5650_v46  ;;  %v875_v49 = vpop.f32.mrb[10].mxu1  ;;  %v5703_v61 = vadd.f32 %v802_v36, %v5636_v37  ;;  %v804_v13 = vpop.f32.mrb[11].mxu0 }
 0x172   :  { %7115 = vst [vmem:[#allocation55_spill] sm:$0xff] %v5695_v10  ;;  %7116 = vst [vmem:[#allocation56_spill] sm:$0xff] %v5697_v26  ;;  %v5706_v27 = vadd.f32 %v875_v49, %v5641_v39  ;;  %v877_v54 = vpop.f32.mrb[11].mxu1  ;;  %v5708_v32 = vadd.f32 %v804_v13, %v201_v52 }
 0x173   :  { %7117 = vst [vmem:[#allocation57_spill] sm:$0xff] %v5700_v43  ;;  %7118 = vst [vmem:[#allocation58_spill] sm:$0xff] %v5703_v61  ;;  %v5711_v56 = vadd.f32 %v877_v54, %v5650_v46 }
 0x174   :  { %7119 = vst [vmem:[#allocation59_spill] sm:$0xff] %v5706_v27  ;;  %7120 = vst [vmem:[#allocation60_spill] sm:$0xff] %v5708_v32 }
 0x175   :  { %7121 = vst [vmem:[#allocation61_spill] sm:$0xff] %v5711_v56 }
 0x176   :  { %v808_v0 = vpop.f32.mrb[12].mxu0 }
 0x177   :  { %v881_v26 = vpop.f32.mrb[12].mxu1  ;;  %v5714_v10 = vadd.f32 %v808_v0, %v5636_v37  ;;  %v810_v16 = vpop.f32.mrb[13].mxu0 }
 0x178   :  { %v5717_v43 = vadd.f32 %v881_v26, %v5641_v39  ;;  %v883_v36 = vpop.f32.mrb[13].mxu1  ;;  %v5719_v61 = vadd.f32 %v810_v16, %v201_v52  ;;  %v812_v49 = vpop.f32.mrb[14].mxu0  ;;  %v212_v16 = vsub.s32 4, %v5619_v21 }
 0x179   :  { %7122 = vst [vmem:[#allocation62_spill] sm:$0xff] %v5714_v10  ;;  %v5722_v27 = vadd.f32 %v883_v36, %v5650_v46  ;;  %v885_v13 = vpop.f32.mrb[14].mxu1  ;;  %v5725_v54 = vadd.f32 %v812_v49, %v5636_v37  ;;  %v814_v56 = vpop.f32.mrb[15].mxu0  ;;  %v779_v36 = vadd.f32 %v5643_v41, %v5636_v37 }
 0x17a   :  { %7123 = vst [vmem:[#allocation63_spill] sm:$0xff] %v5717_v43  ;;  %7124 = vst [vmem:[#allocation64_spill] sm:$0xff] %v5719_v61  ;;  %v5728_v32 = vadd.f32 %v885_v13, %v5641_v39  ;;  %v887_v0 = vpop.f32.mrb[15].mxu1  ;;  %v5730_v10 = vadd.f32 %v814_v56, %v201_v52  ;;  %v216_v61 = vsub.s32 5, %v5619_v21  ;;  %v5740_v49 = vrot.slane %v5628_v29, %v212_v16 }
 0x17b   :  { %7125 = vst [vmem:[#allocation65_spill] sm:$0xff] %v5722_v27  ;;  %7126 = vst [vmem:[#allocation66_spill] sm:$0xff] %v5725_v54  ;;  %v5733_v26 = vadd.f32 %v887_v0, %v5650_v46  ;;  %v781_v54 = vadd.f32 %v5652_v48, %v201_v52 }
 0x17c   :  { %7127 = vst [vmem:[#allocation67_spill] sm:$0xff] %v5728_v32  ;;  %7128 = vst [vmem:[#allocation68_spill] sm:$0xff] %v5730_v10 }
 0x17d   :  { %7129 = vst [vmem:[#allocation69_spill] sm:$0xff] %v5733_v26  ;;  %v5748_v26 = vrot.slane %v5628_v29, %v216_v61 }
 0x19e   :  { %v5743_v13 = vpop.f32.mrb[16].mxu0 }
 0x19f   :  { %v1639_v32 = vpop.f32.mrb[16].mxu1  ;;  %v5745_v10 = vpop.f32.mrb[17].mxu0 }
 0x1a0   :  { %v1728_v56 = vadd.f32 %v1639_v32, %v779_v36  ;;  %v1641_v0 = vpop.f32.mrb[17].mxu1  ;;  %v928_v21 = vpop.f32.mrb[18].mxu0 }
 0x1a1   :  { %v1729_v27 = vadd.f32 %v1641_v0, %v781_v54  ;;  %v1643_v43 = vpop.f32.mrb[18].mxu1  ;;  %v5751_v37 = vadd.f32 %v928_v21, %v5740_v49  ;;  %v930_v41 = vpop.f32.mrb[19].mxu0 }
 0x1a2   :  { %v1644_v16 = vpop.f32.mrb[19].mxu1  ;;  %v5754_v48 = vadd.f32 %v930_v41, %v5748_v26 }
 0x1a3   :  { %v4031_v17 = vmul.f32 -1.442695, %v1729_v27  ;;  %v852_v27 = vadd.f32 %v5645_v44, %v5641_v39  ;;  %v925_v39 = vadd.f32 %v5743_v13, %v5740_v49 }
 0x1a6   :  { %v934_v52 = vpop.f32.mrb[20].mxu0 }
 0x1a7   :  { %v5757_v32 = vadd.f32 %v934_v52, %v5740_v49  ;;  %v936_v36 = vpop.f32.mrb[21].mxu0 }
 0x1a8   :  { %v5760_v60 = vadd.f32 %v936_v36, %v5748_v26  ;;  %v938_v29 = vpop.f32.mrb[22].mxu0 }
 0x1a9   :  { %7130 = vst [vmem:[#allocation70_spill] sm:$0xff] %v5757_v32  ;;  %v5763_v61 = vadd.f32 %v938_v29, %v5740_v49  ;;  %v940_v43 = vpop.f32.mrb[23].mxu0  ;;  %v5901_v32 = vld [vmem:[#allocation5 + $0x1e0] ss:$24 sps:$4 sm:$0xff]  }
 0x1aa   :  { %7131 = vst [vmem:[#allocation71_spill] sm:$0xff] %v5760_v60  ;;  %v5766_v21 = vadd.f32 %v940_v43, %v5748_v26  ;;  %v5896_v60 = vld [vmem:[#allocation5 + $0x1e4] ss:$24 sps:$4 sm:$0xff]  }
 0x1ab   :  { %7132 = vst [vmem:[#allocation72_spill] sm:$0xff] %v5763_v61 }
 0x1ac   :  { %7133 = vst [vmem:[#allocation73_spill] sm:$0xff] %v5766_v21 }
 0x1ae   :  { %v944_v54 = vpop.f32.mrb[24].mxu0 }
 0x1af   :  { %v5769_v0 = vadd.f32 %v944_v54, %v5740_v49  ;;  %v946_v41 = vpop.f32.mrb[25].mxu0 }
 0x1b0   :  { %v5772_v16 = vadd.f32 %v946_v41, %v5748_v26  ;;  %v948_v52 = vpop.f32.mrb[26].mxu0 }
 0x1b1   :  { %7134 = vst [vmem:[#allocation74_spill] sm:$0xff] %v5769_v0  ;;  %v5775_v36 = vadd.f32 %v948_v52, %v5740_v49  ;;  %v950_v19 = vpop.f32.mrb[27].mxu0 }
 0x1b2   :  { %7135 = vst [vmem:[#allocation75_spill] sm:$0xff] %v5772_v16  ;;  %v5778_v29 = vadd.f32 %v950_v19, %v5748_v26 }
 0x1b3   :  { %7136 = vst [vmem:[#allocation76_spill] sm:$0xff] %v5775_v36  ;;  %v4030_v36 = vmul.f32 -1.442695, %v1728_v56 }
 0x1b4   :  { %7137 = vst [vmem:[#allocation77_spill] sm:$0xff] %v5778_v29 }
 0x1b5   :  { %4642 = vpow2.f32 %v4030_v36 }
 0x1b6   :  { %v954_v61 = vpop.f32.mrb[28].mxu0  ;;  %4644 = vpow2.f32 %v4031_v17  ;;  %v854_v17 = vadd.f32 %v5654_v50, %v5650_v46 }
 0x1b7   :  { %v5781_v43 = vadd.f32 %v954_v61, %v5740_v49  ;;  %v956_v21 = vpop.f32.mrb[29].mxu0 }
 0x1b8   :  { %v5784_v54 = vadd.f32 %v956_v21, %v5748_v26  ;;  %v958_v0 = vpop.f32.mrb[30].mxu0  ;;  %v1107_v21 = vld [vmem:[%s6880_s4] sm:$0x3] }
 0x1b9   :  { %7138 = vst [vmem:[#allocation78_spill] sm:$0xff] %v5781_v43  ;;  %v5787_v41 = vadd.f32 %v958_v0, %v5740_v49  ;;  %v960_v16 = vpop.f32.mrb[31].mxu0  ;;  %v5796_v0 = vrot.slane %v1107_v21, %v5622_v24 }
 0x1ba   :  { %7139 = vst [vmem:[#allocation79_spill] sm:$0xff] %v5784_v54  ;;  %v5790_v52 = vadd.f32 %v960_v16, %v5748_v26  ;;  %v5799_v16 = vrot.slane %v1107_v21, %v5632_v34 }
 0x1bb   :  { %7140 = vst [vmem:[#allocation80_spill] sm:$0xff] %v5787_v41 }
 0x1bc   :  { %7141 = vst [vmem:[#allocation81_spill] sm:$0xff] %v5790_v52 }
 0x1bf   :  { %v4643_v19 = vpop.eup %4642 }
 0x1c0   :  { %v4645_v29 = vpop.eup %4644  ;;  %v1736_v61 = vadd.f32 1.0, %v4643_v19 }
 0x1c1   :  { %v1737_v43 = vadd.f32 1.0, %v4645_v29 }
 0x1c2   :  { %4646 = vrcp.f32 %v1736_v61 }
 0x1c3   :  { %4648 = vrcp.f32 %v1737_v43 }
 0x1cc   :  { %v4647_v52 = vpop.eup %4646 }
 0x1cd   :  { %v4649_v34 = vpop.eup %4648 }
 0x1de   :  { %v1680_v56 = vpop.f32.mrb[32].mxu0 }
 0x1df   :  { %v1721_v36 = vpop.f32.mrb[20].mxu1  ;;  %v1742_v29 = vadd.f32 %v1680_v56, %v852_v27  ;;  %v1682_v19 = vpop.f32.mrb[33].mxu0  ;;  %v927_v27 = vadd.f32 %v5745_v10, %v5748_v26 }
 0x1e0   :  { %v1756_v43 = vadd.f32 %v1721_v36, %v5796_v0  ;;  %v1723_v61 = vpop.f32.mrb[21].mxu1  ;;  %v1743_v41 = vadd.f32 %v1682_v19, %v854_v17  ;;  %v1684_v54 = vpop.f32.mrb[34].mxu0 }
 0x1e1   :  { %v1757_v24 = vadd.f32 %v1723_v61, %v5799_v16  ;;  %v1725_v21 = vpop.f32.mrb[22].mxu1  ;;  %v4032_v44 = vmul.f32 -1.442695, %v1742_v29  ;;  %v1685_v46 = vpop.f32.mrb[35].mxu0 }
 0x1e2   :  { %v1758_v11 = vmul.f32 %v4647_v52, %v1756_v43  ;;  %v1726_v50 = vpop.f32.mrb[23].mxu1  ;;  %v4033_v56 = vmul.f32 -1.442695, %v1743_v41  ;;  %v7143_v46 = vld [vmem:[#allocation17_spill] sm:$0xff] }
 0x1e3   :  { %v1759_v36 = vmul.f32 %v4649_v34, %v1757_v24  ;;  %4650 = vpow2.f32 %v4032_v44  ;;  %v7142_v44 = vld [vmem:[#allocation16_spill] sm:$0xff]  ;;  %v7144_v50 = vld [vmem:[#allocation18_spill] sm:$0xff]  ;;  %7164 = vst [vmem:[#allocation17_spill] sm:$0xff] %v5901_v32 }
 0x1e4   :  { %v1760_v53 = vadd.f32 %v1758_v11, %v925_v39  ;;  %4652 = vpow2.f32 %v4033_v56  ;;  %v5823_v39 = vld [vmem:[#allocation5 + $0x10] ss:$24 sps:$4 sm:$0xff]   ;;  %7161 = vst [vmem:[#allocation16_spill] sm:$0xff] %v5896_v60  ;;  %7165 = vst [vmem:[#allocation18_spill] sm:$0xff] %v5904_v47 }
 0x1e5   :  { %v1761_v17 = vadd.f32 %v1759_v36, %v927_v27  ;;  %v5832_v27 = vld [vmem:[#allocation5 + $0x64] ss:$24 sps:$4 sm:$0xff]   ;;  %v7145_v56 = vld [vmem:[#allocation19_spill] sm:$0xff] }
 0x1e6   :  { %4654 = vtanh.f32 %v1760_v53  ;;  %v7146_v36 = vld [vmem:[#allocation20_spill] sm:$0xff]  ;;  %7168 = vst [vmem:[#allocation19_spill] sm:$0xff] %v5909_v38 }
 0x1e7   :  { %4656 = vtanh.f32 %v1761_v17  ;;  %v5837_v17 = vld [vmem:[#allocation5 + $0x60] ss:$24 sps:$4 sm:$0xff]   ;;  %7169 = vst [vmem:[#allocation20_spill] sm:$0xff] %v5912_v30 }
 0x1ed   :  { %v4651_v54 = vpop.eup %4650 }
 0x1ee   :  { %v4653_v19 = vpop.eup %4652  ;;  %v1750_v61 = vadd.f32 1.0, %v4651_v54  ;;  %v5840_v54 = vld [vmem:[#allocation5 + $0x94] ss:$24 sps:$4 sm:$0xff]  }
 0x1ef   :  { %v1751_v21 = vadd.f32 1.0, %v4653_v19  ;;  %v7147_v19 = vld [vmem:[#allocation21_spill] sm:$0xff] }
 0x1f0   :  { %4658 = vrcp.f32 %v1750_v61  ;;  %v4655_v49 = vpop.eup %4654  ;;  %v7148_v61 = vld [vmem:[#allocation22_spill] sm:$0xff]  ;;  %7172 = vst [vmem:[#allocation21_spill] sm:$0xff] %v5917_v20 }
 0x1f1   :  { %4660 = vrcp.f32 %v1751_v21  ;;  %v4657_v13 = vpop.eup %4656  ;;  %v1764_v52 = vsub.f32 0.0, %v4655_v49  ;;  %v5845_v21 = vld [vmem:[#allocation5 + $0x90] ss:$24 sps:$4 sm:$0xff]  }
 0x1f2   :  { %v1765_v43 = vsub.f32 0.0, %v4657_v13 }
 0x1fa   :  { %v4659_v29 = vpop.eup %4658 }
 0x1fb   :  { %v4661_v10 = vpop.eup %4660  ;;  %v1766_v26 = vmul.f32 %v4659_v29, %v1764_v52  ;;  %v7150_v52 = vld [vmem:[#allocation24_spill] sm:$0xff] }
 0x1fc   :  { %v1767_v24 = vmul.f32 %v4661_v10, %v1765_v43  ;;  %v5853_v29 = vld [vmem:[#allocation5 + $0xc0] ss:$24 sps:$4 sm:$0xff]   ;;  %v5856_v43 = vld [vmem:[#allocation5 + $0xf4] ss:$24 sps:$4 sm:$0xff]  }
 0x1fd   :  { %v5811_v34 = vadd.f32 %v4655_v49, %v1766_v26  ;;  %v5848_v49 = vld [vmem:[#allocation5 + $0xc4] ss:$24 sps:$4 sm:$0xff]   ;;  %v7152_v26 = vld [vmem:[#allocation26_spill] sm:$0xff] }
 0x1fe   :  { %v5813_v11 = vadd.f32 %v4657_v13, %v1767_v24  ;;  %v7149_v13 = vld [vmem:[#allocation23_spill] sm:$0xff]  ;;  %v7151_v10 = vld [vmem:[#allocation25_spill] sm:$0xff] }
 0x1ff   :  { %v5819_v41 = vpack.c.bf16 %v5811_v34, %v5811_v34  ;;  %v5861_v24 = vld [vmem:[#allocation5 + $0xf0] ss:$24 sps:$4 sm:$0xff]  }
 0x200   :  { %v1777_v53 = vpack.c.bf16 %v5813_v11, %v5813_v11 }
 0x202   :  { %1810 = vmatprep.mubr.bf16.mxu0 %v1777_v53  ;;  %1851 = vmatprep.mubr.bf16.mxu1 %v1777_v53 }
 0x203   :  { %1811 = vmatmul.mubr.bf16.vlgmr.msra.gmra.mrb[36].mxu0 %v5819_v41  ;;  %1852 = vmatmul.mubr.bf16.vlgmr.msra.gmra.mrb[24].mxu1 %v5819_v41 }
 0x204   :  { %1861 = vmatpush1.bf16.msra.mxu0 %v5823_v39  ;;  %1892 = vmatprep.mubr.bf16.mxu0 %v1777_v53  ;;  %v5864_v53 = vld [vmem:[#allocation5 + $0x124] ss:$24 sps:$4 sm:$0xff]  }
 0x205   :  { %1862 = vmatprep.subr.bf16.mxu0 %v7142_v44  ;;  %1952 = vmatpush1.bf16.msra.mxu1 %v5549_v12  ;;  %v7153_v44 = vld [vmem:[#allocation27_spill] sm:$0xff] }
 0x206   :  { %1953 = vmatprep.subr.bf16.mxu1 %v5553_v9 }
 0x208   :  { %1863 = vmatpush1.bf16.msra.mxu0 %v7143_v46  ;;  %v7154_v46 = vld [vmem:[#allocation28_spill] sm:$0xff] }
 0x209   :  { %1864 = vmatprep.subr.bf16.mxu0 %v7144_v50  ;;  %1954 = vmatpush1.bf16.msra.mxu1 %v5557_v7  ;;  %v5869_v50 = vld [vmem:[#allocation5 + $0x120] ss:$24 sps:$4 sm:$0xff]  }
 0x20a   :  { %1955 = vmatprep.subr.bf16.mxu1 %v5832_v27 }
 0x20c   :  { %1865 = vmatpush1.bf16.msra.mxu0 %v7145_v56  ;;  %v5872_v56 = vld [vmem:[#allocation5 + $0x154] ss:$24 sps:$4 sm:$0xff]  }
 0x20d   :  { %1866 = vmatprep.subr.bf16.mxu0 %v7146_v36  ;;  %1956 = vmatpush1.bf16.msra.mxu1 %v5837_v17  ;;  %v7155_v36 = vld [vmem:[#allocation29_spill] sm:$0xff] }
 0x20e   :  { %1957 = vmatprep.subr.bf16.mxu1 %v5840_v54 }
 0x210   :  { %1867 = vmatpush1.bf16.msra.mxu0 %v7147_v19  ;;  %v7156_v19 = vld [vmem:[#allocation30_spill] sm:$0xff] }
 0x211   :  { %1868 = vmatprep.subr.bf16.mxu0 %v7148_v61  ;;  %1958 = vmatpush1.bf16.msra.mxu1 %v5845_v21  ;;  %v5877_v61 = vld [vmem:[#allocation5 + $0x150] ss:$24 sps:$4 sm:$0xff]  }
 0x212   :  { %1959 = vmatprep.subr.bf16.mxu1 %v5848_v49 }
 0x214   :  { %1869 = vmatpush1.bf16.msra.mxu0 %v7149_v13  ;;  %v5880_v13 = vld [vmem:[#allocation5 + $0x184] ss:$24 sps:$4 sm:$0xff]  }
 0x215   :  { %1870 = vmatprep.subr.bf16.mxu0 %v7150_v52  ;;  %1960 = vmatpush1.bf16.msra.mxu1 %v5853_v29  ;;  %v7157_v52 = vld [vmem:[#allocation31_spill] sm:$0xff] }
 0x216   :  { %1961 = vmatprep.subr.bf16.mxu1 %v5856_v43 }
 0x218   :  { %1871 = vmatpush1.bf16.msra.mxu0 %v7151_v10  ;;  %v7158_v10 = vld [vmem:[#allocation32_spill] sm:$0xff] }
 0x219   :  { %1872 = vmatprep.subr.bf16.mxu0 %v7152_v26  ;;  %1962 = vmatpush1.bf16.msra.mxu1 %v5861_v24  ;;  %v5885_v26 = vld [vmem:[#allocation5 + $0x180] ss:$24 sps:$4 sm:$0xff]  }
 0x21a   :  { %1963 = vmatprep.subr.bf16.mxu1 %v5864_v53 }
 0x21c   :  { %1873 = vmatpush1.bf16.msra.mxu0 %v7153_v44  ;;  %v5888_v44 = vld [vmem:[#allocation5 + $0x1b4] ss:$24 sps:$4 sm:$0xff]  }
 0x21d   :  { %1874 = vmatprep.subr.bf16.mxu0 %v7154_v46  ;;  %1964 = vmatpush1.bf16.msra.mxu1 %v5869_v50  ;;  %v7159_v46 = vld [vmem:[#allocation33_spill] sm:$0xff] }
 0x21e   :  { %1965 = vmatprep.subr.bf16.mxu1 %v5872_v56 }
 0x220   :  { %1875 = vmatpush1.bf16.msra.mxu0 %v7155_v36  ;;  %v7160_v36 = vld [vmem:[#allocation34_spill] sm:$0xff] }
 0x221   :  { %1876 = vmatprep.subr.bf16.mxu0 %v7156_v19  ;;  %1966 = vmatpush1.bf16.msra.mxu1 %v5877_v61  ;;  %v5893_v19 = vld [vmem:[#allocation5 + $0x1b0] ss:$24 sps:$4 sm:$0xff]  }
 0x222   :  { %1967 = vmatprep.subr.bf16.mxu1 %v5880_v13 }
 0x224   :  { %1877 = vmatpush1.bf16.msra.mxu0 %v7157_v52  ;;  %v7162_v52 = vld [vmem:[#allocation35_spill] sm:$0xff] }
 0x225   :  { %1878 = vmatprep.subr.bf16.mxu0 %v7158_v10  ;;  %1968 = vmatpush1.bf16.msra.mxu1 %v5885_v26  ;;  %v7163_v10 = vld [vmem:[#allocation36_spill] sm:$0xff] }
 0x226   :  { %1969 = vmatprep.subr.bf16.mxu1 %v5888_v44 }
 0x228   :  { %1879 = vmatpush1.bf16.msra.mxu0 %v7159_v46  ;;  %v7166_v46 = vld [vmem:[#allocation37_spill] sm:$0xff] }
 0x229   :  { %1880 = vmatprep.subr.bf16.mxu0 %v7160_v36  ;;  %1970 = vmatpush1.bf16.msra.mxu1 %v5893_v19  ;;  %v7167_v36 = vld [vmem:[#allocation38_spill] sm:$0xff] }
 0x22a   :  { %1971 = vmatprep.subr.bf16.mxu1 %v5896_v60 }
 0x22c   :  { %1881 = vmatpush1.bf16.msra.mxu0 %v7162_v52  ;;  %v7170_v52 = vld [vmem:[#allocation39_spill] sm:$0xff] }
 0x22d   :  { %1882 = vmatprep.subr.bf16.mxu0 %v7163_v10  ;;  %1972 = vmatpush1.bf16.msra.mxu1 %v5901_v32  ;;  %v7171_v10 = vld [vmem:[#allocation40_spill] sm:$0xff] }
 0x22e   :  { %1973 = vmatprep.subr.bf16.mxu1 %v5904_v47  ;;  %v5920_v47 = vld [vmem:[#allocation5 + $0x274] ss:$24 sps:$4 sm:$0xff]  }
 0x22f   :  { %7173 = vst [vmem:[#allocation22_spill] sm:$0xff] %v5920_v47 }
 0x230   :  { %1883 = vmatpush1.bf16.msra.mxu0 %v7166_v46 }
 0x231   :  { %1884 = vmatprep.subr.bf16.mxu0 %v7167_v36  ;;  %1974 = vmatpush1.bf16.msra.mxu1 %v5909_v38  ;;  %v7174_v36 = vld [vmem:[#allocation42_spill] sm:$0xff] }
 0x232   :  { %1975 = vmatprep.subr.bf16.mxu1 %v5912_v30  ;;  %v5925_v38 = vld [vmem:[#allocation5 + $0x270] ss:$24 sps:$4 sm:$0xff]   ;;  %v5928_v30 = vld [vmem:[#allocation5 + $0x2a4] ss:$24 sps:$4 sm:$0xff]  }
 0x233   :  { %7175 = vst [vmem:[#allocation23_spill] sm:$0xff] %v5925_v38  ;;  %7176 = vst [vmem:[#allocation24_spill] sm:$0xff] %v5928_v30 }
 0x234   :  { %1885 = vmatpush1.bf16.msra.mxu0 %v7170_v52  ;;  %v7178_v52 = vld [vmem:[#allocation44_spill] sm:$0xff] }
 0x235   :  { %1886 = vmatprep.subr.bf16.mxu0 %v7171_v10  ;;  %1976 = vmatpush1.bf16.msra.mxu1 %v5917_v20  ;;  %v7177_v10 = vld [vmem:[#allocation43_spill] sm:$0xff]  ;;  %v5933_v20 = vld [vmem:[#allocation5 + $0x2a0] ss:$24 sps:$4 sm:$0xff]  }
 0x236   :  { %1977 = vmatprep.subr.bf16.mxu1 %v5920_v47  ;;  %7179 = vst [vmem:[#allocation25_spill] sm:$0xff] %v5933_v20  ;;  %v5936_v47 = vld [vmem:[#allocation5 + $0x2d4] ss:$24 sps:$4 sm:$0xff]  }
 0x237   :  { %7180 = vst [vmem:[#allocation26_spill] sm:$0xff] %v5936_v47 }
 0x238   :  { %1887 = vmatpush1.bf16.msra.mxu0 %v5513_v14  ;;  %v5940_v14 = vld [vmem:[#allocation5 + $0xc] ss:$24 sps:$4 sm:$0xff]  }
 0x239   :  { %1888 = vmatprep.subr.bf16.mxu0 %v7174_v36  ;;  %1978 = vmatpush1.bf16.msra.mxu1 %v5925_v38  ;;  %v7181_v36 = vld [vmem:[#allocation45_spill] sm:$0xff]  ;;  %7182 = vst [vmem:[#allocation27_spill] sm:$0xff] %v5940_v14  ;;  %v5943_v38 = vld [vmem:[#allocation5 + $0x2d0] ss:$24 sps:$4 sm:$0xff]  }
 0x23a   :  { %1979 = vmatprep.subr.bf16.mxu1 %v5928_v30  ;;  %7183 = vst [vmem:[#allocation28_spill] sm:$0xff] %v5943_v38 }
 0x23c   :  { %1889 = vmatpush1.bf16.msra.mxu0 %v7177_v10  ;;  %v5946_v10 = vld [vmem:[#allocation5 + $0x14] ss:$24 sps:$4 sm:$0xff]  }
 0x23d   :  { %1890 = vmatprep.subr.bf16.mxu0 %v7178_v52  ;;  %1980 = vmatpush1.bf16.msra.mxu1 %v5933_v20  ;;  %7184 = vst [vmem:[#allocation29_spill] sm:$0xff] %v5946_v10  ;;  %v5950_v20 = vld [vmem:[#allocation5 + $0x8] ss:$24 sps:$4 sm:$0xff]  }
 0x23e   :  { %1981 = vmatprep.subr.bf16.mxu1 %v5936_v47  ;;  %7185 = vst [vmem:[#allocation30_spill] sm:$0xff] %v5950_v20  ;;  %v5953_v47 = vld [vmem:[#allocation5 + $0x3c] ss:$24 sps:$4 sm:$0xff]  }
 0x23f   :  { %7186 = vst [vmem:[#allocation31_spill] sm:$0xff] %v5953_v47 }
 0x240   :  { %1891 = vmatpush1.bf16.msra.mxu0 %v7181_v36  ;;  %v5956_v36 = vld [vmem:[#allocation5 + $0x38] ss:$24 sps:$4 sm:$0xff]  }
 0x241   :  { %1992 = vmatprep.subr.bf16.mxu0 %v5940_v14  ;;  %1982 = vmatpush1.bf16.msra.mxu1 %v5943_v38  ;;  %7187 = vst [vmem:[#allocation32_spill] sm:$0xff] %v5956_v36  ;;  %v5959_v14 = vld [vmem:[#allocation5 + $0x6c] ss:$24 sps:$4 sm:$0xff]   ;;  %v5962_v38 = vld [vmem:[#allocation5 + $0x68] ss:$24 sps:$4 sm:$0xff]  }
 0x242   :  { %2033 = vmatprep.subr.bf16.mxu1 %v5946_v10  ;;  %7188 = vst [vmem:[#allocation33_spill] sm:$0xff] %v5959_v14  ;;  %7189 = vst [vmem:[#allocation34_spill] sm:$0xff] %v5962_v38 }
 0x243   :  { %1893 = vmatmul.mubr.bf16.vlgmr.msra.gmra.mrb[40].mxu0 %v5819_v41  ;;  %v5965_v41 = vld [vmem:[#allocation5 + $0x9c] ss:$24 sps:$4 sm:$0xff]  }
 0x244   :  { %1993 = vmatpush1.bf16.msra.mxu0 %v5950_v20  ;;  %7190 = vst [vmem:[#allocation35_spill] sm:$0xff] %v5965_v41  ;;  %v5968_v20 = vld [vmem:[#allocation5 + $0x98] ss:$24 sps:$4 sm:$0xff]  }
 0x245   :  { %1994 = vmatprep.subr.bf16.mxu0 %v5953_v47  ;;  %7191 = vst [vmem:[#allocation36_spill] sm:$0xff] %v5968_v20  ;;  %v5971_v47 = vld [vmem:[#allocation5 + $0xcc] ss:$24 sps:$4 sm:$0xff]  }
 0x246   :  { %7192 = vst [vmem:[#allocation37_spill] sm:$0xff] %v5971_v47 }
 0x248   :  { %1995 = vmatpush1.bf16.msra.mxu0 %v5956_v36  ;;  %v5974_v36 = vld [vmem:[#allocation5 + $0xc8] ss:$24 sps:$4 sm:$0xff]  }
 0x249   :  { %1996 = vmatprep.subr.bf16.mxu0 %v5959_v14  ;;  %7193 = vst [vmem:[#allocation44_spill] sm:$0xff] %v5974_v36  ;;  %v5977_v14 = vld [vmem:[#allocation5 + $0xfc] ss:$24 sps:$4 sm:$0xff]  }
 0x24a   :  { %7194 = vst [vmem:[#allocation82_spill] sm:$0xff] %v5977_v14 }
 0x24c   :  { %1997 = vmatpush1.bf16.msra.mxu0 %v5962_v38 }
 0x24d   :  { %1998 = vmatprep.subr.bf16.mxu0 %v5965_v41 }
 0x250   :  { %1999 = vmatpush1.bf16.msra.mxu0 %v5968_v20 }
 0x251   :  { %2000 = vmatprep.subr.bf16.mxu0 %v5971_v47 }
 0x254   :  { %2001 = vmatpush1.bf16.msra.mxu0 %v5974_v36 }
 0x255   :  { %2002 = vmatprep.subr.bf16.mxu0 %v5977_v14 }
 0x258   :  { %2003 = vmatpush1.bf16.msra.mxu0 %v5409_v15 }
 0x259   :  { %2004 = vmatprep.subr.bf16.mxu0 %v5413_v59 }
 0x25c   :  { %2005 = vmatpush1.bf16.msra.mxu0 %v5422_v22 }
 0x25d   :  { %2006 = vmatprep.subr.bf16.mxu0 %v5427_v1 }
 0x260   :  { %2007 = vmatpush1.bf16.msra.mxu0 %v5435_v25 }
 0x261   :  { %2008 = vmatprep.subr.bf16.mxu0 %v5439_v8 }
 0x264   :  { %2009 = vmatpush1.bf16.msra.mxu0 %v5448_v31 }
 0x265   :  { %2010 = vmatprep.subr.bf16.mxu0 %v5453_v57 }
 0x268   :  { %2011 = vmatpush1.bf16.msra.mxu0 %v5461_v35 }
 0x269   :  { %2012 = vmatprep.subr.bf16.mxu0 %v5465_v63 }
 0x26c   :  { %2013 = vmatpush1.bf16.msra.mxu0 %v5473_v6 }
 0x26d   :  { %2014 = vmatprep.subr.bf16.mxu0 %v5477_v18 }
 0x270   :  { %2015 = vmatpush1.bf16.msra.mxu0 %v5485_v42 }
 0x271   :  { %2016 = vmatprep.subr.bf16.mxu0 %v5489_v55 }
 0x274   :  { %2017 = vmatpush1.bf16.msra.mxu0 %v5499_v51 }
 0x275   :  { %2018 = vmatprep.subr.bf16.mxu0 %v5505_v33 }
 0x278   :  { %2019 = vmatpush1.bf16.msra.mxu0 %v5511_v45 }
 0x279   :  { %2020 = vmatprep.subr.bf16.mxu0 %v5517_v40 }
 0x27c   :  { %2021 = vmatpush1.bf16.msra.mxu0 %v5523_v3 }
 0x27d   :  { %2022 = vmatprep.subr.bf16.mxu0 %v5529_v4 }
 0x280   :  { %2023 = vmatpush1.bf16.msra.mxu0 %v5535_v28 }
 0x281   :  { %2124 = vmatprep.subr.bf16.mxu0 %v5543_v23 }
 0x2d6   :  { %v1812_v15 = vpop.f32.mrb[36].mxu0  ;;  %v1853_v42 = vpop.f32.mrb[24].mxu1 }
 0x2d7   :  { %v1901_v55 = vadd.f32 %v1812_v15, %v5659_v58  ;;  %v1915_v51 = vadd.f32 %v1853_v42, %v5662_v62  ;;  %v1814_v57 = vpop.f32.mrb[37].mxu0  ;;  %v1855_v33 = vpop.f32.mrb[25].mxu1 }
 0x2d8   :  { %v1902_v45 = vadd.f32 %v1814_v57, %v5664_v2  ;;  %v1916_v40 = vadd.f32 %v1855_v33, %v5667_v5  ;;  %v1816_v59 = vpop.f32.mrb[38].mxu0  ;;  %v1857_v3 = vpop.f32.mrb[26].mxu1 }
 0x2d9   :  { %v1817_v22 = vpop.f32.mrb[39].mxu0  ;;  %v1858_v63 = vpop.f32.mrb[27].mxu1  ;;  %v4034_v1 = vmul.f32 -1.442695, %v1901_v55  ;;  %v4036_v18 = vmul.f32 -1.442695, %v1915_v51 }
 0x2da   :  { %v4035_v25 = vmul.f32 -1.442695, %v1902_v45  ;;  %v4037_v31 = vmul.f32 -1.442695, %v1916_v40 }
 0x2db   :  { %4662 = vpow2.f32 %v4034_v1 }
 0x2dc   :  { %4664 = vpow2.f32 %v4035_v25 }
 0x2dd   :  { %4666 = vpow2.f32 %v4036_v18 }
 0x2de   :  { %4668 = vpow2.f32 %v4037_v31 }
 0x2e5   :  { %v4663_v6 = vpop.eup %4662 }
 0x2e6   :  { %v4665_v8 = vpop.eup %4664  ;;  %v1909_v35 = vadd.f32 1.0, %v4663_v6 }
 0x2e7   :  { %v1910_v58 = vadd.f32 1.0, %v4665_v8  ;;  %v4667_v62 = vpop.eup %4666 }
 0x2e8   :  { %4670 = vrcp.f32 %v1909_v35  ;;  %v4669_v5 = vpop.eup %4668  ;;  %v1923_v3 = vadd.f32 1.0, %v4667_v62 }
 0x2e9   :  { %4672 = vrcp.f32 %v1910_v58  ;;  %v1924_v63 = vadd.f32 1.0, %v4669_v5 }
 0x2f2   :  { %v4671_v55 = vpop.eup %4670 }
 0x2f3   :  { %v4673_v45 = vpop.eup %4672 }
 0x316   :  { %v1894_v2 = vpop.f32.mrb[40].mxu0 }
 0x317   :  { %v1929_v15 = vadd.f32 %v1894_v2, %v5796_v0  ;;  %v1896_v42 = vpop.f32.mrb[41].mxu0 }
 0x318   :  { %v1930_v57 = vadd.f32 %v1896_v42, %v5799_v16  ;;  %v1898_v33 = vpop.f32.mrb[42].mxu0  ;;  %v6038_v42 = vld [vmem:[#allocation5 + $0x70] ss:$24 sps:$4 sm:$0xff]  }
 0x319   :  { %v1931_v59 = vmul.f32 %v4671_v55, %v1929_v15  ;;  %v1899_v51 = vpop.f32.mrb[43].mxu0  ;;  %v6033_v15 = vld [vmem:[#allocation5 + $0x74] ss:$24 sps:$4 sm:$0xff]   ;;  %v6041_v55 = vld [vmem:[#allocation5 + $0xa4] ss:$24 sps:$4 sm:$0xff]  }
 0x31a   :  { %v1932_v40 = vmul.f32 %v4673_v45, %v1930_v57  ;;  %v6057_v57 = vld [vmem:[#allocation5 + $0x104] ss:$24 sps:$4 sm:$0xff]   ;;  %v6062_v33 = vld [vmem:[#allocation5 + $0x100] ss:$24 sps:$4 sm:$0xff]   ;;  %v6065_v45 = vld [vmem:[#allocation5 + $0x134] ss:$24 sps:$4 sm:$0xff]  }
 0x31b   :  { %v1933_v22 = vadd.f32 %v1931_v59, %v5751_v37  ;;  %v6070_v59 = vld [vmem:[#allocation5 + $0x130] ss:$24 sps:$4 sm:$0xff]   ;;  %v6073_v51 = vld [vmem:[#allocation5 + $0x164] ss:$24 sps:$4 sm:$0xff]  }
 0x31c   :  { %v1934_v1 = vadd.f32 %v1932_v40, %v5754_v48  ;;  %v6078_v40 = vld [vmem:[#allocation5 + $0x160] ss:$24 sps:$4 sm:$0xff]  }
 0x31d   :  { %4674 = vtanh.f32 %v1933_v22  ;;  %v6086_v22 = vld [vmem:[#allocation5 + $0x190] ss:$24 sps:$4 sm:$0xff]  }
 0x31e   :  { %4676 = vtanh.f32 %v1934_v1  ;;  %v6094_v1 = vld [vmem:[#allocation5 + $0x1c0] ss:$24 sps:$4 sm:$0xff]  }
 0x31f   :  { %4678 = vrcp.f32 %v1923_v3  ;;  %v6081_v3 = vld [vmem:[#allocation5 + $0x194] ss:$24 sps:$4 sm:$0xff]  }
 0x320   :  { %4680 = vrcp.f32 %v1924_v63  ;;  %v6089_v63 = vld [vmem:[#allocation5 + $0x1c4] ss:$24 sps:$4 sm:$0xff]  }
 0x327   :  { %v4675_v25 = vpop.eup %4674 }
 0x328   :  { %v4677_v6 = vpop.eup %4676  ;;  %v1937_v8 = vsub.f32 %v5811_v34, %v4675_v25  ;;  %v6025_v34 = vld [vmem:[#allocation5 + $0x44] ss:$24 sps:$4 sm:$0xff]  }
 0x329   :  { %v4679_v18 = vpop.eup %4678  ;;  %v1938_v31 = vsub.f32 %v5813_v11, %v4677_v6  ;;  %v6030_v11 = vld [vmem:[#allocation5 + $0x40] ss:$24 sps:$4 sm:$0xff]  }
 0x32a   :  { %v4681_v35 = vpop.eup %4680  ;;  %v1939_v58 = vmul.f32 %v4679_v18, %v1937_v8  ;;  %v6105_v8 = vld [vmem:[#allocation5 + $0x224] ss:$24 sps:$4 sm:$0xff]   ;;  %v7197_v18 = vld [vmem:[#allocation18_spill] sm:$0xff] }
 0x32b   :  { %v1940_v2 = vmul.f32 %v4681_v35, %v1938_v31  ;;  %7196 = vst [vmem:[#allocation84_spill] sm:$0xff] %v6105_v8  ;;  %v7198_v31 = vld [vmem:[#allocation38_spill] sm:$0xff]  ;;  %v7199_v35 = vld [vmem:[#allocation19_spill] sm:$0xff] }
 0x32c   :  { %v6012_v62 = vadd.f32 %v4675_v25, %v1939_v58  ;;  %v6097_v25 = vld [vmem:[#allocation5 + $0x1f4] ss:$24 sps:$4 sm:$0xff]   ;;  %v7200_v58 = vld [vmem:[#allocation20_spill] sm:$0xff] }
 0x32d   :  { %v6014_v37 = vadd.f32 %v4677_v6, %v1940_v2  ;;  %v6102_v6 = vld [vmem:[#allocation5 + $0x1f0] ss:$24 sps:$4 sm:$0xff]  }
 0x32e   :  { %v6020_v5 = vpack.c.bf16 %v6012_v62, %v6012_v62  ;;  %7195 = vst [vmem:[#allocation83_spill] sm:$0xff] %v6102_v6  ;;  %v7201_v2 = vld [vmem:[#allocation39_spill] sm:$0xff] }
 0x32f   :  { %v1950_v48 = vpack.c.bf16 %v6014_v37, %v6014_v37 }
 0x331   :  { %1983 = vmatprep.mubr.bf16.mxu1 %v1950_v48  ;;  %2024 = vmatprep.mubr.bf16.mxu0 %v1950_v48 }
 0x332   :  { %1984 = vmatmul.mubr.bf16.vlgmr.msra.gmra.mrb[28].mxu1 %v6020_v5  ;;  %2025 = vmatmul.mubr.bf16.vlgmr.msra.gmra.mrb[44].mxu0 %v6020_v5 }
 0x333   :  { %2034 = vmatpush1.bf16.msra.mxu1 %v5823_v39  ;;  %2065 = vmatprep.mubr.bf16.mxu1 %v1950_v48  ;;  %v7202_v48 = vld [vmem:[#allocation40_spill] sm:$0xff] }
 0x334   :  { %2035 = vmatprep.subr.bf16.mxu1 %v6025_v34  ;;  %2125 = vmatpush1.bf16.msra.mxu0 %v5549_v12  ;;  %v6049_v12 = vld [vmem:[#allocation5 + $0xd4] ss:$24 sps:$4 sm:$0xff]  }
 0x335   :  { %2126 = vmatprep.subr.bf16.mxu0 %v5553_v9  ;;  %v6046_v9 = vld [vmem:[#allocation5 + $0xa0] ss:$24 sps:$4 sm:$0xff]  }
 0x337   :  { %2036 = vmatpush1.bf16.msra.mxu1 %v6030_v11 }
 0x338   :  { %2037 = vmatprep.subr.bf16.mxu1 %v6033_v15  ;;  %2127 = vmatpush1.bf16.msra.mxu0 %v5557_v7  ;;  %v6054_v7 = vld [vmem:[#allocation5 + $0xd0] ss:$24 sps:$4 sm:$0xff]  }
 0x339   :  { %2128 = vmatprep.subr.bf16.mxu0 %v5832_v27 }
 0x33b   :  { %2038 = vmatpush1.bf16.msra.mxu1 %v6038_v42 }
 0x33c   :  { %2039 = vmatprep.subr.bf16.mxu1 %v6041_v55  ;;  %2129 = vmatpush1.bf16.msra.mxu0 %v5837_v17 }
 0x33d   :  { %2130 = vmatprep.subr.bf16.mxu0 %v5840_v54 }
 0x33f   :  { %2040 = vmatpush1.bf16.msra.mxu1 %v6046_v9 }
 0x340   :  { %2041 = vmatprep.subr.bf16.mxu1 %v6049_v12  ;;  %2131 = vmatpush1.bf16.msra.mxu0 %v5845_v21 }
 0x341   :  { %2132 = vmatprep.subr.bf16.mxu0 %v5848_v49 }
 0x343   :  { %2042 = vmatpush1.bf16.msra.mxu1 %v6054_v7 }
 0x344   :  { %2043 = vmatprep.subr.bf16.mxu1 %v6057_v57  ;;  %2133 = vmatpush1.bf16.msra.mxu0 %v5853_v29 }
 0x345   :  { %2134 = vmatprep.subr.bf16.mxu0 %v5856_v43 }
 0x347   :  { %2044 = vmatpush1.bf16.msra.mxu1 %v6062_v33 }
 0x348   :  { %2045 = vmatprep.subr.bf16.mxu1 %v6065_v45  ;;  %2135 = vmatpush1.bf16.msra.mxu0 %v5861_v24 }
 0x349   :  { %2136 = vmatprep.subr.bf16.mxu0 %v5864_v53 }
 0x34b   :  { %2046 = vmatpush1.bf16.msra.mxu1 %v6070_v59 }
 0x34c   :  { %2047 = vmatprep.subr.bf16.mxu1 %v6073_v51  ;;  %2137 = vmatpush1.bf16.msra.mxu0 %v5869_v50 }
 0x34d   :  { %2138 = vmatprep.subr.bf16.mxu0 %v5872_v56 }
 0x34f   :  { %2048 = vmatpush1.bf16.msra.mxu1 %v6078_v40 }
 0x350   :  { %2049 = vmatprep.subr.bf16.mxu1 %v6081_v3  ;;  %2139 = vmatpush1.bf16.msra.mxu0 %v5877_v61 }
 0x351   :  { %2140 = vmatprep.subr.bf16.mxu0 %v5880_v13 }
 0x353   :  { %2050 = vmatpush1.bf16.msra.mxu1 %v6086_v22 }
 0x354   :  { %2051 = vmatprep.subr.bf16.mxu1 %v6089_v63  ;;  %2141 = vmatpush1.bf16.msra.mxu0 %v5885_v26 }
 0x355   :  { %2142 = vmatprep.subr.bf16.mxu0 %v5888_v44 }
 0x357   :  { %2052 = vmatpush1.bf16.msra.mxu1 %v6094_v1 }
 0x358   :  { %2053 = vmatprep.subr.bf16.mxu1 %v6097_v25  ;;  %2143 = vmatpush1.bf16.msra.mxu0 %v5893_v19 }
 0x359   :  { %2144 = vmatprep.subr.bf16.mxu0 %v5896_v60  ;;  %v7204_v60 = vld [vmem:[#allocation22_spill] sm:$0xff] }
 0x35b   :  { %2054 = vmatpush1.bf16.msra.mxu1 %v6102_v6  ;;  %v7203_v6 = vld [vmem:[#allocation21_spill] sm:$0xff] }
 0x35c   :  { %2055 = vmatprep.subr.bf16.mxu1 %v6105_v8  ;;  %2145 = vmatpush1.bf16.msra.mxu0 %v5901_v32  ;;  %v7205_v8 = vld [vmem:[#allocation41_spill] sm:$0xff]  ;;  %v7206_v32 = vld [vmem:[#allocation42_spill] sm:$0xff] }
 0x35d   :  { %2146 = vmatprep.subr.bf16.mxu0 %v7197_v18  ;;  %v7207_v18 = vld [vmem:[#allocation23_spill] sm:$0xff] }
 0x35f   :  { %2056 = vmatpush1.bf16.msra.mxu1 %v7166_v46  ;;  %v7208_v46 = vld [vmem:[#allocation43_spill] sm:$0xff] }
 0x360   :  { %2057 = vmatprep.subr.bf16.mxu1 %v7198_v31  ;;  %2147 = vmatpush1.bf16.msra.mxu0 %v7199_v35  ;;  %v7209_v31 = vld [vmem:[#allocation25_spill] sm:$0xff] }
 0x361   :  { %2148 = vmatprep.subr.bf16.mxu0 %v7200_v58 }
 0x363   :  { %2058 = vmatpush1.bf16.msra.mxu1 %v7201_v2  ;;  %v7210_v2 = vld [vmem:[#allocation26_spill] sm:$0xff] }
 0x364   :  { %2059 = vmatprep.subr.bf16.mxu1 %v7202_v48  ;;  %2149 = vmatpush1.bf16.msra.mxu0 %v7203_v6  ;;  %v7211_v48 = vld [vmem:[#allocation45_spill] sm:$0xff]  ;;  %v7212_v6 = vld [vmem:[#allocation27_spill] sm:$0xff] }
 0x365   :  { %2150 = vmatprep.subr.bf16.mxu0 %v7204_v60  ;;  %v7213_v60 = vld [vmem:[#allocation28_spill] sm:$0xff] }
 0x367   :  { %2060 = vmatpush1.bf16.msra.mxu1 %v7205_v8  ;;  %v7215_v8 = vld [vmem:[#allocation31_spill] sm:$0xff] }
 0x368   :  { %2061 = vmatprep.subr.bf16.mxu1 %v7206_v32  ;;  %2151 = vmatpush1.bf16.msra.mxu0 %v7207_v18  ;;  %v7214_v32 = vld [vmem:[#allocation30_spill] sm:$0xff] }
 0x369   :  { %2152 = vmatprep.subr.bf16.mxu0 %v5928_v30 }
 0x36b   :  { %2062 = vmatpush1.bf16.msra.mxu1 %v7208_v46  ;;  %v7216_v46 = vld [vmem:[#allocation32_spill] sm:$0xff] }
 0x36c   :  { %2063 = vmatprep.subr.bf16.mxu1 %v7178_v52  ;;  %2153 = vmatpush1.bf16.msra.mxu0 %v7209_v31  ;;  %v7217_v52 = vld [vmem:[#allocation33_spill] sm:$0xff] }
 0x36d   :  { %2154 = vmatprep.subr.bf16.mxu0 %v7210_v2 }
 0x36f   :  { %2064 = vmatpush1.bf16.msra.mxu1 %v7211_v48  ;;  %v6144_v48 = vld [vmem:[#allocation5 + $0x12c] ss:$24 sps:$4 sm:$0xff]  }
 0x370   :  { %2165 = vmatprep.subr.bf16.mxu1 %v7212_v6  ;;  %2155 = vmatpush1.bf16.msra.mxu0 %v7213_v60  ;;  %7219 = vst [vmem:[#allocation39_spill] sm:$0xff] %v6144_v48 }
 0x371   :  { %2206 = vmatprep.subr.bf16.mxu0 %v5946_v10 }
 0x372   :  { %2066 = vmatmul.mubr.bf16.vlgmr.msra.gmra.mrb[32].mxu1 %v6020_v5  ;;  %v6141_v5 = vld [vmem:[#allocation5 + $0xf8] ss:$24 sps:$4 sm:$0xff]  }
 0x373   :  { %2166 = vmatpush1.bf16.msra.mxu1 %v7214_v32  ;;  %7218 = vst [vmem:[#allocation38_spill] sm:$0xff] %v6141_v5  ;;  %v7240_v32 = vld [vmem:[#allocation49_spill] sm:$0xff] }
 0x374   :  { %2167 = vmatprep.subr.bf16.mxu1 %v7215_v8  ;;  %v7239_v8 = vld [vmem:[#allocation48_spill] sm:$0xff] }
 0x377   :  { %2168 = vmatpush1.bf16.msra.mxu1 %v7216_v46 }
 0x378   :  { %2169 = vmatprep.subr.bf16.mxu1 %v7217_v52  ;;  %v6147_v52 = vld [vmem:[#allocation5 + $0x128] ss:$24 sps:$4 sm:$0xff]  }
 0x379   :  { %7220 = vst [vmem:[#allocation40_spill] sm:$0xff] %v6147_v52 }
 0x37b   :  { %2170 = vmatpush1.bf16.msra.mxu1 %v5962_v38 }
 0x37c   :  { %2171 = vmatprep.subr.bf16.mxu1 %v5965_v41  ;;  %v6150_v41 = vld [vmem:[#allocation5 + $0x15c] ss:$24 sps:$4 sm:$0xff]  }
 0x37d   :  { %7221 = vst [vmem:[#allocation41_spill] sm:$0xff] %v6150_v41 }
 0x37f   :  { %2172 = vmatpush1.bf16.msra.mxu1 %v5968_v20  ;;  %v7238_v20 = vld [vmem:[#allocation47_spill] sm:$0xff] }
 0x380   :  { %2173 = vmatprep.subr.bf16.mxu1 %v5971_v47  ;;  %v6153_v47 = vld [vmem:[#allocation5 + $0x158] ss:$24 sps:$4 sm:$0xff]  }
 0x381   :  { %7222 = vst [vmem:[#allocation42_spill] sm:$0xff] %v6153_v47 }
 0x383   :  { %2174 = vmatpush1.bf16.msra.mxu1 %v5974_v36 }
 0x384   :  { %2175 = vmatprep.subr.bf16.mxu1 %v5977_v14  ;;  %v6156_v14 = vld [vmem:[#allocation5 + $0x18c] ss:$24 sps:$4 sm:$0xff]  }
 0x385   :  { %7223 = vst [vmem:[#allocation43_spill] sm:$0xff] %v6156_v14 }
 0x387   :  { %2176 = vmatpush1.bf16.msra.mxu1 %v6141_v5  ;;  %v6159_v5 = vld [vmem:[#allocation5 + $0x188] ss:$24 sps:$4 sm:$0xff]  }
 0x388   :  { %2177 = vmatprep.subr.bf16.mxu1 %v6144_v48  ;;  %7224 = vst [vmem:[#allocation45_spill] sm:$0xff] %v6159_v5  ;;  %v6162_v48 = vld [vmem:[#allocation5 + $0x1bc] ss:$24 sps:$4 sm:$0xff]  }
 0x389   :  { %7225 = vst [vmem:[#allocation85_spill] sm:$0xff] %v6162_v48 }
 0x38b   :  { %2178 = vmatpush1.bf16.msra.mxu1 %v6147_v52  ;;  %v6165_v52 = vld [vmem:[#allocation5 + $0x1b8] ss:$24 sps:$4 sm:$0xff]  }
 0x38c   :  { %2179 = vmatprep.subr.bf16.mxu1 %v6150_v41  ;;  %7226 = vst [vmem:[#allocation86_spill] sm:$0xff] %v6165_v52  ;;  %v6168_v41 = vld [vmem:[#allocation5 + $0x1ec] ss:$24 sps:$4 sm:$0xff]  }
 0x38d   :  { %7227 = vst [vmem:[#allocation87_spill] sm:$0xff] %v6168_v41 }
 0x38f   :  { %2180 = vmatpush1.bf16.msra.mxu1 %v6153_v47  ;;  %v6171_v47 = vld [vmem:[#allocation5 + $0x1e8] ss:$24 sps:$4 sm:$0xff]  }
 0x390   :  { %2181 = vmatprep.subr.bf16.mxu1 %v6156_v14  ;;  %7228 = vst [vmem:[#allocation88_spill] sm:$0xff] %v6171_v47  ;;  %v6174_v14 = vld [vmem:[#allocation5 + $0x21c] ss:$24 sps:$4 sm:$0xff]  }
 0x391   :  { %7229 = vst [vmem:[#allocation89_spill] sm:$0xff] %v6174_v14 }
 0x393   :  { %2182 = vmatpush1.bf16.msra.mxu1 %v6159_v5  ;;  %v6177_v5 = vld [vmem:[#allocation5 + $0x218] ss:$24 sps:$4 sm:$0xff]  }
 0x394   :  { %2183 = vmatprep.subr.bf16.mxu1 %v6162_v48  ;;  %7230 = vst [vmem:[#allocation90_spill] sm:$0xff] %v6177_v5  ;;  %v6180_v48 = vld [vmem:[#allocation5 + $0x24c] ss:$24 sps:$4 sm:$0xff]  }
 0x395   :  { %7231 = vst [vmem:[#allocation91_spill] sm:$0xff] %v6180_v48 }
 0x397   :  { %2184 = vmatpush1.bf16.msra.mxu1 %v6165_v52  ;;  %v6183_v52 = vld [vmem:[#allocation5 + $0x248] ss:$24 sps:$4 sm:$0xff]  }
 0x398   :  { %2185 = vmatprep.subr.bf16.mxu1 %v6168_v41  ;;  %7232 = vst [vmem:[#allocation92_spill] sm:$0xff] %v6183_v52  ;;  %v6186_v41 = vld [vmem:[#allocation5 + $0x27c] ss:$24 sps:$4 sm:$0xff]  }
 0x399   :  { %7233 = vst [vmem:[#allocation93_spill] sm:$0xff] %v6186_v41 }
 0x39b   :  { %2186 = vmatpush1.bf16.msra.mxu1 %v6171_v47  ;;  %v6189_v47 = vld [vmem:[#allocation5 + $0x278] ss:$24 sps:$4 sm:$0xff]  }
 0x39c   :  { %2187 = vmatprep.subr.bf16.mxu1 %v6174_v14  ;;  %7234 = vst [vmem:[#allocation94_spill] sm:$0xff] %v6189_v47  ;;  %v6192_v14 = vld [vmem:[#allocation5 + $0x2ac] ss:$24 sps:$4 sm:$0xff]  }
 0x39d   :  { %7235 = vst [vmem:[#allocation95_spill] sm:$0xff] %v6192_v14 }
 0x39f   :  { %2188 = vmatpush1.bf16.msra.mxu1 %v6177_v5  ;;  %v6195_v5 = vld [vmem:[#allocation5 + $0x2a8] ss:$24 sps:$4 sm:$0xff]  }
 0x3a0   :  { %2189 = vmatprep.subr.bf16.mxu1 %v6180_v48  ;;  %7236 = vst [vmem:[#allocation96_spill] sm:$0xff] %v6195_v5  ;;  %v7237_v48 = vld [vmem:[#allocation46_spill] sm:$0xff] }
 0x3a3   :  { %2190 = vmatpush1.bf16.msra.mxu1 %v6183_v52 }
 0x3a4   :  { %2191 = vmatprep.subr.bf16.mxu1 %v6186_v41 }
 0x3a7   :  { %2192 = vmatpush1.bf16.msra.mxu1 %v6189_v47 }
 0x3a8   :  { %2193 = vmatprep.subr.bf16.mxu1 %v6192_v14 }
 0x3ab   :  { %2194 = vmatpush1.bf16.msra.mxu1 %v6195_v5 }
 0x3ac   :  { %2195 = vmatprep.subr.bf16.mxu1 %v5529_v4 }
 0x3af   :  { %2196 = vmatpush1.bf16.msra.mxu1 %v5535_v28 }
 0x3b0   :  { %2297 = vmatprep.subr.bf16.mxu1 %v5543_v23 }
 0x405   :  { %v1985_v52 = vpop.f32.mrb[28].mxu1  ;;  %v2026_v41 = vpop.f32.mrb[44].mxu0 }
 0x406   :  { %v2074_v36 = vadd.f32 %v1985_v52, %v7237_v48  ;;  %v2088_v47 = vadd.f32 %v2026_v41, %v7238_v20  ;;  %v1987_v38 = vpop.f32.mrb[29].mxu1  ;;  %v2028_v46 = vpop.f32.mrb[45].mxu0 }
 0x407   :  { %v2075_v14 = vadd.f32 %v1987_v38, %v7239_v8  ;;  %v2089_v10 = vadd.f32 %v2028_v46, %v7240_v32  ;;  %v1989_v60 = vpop.f32.mrb[30].mxu1  ;;  %v2030_v5 = vpop.f32.mrb[46].mxu0 }
 0x408   :  { %v1990_v6 = vpop.f32.mrb[31].mxu1  ;;  %v2031_v4 = vpop.f32.mrb[47].mxu0  ;;  %v4038_v2 = vmul.f32 -1.442695, %v2074_v36  ;;  %v4040_v30 = vmul.f32 -1.442695, %v2088_v47 }
 0x409   :  { %v4039_v28 = vmul.f32 -1.442695, %v2075_v14  ;;  %v4041_v52 = vmul.f32 -1.442695, %v2089_v10 }
 0x40a   :  { %4682 = vpow2.f32 %v4038_v2 }
 0x40b   :  { %4684 = vpow2.f32 %v4039_v28  ;;  %v7242_v28 = vld [vmem:[#allocation71_spill] sm:$0xff] }
 0x40c   :  { %4686 = vpow2.f32 %v4040_v30 }
 0x40d   :  { %4688 = vpow2.f32 %v4041_v52 }
 0x414   :  { %v4683_v23 = vpop.eup %4682 }
 0x415   :  { %v4685_v31 = vpop.eup %4684  ;;  %v2082_v48 = vadd.f32 1.0, %v4683_v23 }
 0x416   :  { %v2083_v20 = vadd.f32 1.0, %v4685_v31  ;;  %v4687_v38 = vpop.eup %4686  ;;  %v7241_v31 = vld [vmem:[#allocation70_spill] sm:$0xff] }
 0x417   :  { %4690 = vrcp.f32 %v2082_v48  ;;  %v4689_v60 = vpop.eup %4688  ;;  %v2096_v5 = vadd.f32 1.0, %v4687_v38 }
 0x418   :  { %4692 = vrcp.f32 %v2083_v20  ;;  %v2097_v4 = vadd.f32 1.0, %v4689_v60 }
 0x421   :  { %v4691_v36 = vpop.eup %4690 }
 0x422   :  { %v4693_v8 = vpop.eup %4692 }
 0x445   :  { %v2067_v41 = vpop.f32.mrb[32].mxu1 }
 0x446   :  { %v2102_v6 = vadd.f32 %v2067_v41, %v5796_v0  ;;  %v2069_v32 = vpop.f32.mrb[33].mxu1 }
 0x447   :  { %v2103_v14 = vadd.f32 %v2069_v32, %v5799_v16  ;;  %v2071_v2 = vpop.f32.mrb[34].mxu1 }
 0x448   :  { %v2104_v46 = vmul.f32 %v4691_v36, %v2102_v6  ;;  %v2072_v47 = vpop.f32.mrb[35].mxu1 }
 0x449   :  { %v2105_v10 = vmul.f32 %v4693_v8, %v2103_v14  ;;  %v7243_v47 = vld [vmem:[#allocation16_spill] sm:$0xff] }
 0x44a   :  { %v2106_v30 = vadd.f32 %v2104_v46, %v7241_v31  ;;  %v6233_v46 = vld [vmem:[#allocation5 + $0x30] ss:$24 sps:$4 sm:$0xff]   ;;  %v7246_v31 = vld [vmem:[#allocation17_spill] sm:$0xff] }
 0x44b   :  { %v2107_v23 = vadd.f32 %v2105_v10, %v7242_v28  ;;  %v7244_v10 = vld [vmem:[#allocation83_spill] sm:$0xff] }
 0x44c   :  { %4694 = vtanh.f32 %v2106_v30  ;;  %v7247_v30 = vld [vmem:[#allocation18_spill] sm:$0xff] }
 0x44d   :  { %4696 = vtanh.f32 %v2107_v23  ;;  %v6276_v28 = vld [vmem:[#allocation5 + $0x254] ss:$24 sps:$4 sm:$0xff]   ;;  %v6281_v23 = vld [vmem:[#allocation5 + $0x250] ss:$24 sps:$4 sm:$0xff]  }
 0x44e   :  { %4698 = vrcp.f32 %v2096_v5  ;;  %v7245_v5 = vld [vmem:[#allocation84_spill] sm:$0xff]  ;;  %7249 = vst [vmem:[#allocation47_spill] sm:$0xff] %v6276_v28  ;;  %7250 = vst [vmem:[#allocation48_spill] sm:$0xff] %v6281_v23 }
 0x44f   :  { %4700 = vrcp.f32 %v2097_v4  ;;  %v6273_v4 = vld [vmem:[#allocation5 + $0x220] ss:$24 sps:$4 sm:$0xff]  }
 0x450   :  { %7248 = vst [vmem:[#allocation46_spill] sm:$0xff] %v6273_v4 }
 0x456   :  { %v4695_v52 = vpop.eup %4694 }
 0x457   :  { %v4697_v48 = vpop.eup %4696  ;;  %v2110_v20 = vsub.f32 %v6012_v62, %v4695_v52  ;;  %v6225_v62 = vld [vmem:[#allocation5] ss:$24 sps:$4 sm:$0xff]  }
 0x458   :  { %v4699_v41 = vpop.eup %4698  ;;  %v2111_v32 = vsub.f32 %v6014_v37, %v4697_v48  ;;  %v6228_v37 = vld [vmem:[#allocation5 + $0x34] ss:$24 sps:$4 sm:$0xff]  }
 0x459   :  { %v4701_v6 = vpop.eup %4700  ;;  %v2112_v36 = vmul.f32 %v4699_v41, %v2110_v20  ;;  %v7253_v20 = vld [vmem:[#allocation22_spill] sm:$0xff]  ;;  %v6289_v41 = vld [vmem:[#allocation5 + $0x280] ss:$24 sps:$4 sm:$0xff]  }
 0x45a   :  { %v2113_v14 = vmul.f32 %v4701_v6, %v2111_v32  ;;  %7254 = vst [vmem:[#allocation70_spill] sm:$0xff] %v6289_v41  ;;  %v6292_v32 = vld [vmem:[#allocation5 + $0x2b4] ss:$24 sps:$4 sm:$0xff]   ;;  %v7256_v6 = vld [vmem:[#allocation24_spill] sm:$0xff] }
 0x45b   :  { %v6211_v38 = vadd.f32 %v4695_v52, %v2112_v36  ;;  %v6284_v52 = vld [vmem:[#allocation5 + $0x284] ss:$24 sps:$4 sm:$0xff]   ;;  %7255 = vst [vmem:[#allocation71_spill] sm:$0xff] %v6292_v32  ;;  %v6297_v36 = vld [vmem:[#allocation5 + $0x2b0] ss:$24 sps:$4 sm:$0xff]  }
 0x45c   :  { %v6213_v2 = vadd.f32 %v4697_v48, %v2113_v14  ;;  %7251 = vst [vmem:[#allocation49_spill] sm:$0xff] %v6284_v52  ;;  %v7252_v48 = vld [vmem:[#allocation21_spill] sm:$0xff]  ;;  %7257 = vst [vmem:[#allocation97_spill] sm:$0xff] %v6297_v36 }
 0x45d   :  { %v6219_v8 = vpack.c.bf16 %v6211_v38, %v6211_v38  ;;  %v6300_v14 = vld [vmem:[#allocation5 + $0x2e4] ss:$24 sps:$4 sm:$0xff]  }
 0x45e   :  { %v2123_v60 = vpack.c.bf16 %v6213_v2, %v6213_v2  ;;  %7258 = vst [vmem:[#allocation98_spill] sm:$0xff] %v6300_v14 }
 0x460   :  { %2156 = vmatprep.mubr.bf16.mxu0 %v2123_v60  ;;  %2197 = vmatprep.mubr.bf16.mxu1 %v2123_v60 }
 0x461   :  { %2157 = vmatmul.mubr.bf16.vlgmr.msra.gmra.mrb[48].mxu0 %v6219_v8  ;;  %2198 = vmatmul.mubr.bf16.vlgmr.msra.gmra.mrb[36].mxu1 %v6219_v8 }
 0x462   :  { %2207 = vmatpush1.bf16.msra.mxu0 %v5823_v39  ;;  %2238 = vmatprep.mubr.bf16.mxu0 %v2123_v60  ;;  %v7259_v60 = vld [vmem:[#allocation25_spill] sm:$0xff] }
 0x463   :  { %2208 = vmatprep.subr.bf16.mxu0 %v6025_v34  ;;  %2298 = vmatpush1.bf16.msra.mxu1 %v6225_v62 }
 0x464   :  { %2299 = vmatprep.subr.bf16.mxu1 %v6228_v37 }
 0x466   :  { %2209 = vmatpush1.bf16.msra.mxu0 %v6030_v11 }
 0x467   :  { %2210 = vmatprep.subr.bf16.mxu0 %v6033_v15  ;;  %2300 = vmatpush1.bf16.msra.mxu1 %v6233_v46 }
 0x468   :  { %2301 = vmatprep.subr.bf16.mxu1 %v5832_v27 }
 0x46a   :  { %2211 = vmatpush1.bf16.msra.mxu0 %v6038_v42 }
 0x46b   :  { %2212 = vmatprep.subr.bf16.mxu0 %v6041_v55  ;;  %2302 = vmatpush1.bf16.msra.mxu1 %v5837_v17 }
 0x46c   :  { %2303 = vmatprep.subr.bf16.mxu1 %v5840_v54 }
 0x46e   :  { %2213 = vmatpush1.bf16.msra.mxu0 %v6046_v9 }
 0x46f   :  { %2214 = vmatprep.subr.bf16.mxu0 %v6049_v12  ;;  %2304 = vmatpush1.bf16.msra.mxu1 %v5845_v21 }
 0x470   :  { %2305 = vmatprep.subr.bf16.mxu1 %v5848_v49 }
 0x472   :  { %2215 = vmatpush1.bf16.msra.mxu0 %v6054_v7 }
 0x473   :  { %2216 = vmatprep.subr.bf16.mxu0 %v6057_v57  ;;  %2306 = vmatpush1.bf16.msra.mxu1 %v5853_v29 }
 0x474   :  { %2307 = vmatprep.subr.bf16.mxu1 %v5856_v43 }
 0x476   :  { %2217 = vmatpush1.bf16.msra.mxu0 %v6062_v33 }
 0x477   :  { %2218 = vmatprep.subr.bf16.mxu0 %v6065_v45  ;;  %2308 = vmatpush1.bf16.msra.mxu1 %v5861_v24 }
 0x478   :  { %2309 = vmatprep.subr.bf16.mxu1 %v5864_v53 }
 0x47a   :  { %2219 = vmatpush1.bf16.msra.mxu0 %v6070_v59 }
 0x47b   :  { %2220 = vmatprep.subr.bf16.mxu0 %v6073_v51  ;;  %2310 = vmatpush1.bf16.msra.mxu1 %v5869_v50 }
 0x47c   :  { %2311 = vmatprep.subr.bf16.mxu1 %v5872_v56 }
 0x47e   :  { %2221 = vmatpush1.bf16.msra.mxu0 %v6078_v40 }
 0x47f   :  { %2222 = vmatprep.subr.bf16.mxu0 %v6081_v3  ;;  %2312 = vmatpush1.bf16.msra.mxu1 %v5877_v61 }
 0x480   :  { %2313 = vmatprep.subr.bf16.mxu1 %v5880_v13 }
 0x482   :  { %2223 = vmatpush1.bf16.msra.mxu0 %v6086_v22 }
 0x483   :  { %2224 = vmatprep.subr.bf16.mxu0 %v6089_v63  ;;  %2314 = vmatpush1.bf16.msra.mxu1 %v5885_v26 }
 0x484   :  { %2315 = vmatprep.subr.bf16.mxu1 %v5888_v44 }
 0x486   :  { %2225 = vmatpush1.bf16.msra.mxu0 %v6094_v1 }
 0x487   :  { %2226 = vmatprep.subr.bf16.mxu0 %v6097_v25  ;;  %2316 = vmatpush1.bf16.msra.mxu1 %v5893_v19 }
 0x488   :  { %2317 = vmatprep.subr.bf16.mxu1 %v7243_v47 }
 0x48a   :  { %2227 = vmatpush1.bf16.msra.mxu0 %v7244_v10 }
 0x48b   :  { %2228 = vmatprep.subr.bf16.mxu0 %v7245_v5  ;;  %2318 = vmatpush1.bf16.msra.mxu1 %v7246_v31 }
 0x48c   :  { %2319 = vmatprep.subr.bf16.mxu1 %v7247_v30 }
 0x48e   :  { %2229 = vmatpush1.bf16.msra.mxu0 %v6273_v4 }
 0x48f   :  { %2230 = vmatprep.subr.bf16.mxu0 %v6276_v28  ;;  %2320 = vmatpush1.bf16.msra.mxu1 %v7199_v35  ;;  %v7300_v35 = vld [vmem:[#allocation53_spill] sm:$0xff] }
 0x490   :  { %2321 = vmatprep.subr.bf16.mxu1 %v7200_v58 }
 0x492   :  { %2231 = vmatpush1.bf16.msra.mxu0 %v6281_v23  ;;  %v7299_v23 = vld [vmem:[#allocation52_spill] sm:$0xff] }
 0x493   :  { %2232 = vmatprep.subr.bf16.mxu0 %v6284_v52  ;;  %2322 = vmatpush1.bf16.msra.mxu1 %v7252_v48  ;;  %v7266_v48 = vld [vmem:[#allocation31_spill] sm:$0xff] }
 0x494   :  { %2323 = vmatprep.subr.bf16.mxu1 %v7253_v20  ;;  %v7260_v20 = vld [vmem:[#allocation26_spill] sm:$0xff]  ;;  %v7270_v52 = vld [vmem:[#allocation35_spill] sm:$0xff] }
 0x496   :  { %2233 = vmatpush1.bf16.msra.mxu0 %v6289_v41  ;;  %v6305_v41 = vld [vmem:[#allocation5 + $0x2e0] ss:$24 sps:$4 sm:$0xff]  }
 0x497   :  { %2234 = vmatprep.subr.bf16.mxu0 %v6292_v32  ;;  %2324 = vmatpush1.bf16.msra.mxu1 %v7207_v18  ;;  %7261 = vst [vmem:[#allocation99_spill] sm:$0xff] %v6305_v41  ;;  %v7262_v32 = vld [vmem:[#allocation27_spill] sm:$0xff]  ;;  %v7263_v18 = vld [vmem:[#allocation28_spill] sm:$0xff] }
 0x498   :  { %2325 = vmatprep.subr.bf16.mxu1 %v7256_v6  ;;  %v7264_v6 = vld [vmem:[#allocation29_spill] sm:$0xff] }
 0x49a   :  { %2235 = vmatpush1.bf16.msra.mxu0 %v6297_v36  ;;  %v7265_v36 = vld [vmem:[#allocation30_spill] sm:$0xff] }
 0x49b   :  { %2236 = vmatprep.subr.bf16.mxu0 %v6300_v14  ;;  %2326 = vmatpush1.bf16.msra.mxu1 %v7259_v60  ;;  %v7267_v14 = vld [vmem:[#allocation32_spill] sm:$0xff]  ;;  %v7268_v60 = vld [vmem:[#allocation33_spill] sm:$0xff] }
 0x49c   :  { %2327 = vmatprep.subr.bf16.mxu1 %v7260_v20  ;;  %v7269_v20 = vld [vmem:[#allocation34_spill] sm:$0xff] }
 0x49e   :  { %2237 = vmatpush1.bf16.msra.mxu0 %v6305_v41  ;;  %v7271_v41 = vld [vmem:[#allocation36_spill] sm:$0xff] }
 0x49f   :  { %2338 = vmatprep.subr.bf16.mxu0 %v7262_v32  ;;  %2328 = vmatpush1.bf16.msra.mxu1 %v7263_v18  ;;  %v7272_v32 = vld [vmem:[#allocation37_spill] sm:$0xff]  ;;  %v7273_v18 = vld [vmem:[#allocation44_spill] sm:$0xff] }
 0x4a0   :  { %2379 = vmatprep.subr.bf16.mxu1 %v7264_v6  ;;  %v7274_v6 = vld [vmem:[#allocation82_spill] sm:$0xff] }
 0x4a1   :  { %2239 = vmatmul.mubr.bf16.vlgmr.msra.gmra.mrb[52].mxu0 %v6219_v8  ;;  %v7275_v8 = vld [vmem:[#allocation38_spill] sm:$0xff] }
 0x4a2   :  { %2339 = vmatpush1.bf16.msra.mxu0 %v7265_v36  ;;  %v7276_v36 = vld [vmem:[#allocation39_spill] sm:$0xff] }
 0x4a3   :  { %2340 = vmatprep.subr.bf16.mxu0 %v7266_v48  ;;  %v7277_v48 = vld [vmem:[#allocation40_spill] sm:$0xff] }
 0x4a6   :  { %2341 = vmatpush1.bf16.msra.mxu0 %v7267_v14  ;;  %v7278_v14 = vld [vmem:[#allocation41_spill] sm:$0xff] }
 0x4a7   :  { %2342 = vmatprep.subr.bf16.mxu0 %v7268_v60  ;;  %v7279_v60 = vld [vmem:[#allocation42_spill] sm:$0xff] }
 0x4aa   :  { %2343 = vmatpush1.bf16.msra.mxu0 %v7269_v20  ;;  %v7280_v20 = vld [vmem:[#allocation43_spill] sm:$0xff] }
 0x4ab   :  { %2344 = vmatprep.subr.bf16.mxu0 %v7270_v52  ;;  %v7281_v52 = vld [vmem:[#allocation45_spill] sm:$0xff] }
 0x4ae   :  { %2345 = vmatpush1.bf16.msra.mxu0 %v7271_v41  ;;  %v7282_v41 = vld [vmem:[#allocation85_spill] sm:$0xff] }
 0x4af   :  { %2346 = vmatprep.subr.bf16.mxu0 %v7272_v32  ;;  %v7283_v32 = vld [vmem:[#allocation86_spill] sm:$0xff] }
 0x4b2   :  { %2347 = vmatpush1.bf16.msra.mxu0 %v7273_v18  ;;  %v7284_v18 = vld [vmem:[#allocation87_spill] sm:$0xff] }
 0x4b3   :  { %2348 = vmatprep.subr.bf16.mxu0 %v7274_v6  ;;  %v7285_v6 = vld [vmem:[#allocation88_spill] sm:$0xff] }
 0x4b6   :  { %2349 = vmatpush1.bf16.msra.mxu0 %v7275_v8  ;;  %v7286_v8 = vld [vmem:[#allocation89_spill] sm:$0xff] }
 0x4b7   :  { %2350 = vmatprep.subr.bf16.mxu0 %v7276_v36  ;;  %v7287_v36 = vld [vmem:[#allocation90_spill] sm:$0xff] }
 0x4ba   :  { %2351 = vmatpush1.bf16.msra.mxu0 %v7277_v48  ;;  %v7288_v48 = vld [vmem:[#allocation91_spill] sm:$0xff] }
 0x4bb   :  { %2352 = vmatprep.subr.bf16.mxu0 %v7278_v14  ;;  %v7289_v14 = vld [vmem:[#allocation92_spill] sm:$0xff] }
 0x4be   :  { %2353 = vmatpush1.bf16.msra.mxu0 %v7279_v60  ;;  %v7290_v60 = vld [vmem:[#allocation93_spill] sm:$0xff] }
 0x4bf   :  { %2354 = vmatprep.subr.bf16.mxu0 %v7280_v20  ;;  %v7291_v20 = vld [vmem:[#allocation94_spill] sm:$0xff] }
 0x4c2   :  { %2355 = vmatpush1.bf16.msra.mxu0 %v7281_v52  ;;  %v7292_v52 = vld [vmem:[#allocation95_spill] sm:$0xff] }
 0x4c3   :  { %2356 = vmatprep.subr.bf16.mxu0 %v7282_v41  ;;  %v7293_v41 = vld [vmem:[#allocation96_spill] sm:$0xff] }
 0x4c6   :  { %2357 = vmatpush1.bf16.msra.mxu0 %v7283_v32  ;;  %v6341_v32 = vld [vmem:[#allocation5 + $0x2dc] ss:$24 sps:$4 sm:$0xff]  }
 0x4c7   :  { %2358 = vmatprep.subr.bf16.mxu0 %v7284_v18  ;;  %7294 = vst [vmem:[#allocation100_spill] sm:$0xff] %v6341_v32 }
 0x4ca   :  { %2359 = vmatpush1.bf16.msra.mxu0 %v7285_v6  ;;  %v6344_v6 = vld [vmem:[#allocation5 + $0x2d8] ss:$24 sps:$4 sm:$0xff]  }
 0x4cb   :  { %2360 = vmatprep.subr.bf16.mxu0 %v7286_v8  ;;  %7295 = vst [vmem:[#allocation101_spill] sm:$0xff] %v6344_v6  ;;  %v7298_v8 = vld [vmem:[#allocation51_spill] sm:$0xff] }
 0x4ce   :  { %2361 = vmatpush1.bf16.msra.mxu0 %v7287_v36  ;;  %v6347_v36 = vld [vmem:[#allocation5 + $0x4] ss:$24 sps:$4 sm:$0xff]  }
 0x4cf   :  { %2362 = vmatprep.subr.bf16.mxu0 %v7288_v48  ;;  %7296 = vst [vmem:[#allocation102_spill] sm:$0xff] %v6347_v36  ;;  %v7297_v48 = vld [vmem:[#allocation50_spill] sm:$0xff] }
 0x4d2   :  { %2363 = vmatpush1.bf16.msra.mxu0 %v7289_v14 }
 0x4d3   :  { %2364 = vmatprep.subr.bf16.mxu0 %v7290_v60 }
 0x4d6   :  { %2365 = vmatpush1.bf16.msra.mxu0 %v7291_v20 }
 0x4d7   :  { %2366 = vmatprep.subr.bf16.mxu0 %v7292_v52 }
 0x4da   :  { %2367 = vmatpush1.bf16.msra.mxu0 %v7293_v41 }
 0x4db   :  { %2368 = vmatprep.subr.bf16.mxu0 %v6341_v32 }
 0x4de   :  { %2369 = vmatpush1.bf16.msra.mxu0 %v6344_v6 }
 0x4df   :  { %2470 = vmatprep.subr.bf16.mxu0 %v6347_v36 }
 0x534   :  { %v2158_v14 = vpop.f32.mrb[48].mxu0  ;;  %v2199_v60 = vpop.f32.mrb[36].mxu1 }
 0x535   :  { %v2247_v20 = vadd.f32 %v2158_v14, %v7297_v48  ;;  %v2261_v52 = vadd.f32 %v2199_v60, %v7298_v8  ;;  %v2160_v18 = vpop.f32.mrb[49].mxu0  ;;  %v2201_v41 = vpop.f32.mrb[37].mxu1 }
 0x536   :  { %v2248_v58 = vadd.f32 %v2160_v18, %v7299_v23  ;;  %v2262_v32 = vadd.f32 %v2201_v41, %v7300_v35  ;;  %v2162_v28 = vpop.f32.mrb[50].mxu0  ;;  %v2203_v4 = vpop.f32.mrb[38].mxu1 }
 0x537   :  { %v2163_v30 = vpop.f32.mrb[51].mxu0  ;;  %v2204_v6 = vpop.f32.mrb[39].mxu1  ;;  %v4042_v31 = vmul.f32 -1.442695, %v2247_v20  ;;  %v4044_v47 = vmul.f32 -1.442695, %v2261_v52 }
 0x538   :  { %v4043_v5 = vmul.f32 -1.442695, %v2248_v58  ;;  %v4045_v48 = vmul.f32 -1.442695, %v2262_v32 }
 0x539   :  { %4702 = vpow2.f32 %v4042_v31 }
 0x53a   :  { %4704 = vpow2.f32 %v4043_v5 }
 0x53b   :  { %4706 = vpow2.f32 %v4044_v47 }
 0x53c   :  { %4708 = vpow2.f32 %v4045_v48 }
 0x543   :  { %v4703_v36 = vpop.eup %4702 }
 0x544   :  { %v4705_v10 = vpop.eup %4704  ;;  %v2255_v14 = vadd.f32 1.0, %v4703_v36  ;;  %v7302_v36 = vld [vmem:[#allocation73_spill] sm:$0xff] }
 0x545   :  { %v2256_v60 = vadd.f32 1.0, %v4705_v10  ;;  %v4707_v18 = vpop.eup %4706  ;;  %v7301_v10 = vld [vmem:[#allocation72_spill] sm:$0xff] }
 0x546   :  { %4710 = vrcp.f32 %v2255_v14  ;;  %v4709_v28 = vpop.eup %4708  ;;  %v2269_v32 = vadd.f32 1.0, %v4707_v18 }
 0x547   :  { %4712 = vrcp.f32 %v2256_v60  ;;  %v2270_v6 = vadd.f32 1.0, %v4709_v28 }
 0x550   :  { %v4711_v23 = vpop.eup %4710 }
 0x551   :  { %v4713_v31 = vpop.eup %4712 }
 0x574   :  { %v2240_v35 = vpop.f32.mrb[52].mxu0 }
 0x575   :  { %v2275_v30 = vadd.f32 %v2240_v35, %v5796_v0  ;;  %v2242_v4 = vpop.f32.mrb[53].mxu0 }
 0x576   :  { %v2276_v58 = vadd.f32 %v2242_v4, %v5799_v16  ;;  %v2244_v5 = vpop.f32.mrb[54].mxu0 }
 0x577   :  { %v2277_v20 = vmul.f32 %v4711_v23, %v2275_v30  ;;  %v2245_v52 = vpop.f32.mrb[55].mxu0 }
 0x578   :  { %v2278_v41 = vmul.f32 %v4713_v31, %v2276_v58  ;;  %v7323_v52 = vld [vmem:[#allocation26_spill] sm:$0xff] }
 0x579   :  { %v2279_v47 = vadd.f32 %v2277_v20, %v7301_v10  ;;  %v7322_v20 = vld [vmem:[#allocation25_spill] sm:$0xff]  ;;  %v7326_v10 = vld [vmem:[#allocation28_spill] sm:$0xff] }
 0x57a   :  { %v2280_v8 = vadd.f32 %v2278_v41, %v7302_v36  ;;  %v7324_v41 = vld [vmem:[#allocation99_spill] sm:$0xff] }
 0x57b   :  { %4714 = vtanh.f32 %v2279_v47  ;;  %v7327_v47 = vld [vmem:[#allocation29_spill] sm:$0xff]  ;;  %v7329_v36 = vld [vmem:[#allocation31_spill] sm:$0xff] }
 0x57c   :  { %4716 = vtanh.f32 %v2280_v8  ;;  %v7330_v8 = vld [vmem:[#allocation32_spill] sm:$0xff] }
 0x57d   :  { %4718 = vrcp.f32 %v2269_v32  ;;  %v7325_v32 = vld [vmem:[#allocation27_spill] sm:$0xff] }
 0x57e   :  { %4720 = vrcp.f32 %v2270_v6  ;;  %v7328_v6 = vld [vmem:[#allocation30_spill] sm:$0xff] }
 0x585   :  { %v4715_v48 = vpop.eup %4714 }
 0x586   :  { %v4717_v14 = vpop.eup %4716  ;;  %v2283_v60 = vsub.f32 %v6211_v38, %v4715_v48  ;;  %v7320_v38 = vld [vmem:[#allocation97_spill] sm:$0xff] }
 0x587   :  { %v4719_v35 = vpop.eup %4718  ;;  %v2284_v4 = vsub.f32 %v6213_v2, %v4717_v14  ;;  %v7321_v2 = vld [vmem:[#allocation98_spill] sm:$0xff] }
 0x588   :  { %v4721_v30 = vpop.eup %4720  ;;  %v2285_v23 = vmul.f32 %v4719_v35, %v2283_v60  ;;  %v7333_v60 = vld [vmem:[#allocation35_spill] sm:$0xff]  ;;  %v7334_v35 = vld [vmem:[#allocation36_spill] sm:$0xff] }
 0x589   :  { %v2286_v58 = vmul.f32 %v4721_v30, %v2284_v4  ;;  %v7335_v4 = vld [vmem:[#allocation37_spill] sm:$0xff]  ;;  %v7336_v30 = vld [vmem:[#allocation44_spill] sm:$0xff] }
 0x58a   :  { %v6360_v18 = vadd.f32 %v4715_v48, %v2285_v23  ;;  %v7331_v48 = vld [vmem:[#allocation33_spill] sm:$0xff]  ;;  %v7337_v23 = vld [vmem:[#allocation82_spill] sm:$0xff] }
 0x58b   :  { %v6362_v5 = vadd.f32 %v4717_v14, %v2286_v58  ;;  %v7332_v14 = vld [vmem:[#allocation34_spill] sm:$0xff] }
 0x58c   :  { %v6368_v31 = vpack.c.bf16 %v6360_v18, %v6360_v18  ;;  %v7338_v58 = vld [vmem:[#allocation38_spill] sm:$0xff] }
 0x58d   :  { %v2296_v28 = vpack.c.bf16 %v6362_v5, %v6362_v5 }
 0x58f   :  { %2329 = vmatprep.mubr.bf16.mxu1 %v2296_v28  ;;  %2370 = vmatprep.mubr.bf16.mxu0 %v2296_v28 }
 0x590   :  { %2330 = vmatmul.mubr.bf16.vlgmr.msra.gmra.mrb[40].mxu1 %v6368_v31  ;;  %2371 = vmatmul.mubr.bf16.vlgmr.msra.gmra.mrb[56].mxu0 %v6368_v31 }
 0x591   :  { %2380 = vmatpush1.bf16.msra.mxu1 %v5823_v39  ;;  %2411 = vmatprep.mubr.bf16.mxu1 %v2296_v28  ;;  %v7303_v39 = vld [vmem:[#allocation16_spill] sm:$0xff]  ;;  %v7339_v28 = vld [vmem:[#allocation39_spill] sm:$0xff] }
 0x592   :  { %2381 = vmatprep.subr.bf16.mxu1 %v6025_v34  ;;  %2471 = vmatpush1.bf16.msra.mxu0 %v6225_v62 }
 0x593   :  { %2472 = vmatprep.subr.bf16.mxu0 %v6228_v37 }
 0x595   :  { %2382 = vmatpush1.bf16.msra.mxu1 %v6030_v11 }
 0x596   :  { %2383 = vmatprep.subr.bf16.mxu1 %v6033_v15  ;;  %2473 = vmatpush1.bf16.msra.mxu0 %v6233_v46 }
 0x597   :  { %2474 = vmatprep.subr.bf16.mxu0 %v5832_v27  ;;  %v7304_v27 = vld [vmem:[#allocation83_spill] sm:$0xff] }
 0x599   :  { %2384 = vmatpush1.bf16.msra.mxu1 %v6038_v42 }
 0x59a   :  { %2385 = vmatprep.subr.bf16.mxu1 %v6041_v55  ;;  %2475 = vmatpush1.bf16.msra.mxu0 %v5837_v17  ;;  %v7305_v17 = vld [vmem:[#allocation84_spill] sm:$0xff] }
 0x59b   :  { %2476 = vmatprep.subr.bf16.mxu0 %v5840_v54  ;;  %v7306_v54 = vld [vmem:[#allocation17_spill] sm:$0xff] }
 0x59d   :  { %2386 = vmatpush1.bf16.msra.mxu1 %v6046_v9 }
 0x59e   :  { %2387 = vmatprep.subr.bf16.mxu1 %v6049_v12  ;;  %2477 = vmatpush1.bf16.msra.mxu0 %v5845_v21  ;;  %v7307_v21 = vld [vmem:[#allocation18_spill] sm:$0xff] }
 0x59f   :  { %2478 = vmatprep.subr.bf16.mxu0 %v5848_v49  ;;  %v7308_v49 = vld [vmem:[#allocation46_spill] sm:$0xff] }
 0x5a1   :  { %2388 = vmatpush1.bf16.msra.mxu1 %v6054_v7 }
 0x5a2   :  { %2389 = vmatprep.subr.bf16.mxu1 %v6057_v57  ;;  %2479 = vmatpush1.bf16.msra.mxu0 %v5853_v29  ;;  %v7309_v29 = vld [vmem:[#allocation47_spill] sm:$0xff] }
 0x5a3   :  { %2480 = vmatprep.subr.bf16.mxu0 %v5856_v43  ;;  %v7310_v43 = vld [vmem:[#allocation19_spill] sm:$0xff] }
 0x5a5   :  { %2390 = vmatpush1.bf16.msra.mxu1 %v6062_v33 }
 0x5a6   :  { %2391 = vmatprep.subr.bf16.mxu1 %v6065_v45  ;;  %2481 = vmatpush1.bf16.msra.mxu0 %v5861_v24  ;;  %v7311_v24 = vld [vmem:[#allocation20_spill] sm:$0xff] }
 0x5a7   :  { %2482 = vmatprep.subr.bf16.mxu0 %v5864_v53  ;;  %v7312_v53 = vld [vmem:[#allocation48_spill] sm:$0xff] }
 0x5a9   :  { %2392 = vmatpush1.bf16.msra.mxu1 %v6070_v59 }
 0x5aa   :  { %2393 = vmatprep.subr.bf16.mxu1 %v6073_v51  ;;  %2483 = vmatpush1.bf16.msra.mxu0 %v5869_v50  ;;  %v7313_v50 = vld [vmem:[#allocation49_spill] sm:$0xff] }
 0x5ab   :  { %2484 = vmatprep.subr.bf16.mxu0 %v5872_v56  ;;  %v7314_v56 = vld [vmem:[#allocation21_spill] sm:$0xff] }
 0x5ad   :  { %2394 = vmatpush1.bf16.msra.mxu1 %v6078_v40 }
 0x5ae   :  { %2395 = vmatprep.subr.bf16.mxu1 %v6081_v3  ;;  %2485 = vmatpush1.bf16.msra.mxu0 %v5877_v61  ;;  %v7315_v61 = vld [vmem:[#allocation22_spill] sm:$0xff] }
 0x5af   :  { %2486 = vmatprep.subr.bf16.mxu0 %v5880_v13  ;;  %v7316_v13 = vld [vmem:[#allocation70_spill] sm:$0xff] }
 0x5b1   :  { %2396 = vmatpush1.bf16.msra.mxu1 %v6086_v22 }
 0x5b2   :  { %2397 = vmatprep.subr.bf16.mxu1 %v6089_v63  ;;  %2487 = vmatpush1.bf16.msra.mxu0 %v5885_v26  ;;  %v7317_v26 = vld [vmem:[#allocation71_spill] sm:$0xff] }
 0x5b3   :  { %2488 = vmatprep.subr.bf16.mxu0 %v5888_v44  ;;  %v7318_v44 = vld [vmem:[#allocation23_spill] sm:$0xff] }
 0x5b5   :  { %2398 = vmatpush1.bf16.msra.mxu1 %v6094_v1 }
 0x5b6   :  { %2399 = vmatprep.subr.bf16.mxu1 %v6097_v25  ;;  %2489 = vmatpush1.bf16.msra.mxu0 %v5893_v19  ;;  %v7319_v19 = vld [vmem:[#allocation24_spill] sm:$0xff] }
 0x5b7   :  { %2490 = vmatprep.subr.bf16.mxu0 %v7303_v39  ;;  %v7341_v39 = vld [vmem:[#allocation41_spill] sm:$0xff] }
 0x5b9   :  { %2400 = vmatpush1.bf16.msra.mxu1 %v7304_v27 }
 0x5ba   :  { %2401 = vmatprep.subr.bf16.mxu1 %v7305_v17  ;;  %2491 = vmatpush1.bf16.msra.mxu0 %v7306_v54  ;;  %v7342_v54 = vld [vmem:[#allocation42_spill] sm:$0xff] }
 0x5bb   :  { %2492 = vmatprep.subr.bf16.mxu0 %v7307_v21  ;;  %v7343_v21 = vld [vmem:[#allocation43_spill] sm:$0xff] }
 0x5bd   :  { %2402 = vmatpush1.bf16.msra.mxu1 %v7308_v49 }
 0x5be   :  { %2403 = vmatprep.subr.bf16.mxu1 %v7309_v29  ;;  %2493 = vmatpush1.bf16.msra.mxu0 %v7310_v43  ;;  %v7344_v43 = vld [vmem:[#allocation45_spill] sm:$0xff] }
 0x5bf   :  { %2494 = vmatprep.subr.bf16.mxu0 %v7311_v24  ;;  %v7345_v24 = vld [vmem:[#allocation85_spill] sm:$0xff] }
 0x5c1   :  { %2404 = vmatpush1.bf16.msra.mxu1 %v7312_v53 }
 0x5c2   :  { %2405 = vmatprep.subr.bf16.mxu1 %v7313_v50  ;;  %2495 = vmatpush1.bf16.msra.mxu0 %v7314_v56  ;;  %v7346_v56 = vld [vmem:[#allocation86_spill] sm:$0xff] }
 0x5c3   :  { %2496 = vmatprep.subr.bf16.mxu0 %v7315_v61  ;;  %v7347_v61 = vld [vmem:[#allocation87_spill] sm:$0xff] }
 0x5c5   :  { %2406 = vmatpush1.bf16.msra.mxu1 %v7316_v13 }
 0x5c6   :  { %2407 = vmatprep.subr.bf16.mxu1 %v7317_v26  ;;  %2497 = vmatpush1.bf16.msra.mxu0 %v7318_v44  ;;  %v7348_v44 = vld [vmem:[#allocation88_spill] sm:$0xff] }
 0x5c7   :  { %2498 = vmatprep.subr.bf16.mxu0 %v7319_v19  ;;  %v7349_v19 = vld [vmem:[#allocation89_spill] sm:$0xff] }
 0x5c9   :  { %2408 = vmatpush1.bf16.msra.mxu1 %v7320_v38 }
 0x5ca   :  { %2409 = vmatprep.subr.bf16.mxu1 %v7321_v2  ;;  %2499 = vmatpush1.bf16.msra.mxu0 %v7322_v20  ;;  %v7350_v20 = vld [vmem:[#allocation90_spill] sm:$0xff] }
 0x5cb   :  { %2500 = vmatprep.subr.bf16.mxu0 %v7323_v52  ;;  %v7351_v52 = vld [vmem:[#allocation91_spill] sm:$0xff] }
 0x5cd   :  { %2410 = vmatpush1.bf16.msra.mxu1 %v7324_v41 }
 0x5ce   :  { %2511 = vmatprep.subr.bf16.mxu1 %v7325_v32  ;;  %2501 = vmatpush1.bf16.msra.mxu0 %v7326_v10  ;;  %v7352_v32 = vld [vmem:[#allocation92_spill] sm:$0xff]  ;;  %v7353_v10 = vld [vmem:[#allocation93_spill] sm:$0xff] }
 0x5cf   :  { %2552 = vmatprep.subr.bf16.mxu0 %v7327_v47  ;;  %v7354_v47 = vld [vmem:[#allocation94_spill] sm:$0xff] }
 0x5d0   :  { %2412 = vmatmul.mubr.bf16.vlgmr.msra.gmra.mrb[44].mxu1 %v6368_v31  ;;  %v7340_v31 = vld [vmem:[#allocation40_spill] sm:$0xff] }
 0x5d1   :  { %2512 = vmatpush1.bf16.msra.mxu1 %v7328_v6  ;;  %v7355_v6 = vld [vmem:[#allocation95_spill] sm:$0xff] }
 0x5d2   :  { %2513 = vmatprep.subr.bf16.mxu1 %v7329_v36  ;;  %v7356_v36 = vld [vmem:[#allocation96_spill] sm:$0xff] }
 0x5d5   :  { %2514 = vmatpush1.bf16.msra.mxu1 %v7330_v8  ;;  %v7357_v8 = vld [vmem:[#allocation100_spill] sm:$0xff] }
 0x5d6   :  { %2515 = vmatprep.subr.bf16.mxu1 %v7331_v48  ;;  %v7358_v48 = vld [vmem:[#allocation101_spill] sm:$0xff] }
 0x5d9   :  { %2516 = vmatpush1.bf16.msra.mxu1 %v7332_v14  ;;  %v7359_v14 = vld [vmem:[#allocation102_spill] sm:$0xff] }
 0x5da   :  { %2517 = vmatprep.subr.bf16.mxu1 %v7333_v60 }
 0x5dd   :  { %2518 = vmatpush1.bf16.msra.mxu1 %v7334_v35 }
 0x5de   :  { %2519 = vmatprep.subr.bf16.mxu1 %v7335_v4  ;;  %v7360_v4 = vld [vmem:[#allocation54_spill] sm:$0xff] }
 0x5e1   :  { %2520 = vmatpush1.bf16.msra.mxu1 %v7336_v30 }
 0x5e2   :  { %2521 = vmatprep.subr.bf16.mxu1 %v7337_v23  ;;  %v7361_v23 = vld [vmem:[#allocation55_spill] sm:$0xff] }
 0x5e5   :  { %2522 = vmatpush1.bf16.msra.mxu1 %v7338_v58 }
 0x5e6   :  { %2523 = vmatprep.subr.bf16.mxu1 %v7339_v28 }
 0x5e9   :  { %2524 = vmatpush1.bf16.msra.mxu1 %v7340_v31 }
 0x5ea   :  { %2525 = vmatprep.subr.bf16.mxu1 %v7341_v39 }
 0x5ed   :  { %2526 = vmatpush1.bf16.msra.mxu1 %v7342_v54 }
 0x5ee   :  { %2527 = vmatprep.subr.bf16.mxu1 %v7343_v21 }
 0x5f1   :  { %2528 = vmatpush1.bf16.msra.mxu1 %v7344_v43 }
 0x5f2   :  { %2529 = vmatprep.subr.bf16.mxu1 %v7345_v24 }
 0x5f5   :  { %2530 = vmatpush1.bf16.msra.mxu1 %v7346_v56 }
 0x5f6   :  { %2531 = vmatprep.subr.bf16.mxu1 %v7347_v61 }
 0x5f9   :  { %2532 = vmatpush1.bf16.msra.mxu1 %v7348_v44 }
 0x5fa   :  { %2533 = vmatprep.subr.bf16.mxu1 %v7349_v19  ;;  %v7363_v19 = vld [vmem:[#allocation57_spill] sm:$0xff] }
 0x5fd   :  { %2534 = vmatpush1.bf16.msra.mxu1 %v7350_v20  ;;  %v7362_v20 = vld [vmem:[#allocation56_spill] sm:$0xff] }
 0x5fe   :  { %2535 = vmatprep.subr.bf16.mxu1 %v7351_v52 }
 0x601   :  { %2536 = vmatpush1.bf16.msra.mxu1 %v7352_v32 }
 0x602   :  { %2537 = vmatprep.subr.bf16.mxu1 %v7353_v10 }
 0x605   :  { %2538 = vmatpush1.bf16.msra.mxu1 %v7354_v47 }
 0x606   :  { %2539 = vmatprep.subr.bf16.mxu1 %v7355_v6 }
 0x609   :  { %2540 = vmatpush1.bf16.msra.mxu1 %v7356_v36 }
 0x60a   :  { %2541 = vmatprep.subr.bf16.mxu1 %v7357_v8 }
 0x60d   :  { %2542 = vmatpush1.bf16.msra.mxu1 %v7358_v48 }
 0x60e   :  { %2643 = vmatprep.subr.bf16.mxu1 %v7359_v14 }
 0x663   :  { %v2331_v60 = vpop.f32.mrb[40].mxu1  ;;  %v2372_v35 = vpop.f32.mrb[56].mxu0 }
 0x664   :  { %v2420_v30 = vadd.f32 %v2331_v60, %v7360_v4  ;;  %v2434_v32 = vadd.f32 %v2372_v35, %v7361_v23  ;;  %v2333_v52 = vpop.f32.mrb[41].mxu1  ;;  %v2374_v10 = vpop.f32.mrb[57].mxu0 }
 0x665   :  { %v2421_v47 = vadd.f32 %v2333_v52, %v7362_v20  ;;  %v2435_v6 = vadd.f32 %v2374_v10, %v7363_v19  ;;  %v2335_v44 = vpop.f32.mrb[42].mxu1  ;;  %v2376_v36 = vpop.f32.mrb[58].mxu0 }
 0x666   :  { %v2336_v61 = vpop.f32.mrb[43].mxu1  ;;  %v2377_v8 = vpop.f32.mrb[59].mxu0  ;;  %v4046_v56 = vmul.f32 -1.442695, %v2420_v30  ;;  %v4048_v43 = vmul.f32 -1.442695, %v2434_v32 }
 0x667   :  { %v4047_v48 = vmul.f32 -1.442695, %v2421_v47  ;;  %v4049_v60 = vmul.f32 -1.442695, %v2435_v6  ;;  %v7365_v30 = vld [vmem:[#allocation75_spill] sm:$0xff] }
 0x668   :  { %4722 = vpow2.f32 %v4046_v56 }
 0x669   :  { %4724 = vpow2.f32 %v4047_v48 }
 0x66a   :  { %4726 = vpow2.f32 %v4048_v43 }
 0x66b   :  { %4728 = vpow2.f32 %v4049_v60 }
 0x672   :  { %v4723_v14 = vpop.eup %4722 }
 0x673   :  { %v4725_v24 = vpop.eup %4724  ;;  %v2428_v4 = vadd.f32 1.0, %v4723_v14 }
 0x674   :  { %v2429_v35 = vadd.f32 1.0, %v4725_v24  ;;  %v4727_v20 = vpop.eup %4726  ;;  %v7364_v24 = vld [vmem:[#allocation74_spill] sm:$0xff] }
 0x675   :  { %4730 = vrcp.f32 %v2428_v4  ;;  %v4729_v44 = vpop.eup %4728  ;;  %v2442_v48 = vadd.f32 1.0, %v4727_v20 }
 0x676   :  { %4732 = vrcp.f32 %v2429_v35  ;;  %v2443_v14 = vadd.f32 1.0, %v4729_v44 }
 0x67f   :  { %v4731_v10 = vpop.eup %4730 }
 0x680   :  { %v4733_v36 = vpop.eup %4732 }
 0x6a3   :  { %v2413_v19 = vpop.f32.mrb[44].mxu1 }
 0x6a4   :  { %v2448_v61 = vadd.f32 %v2413_v19, %v5796_v0  ;;  %v2415_v52 = vpop.f32.mrb[45].mxu1 }
 0x6a5   :  { %v2449_v56 = vadd.f32 %v2415_v52, %v5799_v16  ;;  %v2417_v47 = vpop.f32.mrb[46].mxu1 }
 0x6a6   :  { %v2450_v8 = vmul.f32 %v4731_v10, %v2448_v61  ;;  %v2418_v32 = vpop.f32.mrb[47].mxu1 }
 0x6a7   :  { %v2451_v6 = vmul.f32 %v4733_v36, %v2449_v56  ;;  %v6593_v32 = vld [vmem:[#allocation5 + $0x270] ss:$24 sps:$4 sm:$0xff]  }
 0x6a8   :  { %v2452_v43 = vadd.f32 %v2450_v8, %v7364_v24  ;;  %v6505_v8 = vld [vmem:[#allocation5 + $0x60] ss:$24 sps:$4 sm:$0xff]   ;;  %v6604_v24 = vld [vmem:[#allocation5 + $0x2d4] ss:$24 sps:$4 sm:$0xff]  }
 0x6a9   :  { %v2453_v23 = vadd.f32 %v2451_v6, %v7365_v30  ;;  %v6596_v6 = vld [vmem:[#allocation5 + $0x2a4] ss:$24 sps:$4 sm:$0xff]   ;;  %v6614_v30 = vld [vmem:[#allocation5 + $0x14] ss:$24 sps:$4 sm:$0xff]  }
 0x6aa   :  { %4734 = vtanh.f32 %v2452_v43  ;;  %v6608_v43 = vld [vmem:[#allocation5 + $0xc] ss:$24 sps:$4 sm:$0xff]   ;;  %7368 = vst [vmem:[#allocation52_spill] sm:$0xff] %v6614_v30 }
 0x6ab   :  { %4736 = vtanh.f32 %v2453_v23  ;;  %7366 = vst [vmem:[#allocation50_spill] sm:$0xff] %v6608_v43  ;;  %v6618_v23 = vld [vmem:[#allocation5 + $0x8] ss:$24 sps:$4 sm:$0xff]  }
 0x6ac   :  { %4738 = vrcp.f32 %v2442_v48  ;;  %v6601_v48 = vld [vmem:[#allocation5 + $0x2a0] ss:$24 sps:$4 sm:$0xff]   ;;  %7369 = vst [vmem:[#allocation53_spill] sm:$0xff] %v6618_v23 }
 0x6ad   :  { %4740 = vrcp.f32 %v2443_v14  ;;  %v6611_v14 = vld [vmem:[#allocation5 + $0x2d0] ss:$24 sps:$4 sm:$0xff]  }
 0x6ae   :  { %7367 = vst [vmem:[#allocation51_spill] sm:$0xff] %v6611_v14 }
 0x6b4   :  { %v4735_v60 = vpop.eup %4734 }
 0x6b5   :  { %v4737_v4 = vpop.eup %4736  ;;  %v2456_v35 = vsub.f32 %v6360_v18, %v4735_v60  ;;  %v6491_v18 = vld [vmem:[#allocation5 + $0x10] ss:$24 sps:$4 sm:$0xff]  }
 0x6b6   :  { %v4739_v19 = vpop.eup %4738  ;;  %v2457_v52 = vsub.f32 %v6362_v5, %v4737_v4  ;;  %v6500_v5 = vld [vmem:[#allocation5 + $0x64] ss:$24 sps:$4 sm:$0xff]  }
 0x6b7   :  { %v4741_v61 = vpop.eup %4740  ;;  %v2458_v10 = vmul.f32 %v4739_v19, %v2456_v35  ;;  %v6627_v35 = vld [vmem:[#allocation5 + $0x6c] ss:$24 sps:$4 sm:$0xff]   ;;  %v6630_v19 = vld [vmem:[#allocation5 + $0x68] ss:$24 sps:$4 sm:$0xff]  }
 0x6b8   :  { %v2459_v56 = vmul.f32 %v4741_v61, %v2457_v52  ;;  %7372 = vst [vmem:[#allocation16_spill] sm:$0xff] %v6627_v35  ;;  %7373 = vst [vmem:[#allocation83_spill] sm:$0xff] %v6630_v19  ;;  %v6633_v52 = vld [vmem:[#allocation5 + $0x9c] ss:$24 sps:$4 sm:$0xff]   ;;  %v6636_v61 = vld [vmem:[#allocation5 + $0x98] ss:$24 sps:$4 sm:$0xff]  }
 0x6b9   :  { %v6479_v20 = vadd.f32 %v4735_v60, %v2458_v10  ;;  %v6621_v60 = vld [vmem:[#allocation5 + $0x3c] ss:$24 sps:$4 sm:$0xff]   ;;  %7374 = vst [vmem:[#allocation84_spill] sm:$0xff] %v6633_v52  ;;  %7375 = vst [vmem:[#allocation17_spill] sm:$0xff] %v6636_v61  ;;  %v6639_v10 = vld [vmem:[#allocation5 + $0xcc] ss:$24 sps:$4 sm:$0xff]  }
 0x6ba   :  { %v6481_v47 = vadd.f32 %v4737_v4, %v2459_v56  ;;  %7370 = vst [vmem:[#allocation72_spill] sm:$0xff] %v6621_v60  ;;  %v6624_v4 = vld [vmem:[#allocation5 + $0x38] ss:$24 sps:$4 sm:$0xff]   ;;  %7376 = vst [vmem:[#allocation18_spill] sm:$0xff] %v6639_v10  ;;  %v6642_v56 = vld [vmem:[#allocation5 + $0xc8] ss:$24 sps:$4 sm:$0xff]  }
 0x6bb   :  { %v6487_v36 = vpack.c.bf16 %v6479_v20, %v6479_v20  ;;  %7371 = vst [vmem:[#allocation73_spill] sm:$0xff] %v6624_v4  ;;  %7377 = vst [vmem:[#allocation46_spill] sm:$0xff] %v6642_v56 }
 0x6bc   :  { %v2469_v44 = vpack.c.bf16 %v6481_v47, %v6481_v47 }
 0x6be   :  { %2502 = vmatprep.mubr.bf16.mxu0 %v2469_v44  ;;  %2543 = vmatprep.mubr.bf16.mxu1 %v2469_v44 }
 0x6bf   :  { %2503 = vmatmul.mubr.bf16.vlgmr.msra.gmra.mrb[60].mxu0 %v6487_v36  ;;  %2544 = vmatmul.mubr.bf16.vlgmr.msra.gmra.mrb[48].mxu1 %v6487_v36 }
 0x6c0   :  { %2553 = vmatpush1.bf16.msra.mxu0 %v6491_v18  ;;  %2584 = vmatprep.mubr.bf16.mxu0 %v2469_v44  ;;  %v6645_v44 = vld [vmem:[#allocation5 + $0xfc] ss:$24 sps:$4 sm:$0xff]  }
 0x6c1   :  { %2554 = vmatprep.subr.bf16.mxu0 %v6025_v34  ;;  %2644 = vmatpush1.bf16.msra.mxu1 %v6225_v62  ;;  %v6508_v34 = vld [vmem:[#allocation5 + $0x94] ss:$24 sps:$4 sm:$0xff]   ;;  %7378 = vst [vmem:[#allocation47_spill] sm:$0xff] %v6645_v44 }
 0x6c2   :  { %2645 = vmatprep.subr.bf16.mxu1 %v6228_v37 }
 0x6c4   :  { %2555 = vmatpush1.bf16.msra.mxu0 %v6030_v11  ;;  %v6513_v11 = vld [vmem:[#allocation5 + $0x90] ss:$24 sps:$4 sm:$0xff]  }
 0x6c5   :  { %2556 = vmatprep.subr.bf16.mxu0 %v6033_v15  ;;  %2646 = vmatpush1.bf16.msra.mxu1 %v6233_v46  ;;  %v6516_v15 = vld [vmem:[#allocation5 + $0xc4] ss:$24 sps:$4 sm:$0xff]  }
 0x6c6   :  { %2647 = vmatprep.subr.bf16.mxu1 %v6500_v5 }
 0x6c8   :  { %2557 = vmatpush1.bf16.msra.mxu0 %v6038_v42  ;;  %v6521_v42 = vld [vmem:[#allocation5 + $0xc0] ss:$24 sps:$4 sm:$0xff]  }
 0x6c9   :  { %2558 = vmatprep.subr.bf16.mxu0 %v6041_v55  ;;  %2648 = vmatpush1.bf16.msra.mxu1 %v6505_v8  ;;  %v6524_v55 = vld [vmem:[#allocation5 + $0xf4] ss:$24 sps:$4 sm:$0xff]  }
 0x6ca   :  { %2649 = vmatprep.subr.bf16.mxu1 %v6508_v34 }
 0x6cc   :  { %2559 = vmatpush1.bf16.msra.mxu0 %v6046_v9  ;;  %v6529_v9 = vld [vmem:[#allocation5 + $0xf0] ss:$24 sps:$4 sm:$0xff]  }
 0x6cd   :  { %2560 = vmatprep.subr.bf16.mxu0 %v6049_v12  ;;  %2650 = vmatpush1.bf16.msra.mxu1 %v6513_v11  ;;  %v6532_v12 = vld [vmem:[#allocation5 + $0x124] ss:$24 sps:$4 sm:$0xff]  }
 0x6ce   :  { %2651 = vmatprep.subr.bf16.mxu1 %v6516_v15 }
 0x6d0   :  { %2561 = vmatpush1.bf16.msra.mxu0 %v6054_v7  ;;  %v6537_v7 = vld [vmem:[#allocation5 + $0x120] ss:$24 sps:$4 sm:$0xff]  }
 0x6d1   :  { %2562 = vmatprep.subr.bf16.mxu0 %v6057_v57  ;;  %2652 = vmatpush1.bf16.msra.mxu1 %v6521_v42  ;;  %v6540_v57 = vld [vmem:[#allocation5 + $0x154] ss:$24 sps:$4 sm:$0xff]  }
 0x6d2   :  { %2653 = vmatprep.subr.bf16.mxu1 %v6524_v55 }
 0x6d4   :  { %2563 = vmatpush1.bf16.msra.mxu0 %v6062_v33  ;;  %v6545_v33 = vld [vmem:[#allocation5 + $0x150] ss:$24 sps:$4 sm:$0xff]  }
 0x6d5   :  { %2564 = vmatprep.subr.bf16.mxu0 %v6065_v45  ;;  %2654 = vmatpush1.bf16.msra.mxu1 %v6529_v9  ;;  %v6548_v45 = vld [vmem:[#allocation5 + $0x184] ss:$24 sps:$4 sm:$0xff]  }
 0x6d6   :  { %2655 = vmatprep.subr.bf16.mxu1 %v6532_v12 }
 0x6d8   :  { %2565 = vmatpush1.bf16.msra.mxu0 %v6070_v59  ;;  %v6553_v59 = vld [vmem:[#allocation5 + $0x180] ss:$24 sps:$4 sm:$0xff]  }
 0x6d9   :  { %2566 = vmatprep.subr.bf16.mxu0 %v6073_v51  ;;  %2656 = vmatpush1.bf16.msra.mxu1 %v6537_v7  ;;  %v6556_v51 = vld [vmem:[#allocation5 + $0x1b4] ss:$24 sps:$4 sm:$0xff]  }
 0x6da   :  { %2657 = vmatprep.subr.bf16.mxu1 %v6540_v57 }
 0x6dc   :  { %2567 = vmatpush1.bf16.msra.mxu0 %v6078_v40  ;;  %v6561_v40 = vld [vmem:[#allocation5 + $0x1b0] ss:$24 sps:$4 sm:$0xff]  }
 0x6dd   :  { %2568 = vmatprep.subr.bf16.mxu0 %v6081_v3  ;;  %2658 = vmatpush1.bf16.msra.mxu1 %v6545_v33  ;;  %v6564_v3 = vld [vmem:[#allocation5 + $0x1e4] ss:$24 sps:$4 sm:$0xff]  }
 0x6de   :  { %2659 = vmatprep.subr.bf16.mxu1 %v6548_v45 }
 0x6e0   :  { %2569 = vmatpush1.bf16.msra.mxu0 %v6086_v22  ;;  %v6569_v22 = vld [vmem:[#allocation5 + $0x1e0] ss:$24 sps:$4 sm:$0xff]  }
 0x6e1   :  { %2570 = vmatprep.subr.bf16.mxu0 %v6089_v63  ;;  %2660 = vmatpush1.bf16.msra.mxu1 %v6553_v59  ;;  %v6572_v63 = vld [vmem:[#allocation5 + $0x214] ss:$24 sps:$4 sm:$0xff]  }
 0x6e2   :  { %2661 = vmatprep.subr.bf16.mxu1 %v6556_v51 }
 0x6e4   :  { %2571 = vmatpush1.bf16.msra.mxu0 %v6094_v1  ;;  %v6577_v1 = vld [vmem:[#allocation5 + $0x210] ss:$24 sps:$4 sm:$0xff]  }
 0x6e5   :  { %2572 = vmatprep.subr.bf16.mxu0 %v6097_v25  ;;  %2662 = vmatpush1.bf16.msra.mxu1 %v6561_v40  ;;  %v6580_v25 = vld [vmem:[#allocation5 + $0x244] ss:$24 sps:$4 sm:$0xff]  }
 0x6e6   :  { %2663 = vmatprep.subr.bf16.mxu1 %v6564_v3 }
 0x6e8   :  { %2573 = vmatpush1.bf16.msra.mxu0 %v7304_v27  ;;  %v6585_v27 = vld [vmem:[#allocation5 + $0x240] ss:$24 sps:$4 sm:$0xff]  }
 0x6e9   :  { %2574 = vmatprep.subr.bf16.mxu0 %v7305_v17  ;;  %2664 = vmatpush1.bf16.msra.mxu1 %v6569_v22  ;;  %v6588_v17 = vld [vmem:[#allocation5 + $0x274] ss:$24 sps:$4 sm:$0xff]  }
 0x6ea   :  { %2665 = vmatprep.subr.bf16.mxu1 %v6572_v63 }
 0x6ec   :  { %2575 = vmatpush1.bf16.msra.mxu0 %v7308_v49 }
 0x6ed   :  { %2576 = vmatprep.subr.bf16.mxu0 %v7309_v29  ;;  %2666 = vmatpush1.bf16.msra.mxu1 %v6577_v1 }
 0x6ee   :  { %2667 = vmatprep.subr.bf16.mxu1 %v6580_v25 }
 0x6f0   :  { %2577 = vmatpush1.bf16.msra.mxu0 %v7312_v53 }
 0x6f1   :  { %2578 = vmatprep.subr.bf16.mxu0 %v7313_v50  ;;  %2668 = vmatpush1.bf16.msra.mxu1 %v6585_v27 }
 0x6f2   :  { %2669 = vmatprep.subr.bf16.mxu1 %v6588_v17 }
 0x6f4   :  { %2579 = vmatpush1.bf16.msra.mxu0 %v7316_v13 }
 0x6f5   :  { %2580 = vmatprep.subr.bf16.mxu0 %v7317_v26  ;;  %2670 = vmatpush1.bf16.msra.mxu1 %v6593_v32 }
 0x6f6   :  { %2671 = vmatprep.subr.bf16.mxu1 %v6596_v6 }
 0x6f8   :  { %2581 = vmatpush1.bf16.msra.mxu0 %v7320_v38 }
 0x6f9   :  { %2582 = vmatprep.subr.bf16.mxu0 %v7321_v2  ;;  %2672 = vmatpush1.bf16.msra.mxu1 %v6601_v48 }
 0x6fa   :  { %2673 = vmatprep.subr.bf16.mxu1 %v6604_v24 }
 0x6fc   :  { %2583 = vmatpush1.bf16.msra.mxu0 %v7324_v41 }
 0x6fd   :  { %2684 = vmatprep.subr.bf16.mxu0 %v6608_v43  ;;  %2674 = vmatpush1.bf16.msra.mxu1 %v6611_v14 }
 0x6fe   :  { %2725 = vmatprep.subr.bf16.mxu1 %v6614_v30 }
 0x6ff   :  { %2585 = vmatmul.mubr.bf16.vlgmr.msra.gmra.mrb[64].mxu0 %v6487_v36  ;;  %v7379_v36 = vld [vmem:[#allocation45_spill] sm:$0xff] }
 0x700   :  { %2685 = vmatpush1.bf16.msra.mxu0 %v6618_v23 }
 0x701   :  { %2686 = vmatprep.subr.bf16.mxu0 %v6621_v60  ;;  %v7398_v60 = vld [vmem:[#allocation61_spill] sm:$0xff] }
 0x704   :  { %2687 = vmatpush1.bf16.msra.mxu0 %v6624_v4  ;;  %v7397_v4 = vld [vmem:[#allocation60_spill] sm:$0xff] }
 0x705   :  { %2688 = vmatprep.subr.bf16.mxu0 %v6627_v35 }
 0x708   :  { %2689 = vmatpush1.bf16.msra.mxu0 %v6630_v19  ;;  %v7396_v19 = vld [vmem:[#allocation59_spill] sm:$0xff] }
 0x709   :  { %2690 = vmatprep.subr.bf16.mxu0 %v6633_v52  ;;  %v7395_v52 = vld [vmem:[#allocation58_spill] sm:$0xff] }
 0x70c   :  { %2691 = vmatpush1.bf16.msra.mxu0 %v6636_v61  ;;  %v7382_v61 = vld [vmem:[#allocation87_spill] sm:$0xff] }
 0x70d   :  { %2692 = vmatprep.subr.bf16.mxu0 %v6639_v10  ;;  %v7380_v10 = vld [vmem:[#allocation85_spill] sm:$0xff] }
 0x710   :  { %2693 = vmatpush1.bf16.msra.mxu0 %v6642_v56  ;;  %v7381_v56 = vld [vmem:[#allocation86_spill] sm:$0xff] }
 0x711   :  { %2694 = vmatprep.subr.bf16.mxu0 %v6645_v44  ;;  %v7383_v44 = vld [vmem:[#allocation88_spill] sm:$0xff] }
 0x714   :  { %2695 = vmatpush1.bf16.msra.mxu0 %v7338_v58  ;;  %v7384_v58 = vld [vmem:[#allocation89_spill] sm:$0xff] }
 0x715   :  { %2696 = vmatprep.subr.bf16.mxu0 %v7339_v28  ;;  %v7385_v28 = vld [vmem:[#allocation90_spill] sm:$0xff] }
 0x718   :  { %2697 = vmatpush1.bf16.msra.mxu0 %v7340_v31  ;;  %v7386_v31 = vld [vmem:[#allocation91_spill] sm:$0xff] }
 0x719   :  { %2698 = vmatprep.subr.bf16.mxu0 %v7341_v39  ;;  %v7387_v39 = vld [vmem:[#allocation92_spill] sm:$0xff] }
 0x71c   :  { %2699 = vmatpush1.bf16.msra.mxu0 %v7342_v54  ;;  %v7388_v54 = vld [vmem:[#allocation93_spill] sm:$0xff] }
 0x71d   :  { %2700 = vmatprep.subr.bf16.mxu0 %v7343_v21  ;;  %v7389_v21 = vld [vmem:[#allocation94_spill] sm:$0xff] }
 0x720   :  { %2701 = vmatpush1.bf16.msra.mxu0 %v7379_v36  ;;  %v7390_v36 = vld [vmem:[#allocation95_spill] sm:$0xff] }
 0x721   :  { %2702 = vmatprep.subr.bf16.mxu0 %v7380_v10  ;;  %v7391_v10 = vld [vmem:[#allocation96_spill] sm:$0xff] }
 0x724   :  { %2703 = vmatpush1.bf16.msra.mxu0 %v7381_v56  ;;  %v7392_v56 = vld [vmem:[#allocation100_spill] sm:$0xff] }
 0x725   :  { %2704 = vmatprep.subr.bf16.mxu0 %v7382_v61  ;;  %v7393_v61 = vld [vmem:[#allocation101_spill] sm:$0xff] }
 0x728   :  { %2705 = vmatpush1.bf16.msra.mxu0 %v7383_v44  ;;  %v7394_v44 = vld [vmem:[#allocation102_spill] sm:$0xff] }
 0x729   :  { %2706 = vmatprep.subr.bf16.mxu0 %v7384_v58 }
 0x72c   :  { %2707 = vmatpush1.bf16.msra.mxu0 %v7385_v28 }
 0x72d   :  { %2708 = vmatprep.subr.bf16.mxu0 %v7386_v31 }
 0x730   :  { %2709 = vmatpush1.bf16.msra.mxu0 %v7387_v39 }
 0x731   :  { %2710 = vmatprep.subr.bf16.mxu0 %v7388_v54 }
 0x734   :  { %2711 = vmatpush1.bf16.msra.mxu0 %v7389_v21 }
 0x735   :  { %2712 = vmatprep.subr.bf16.mxu0 %v7390_v36 }
 0x738   :  { %2713 = vmatpush1.bf16.msra.mxu0 %v7391_v10 }
 0x739   :  { %2714 = vmatprep.subr.bf16.mxu0 %v7392_v56 }
 0x73c   :  { %2715 = vmatpush1.bf16.msra.mxu0 %v7393_v61 }
 0x73d   :  { %2816 = vmatprep.subr.bf16.mxu0 %v7394_v44 }
 0x792   :  { %v2504_v58 = vpop.f32.mrb[60].mxu0  ;;  %v2545_v28 = vpop.f32.mrb[48].mxu1 }
 0x793   :  { %v2593_v31 = vadd.f32 %v2504_v58, %v7395_v52  ;;  %v2607_v39 = vadd.f32 %v2545_v28, %v7396_v19  ;;  %v2506_v35 = vpop.f32.mrb[61].mxu0  ;;  %v2547_v54 = vpop.f32.mrb[49].mxu1 }
 0x794   :  { %v2594_v21 = vadd.f32 %v2506_v35, %v7397_v4  ;;  %v2608_v36 = vadd.f32 %v2547_v54, %v7398_v60  ;;  %v2508_v23 = vpop.f32.mrb[62].mxu0  ;;  %v2549_v10 = vpop.f32.mrb[50].mxu1 }
 0x795   :  { %v2509_v30 = vpop.f32.mrb[63].mxu0  ;;  %v2550_v56 = vpop.f32.mrb[51].mxu1  ;;  %v4050_v14 = vmul.f32 -1.442695, %v2593_v31  ;;  %v4052_v41 = vmul.f32 -1.442695, %v2607_v39 }
 0x796   :  { %v4051_v61 = vmul.f32 -1.442695, %v2594_v21  ;;  %v4053_v52 = vmul.f32 -1.442695, %v2608_v36  ;;  %v7400_v10 = vld [vmem:[#allocation77_spill] sm:$0xff] }
 0x797   :  { %4742 = vpow2.f32 %v4050_v14 }
 0x798   :  { %4744 = vpow2.f32 %v4051_v61 }
 0x799   :  { %4746 = vpow2.f32 %v4052_v41 }
 0x79a   :  { %4748 = vpow2.f32 %v4053_v52 }
 0x7a1   :  { %v4743_v44 = vpop.eup %4742 }
 0x7a2   :  { %v4745_v43 = vpop.eup %4744  ;;  %v2601_v58 = vadd.f32 1.0, %v4743_v44 }
 0x7a3   :  { %v2602_v19 = vadd.f32 1.0, %v4745_v43  ;;  %v4747_v4 = vpop.eup %4746  ;;  %v7399_v43 = vld [vmem:[#allocation76_spill] sm:$0xff] }
 0x7a4   :  { %4750 = vrcp.f32 %v2601_v58  ;;  %v4749_v23 = vpop.eup %4748  ;;  %v2615_v21 = vadd.f32 1.0, %v4747_v4 }
 0x7a5   :  { %4752 = vrcp.f32 %v2602_v19  ;;  %v2616_v36 = vadd.f32 1.0, %v4749_v23 }
 0x7ae   :  { %v4751_v56 = vpop.eup %4750 }
 0x7af   :  { %v4753_v28 = vpop.eup %4752 }
 0x7d2   :  { %v2586_v60 = vpop.f32.mrb[64].mxu0 }
 0x7d3   :  { %v2621_v30 = vadd.f32 %v2586_v60, %v5796_v0  ;;  %v2588_v35 = vpop.f32.mrb[65].mxu0 }
 0x7d4   :  { %v2622_v14 = vadd.f32 %v2588_v35, %v5799_v16  ;;  %v2590_v61 = vpop.f32.mrb[66].mxu0 }
 0x7d5   :  { %v2623_v31 = vmul.f32 %v4751_v56, %v2621_v30  ;;  %v2591_v39 = vpop.f32.mrb[67].mxu0 }
 0x7d6   :  { %v2624_v54 = vmul.f32 %v4753_v28, %v2622_v14  ;;  %v6706_v39 = vld [vmem:[#allocation5 + $0x70] ss:$24 sps:$4 sm:$0xff]  }
 0x7d7   :  { %v2625_v41 = vadd.f32 %v2623_v31, %v7399_v43  ;;  %v6701_v31 = vld [vmem:[#allocation5 + $0x74] ss:$24 sps:$4 sm:$0xff]  }
 0x7d8   :  { %v2626_v44 = vadd.f32 %v2624_v54, %v7400_v10  ;;  %v6709_v54 = vld [vmem:[#allocation5 + $0xa4] ss:$24 sps:$4 sm:$0xff]   ;;  %v4976_v10 = vld [vmem:[#allocation5 + $0x218] ss:$24 sps:$4 sm:$0xff]  }
 0x7d9   :  { %4754 = vtanh.f32 %v2625_v41  ;;  %v4973_v43 = vld [vmem:[#allocation5 + $0x1ec] ss:$24 sps:$4 sm:$0xff]   ;;  %v4974_v41 = vld [vmem:[#allocation5 + $0x1e8] ss:$24 sps:$4 sm:$0xff]  }
 0x7da   :  { %4756 = vtanh.f32 %v2626_v44  ;;  %v4977_v44 = vld [vmem:[#allocation5 + $0x24c] ss:$24 sps:$4 sm:$0xff]  }
 0x7db   :  { %4758 = vrcp.f32 %v2615_v21  ;;  %v4972_v21 = vld [vmem:[#allocation5 + $0x1b8] ss:$24 sps:$4 sm:$0xff]  }
 0x7dc   :  { %4760 = vrcp.f32 %v2616_v36  ;;  %v4975_v36 = vld [vmem:[#allocation5 + $0x21c] ss:$24 sps:$4 sm:$0xff]  }
 0x7e3   :  { %v4755_v52 = vpop.eup %4754 }
 0x7e4   :  { %v4757_v58 = vpop.eup %4756  ;;  %v2629_v19 = vsub.f32 %v6479_v20, %v4755_v52  ;;  %v6693_v20 = vld [vmem:[#allocation5 + $0x44] ss:$24 sps:$4 sm:$0xff]  }
 0x7e5   :  { %v4759_v60 = vpop.eup %4758  ;;  %v2630_v35 = vsub.f32 %v6481_v47, %v4757_v58  ;;  %v6698_v47 = vld [vmem:[#allocation5 + $0x40] ss:$24 sps:$4 sm:$0xff]  }
 0x7e6   :  { %v4761_v30 = vpop.eup %4760  ;;  %v2631_v56 = vmul.f32 %v4759_v60, %v2629_v19  ;;  %v4980_v19 = vld [vmem:[#allocation5 + $0x278] ss:$24 sps:$4 sm:$0xff]   ;;  %v4981_v60 = vld [vmem:[#allocation5 + $0x2ac] ss:$24 sps:$4 sm:$0xff]  }
 0x7e7   :  { %v2632_v14 = vmul.f32 %v4761_v30, %v2630_v35  ;;  %v4982_v35 = vld [vmem:[#allocation5 + $0x2a8] ss:$24 sps:$4 sm:$0xff]   ;;  %v7415_v30 = vld [vmem:[#allocation100_spill] sm:$0xff] }
 0x7e8   :  { %v6680_v4 = vadd.f32 %v4755_v52, %v2631_v56  ;;  %v4978_v52 = vld [vmem:[#allocation5 + $0x248] ss:$24 sps:$4 sm:$0xff]  }
 0x7e9   :  { %v6682_v61 = vadd.f32 %v4757_v58, %v2632_v14  ;;  %v4979_v58 = vld [vmem:[#allocation5 + $0x27c] ss:$24 sps:$4 sm:$0xff]   ;;  %v7416_v56 = vld [vmem:[#allocation101_spill] sm:$0xff] }
 0x7ea   :  { %v6688_v28 = vpack.c.bf16 %v6680_v4, %v6680_v4 }
 0x7eb   :  { %v2642_v23 = vpack.c.bf16 %v6682_v61, %v6682_v61 }
 0x7ed   :  { %2675 = vmatprep.mubr.bf16.mxu1 %v2642_v23  ;;  %2716 = vmatprep.mubr.bf16.mxu0 %v2642_v23 }
 0x7ee   :  { %2676 = vmatmul.mubr.bf16.vlgmr.msra.gmra.mrb[52].mxu1 %v6688_v28  ;;  %2717 = vmatmul.mubr.bf16.vlgmr.msra.gmra.mrb[68].mxu0 %v6688_v28 }
 0x7ef   :  { %2726 = vmatpush1.bf16.msra.mxu1 %v6491_v18  ;;  %2757 = vmatprep.mubr.bf16.mxu1 %v2642_v23 }
 0x7f0   :  { %2727 = vmatprep.subr.bf16.mxu1 %v6693_v20  ;;  %2817 = vmatpush1.bf16.msra.mxu0 %v6225_v62  ;;  %v6714_v62 = vld [vmem:[#allocation5 + $0xa0] ss:$24 sps:$4 sm:$0xff]  }
 0x7f1   :  { %2818 = vmatprep.subr.bf16.mxu0 %v6228_v37  ;;  %v6717_v37 = vld [vmem:[#allocation5 + $0xd4] ss:$24 sps:$4 sm:$0xff]  }
 0x7f3   :  { %2728 = vmatpush1.bf16.msra.mxu1 %v6698_v47 }
 0x7f4   :  { %2729 = vmatprep.subr.bf16.mxu1 %v6701_v31  ;;  %2819 = vmatpush1.bf16.msra.mxu0 %v6233_v46  ;;  %v6722_v46 = vld [vmem:[#allocation5 + $0xd0] ss:$24 sps:$4 sm:$0xff]  }
 0x7f5   :  { %2820 = vmatprep.subr.bf16.mxu0 %v6500_v5  ;;  %v6725_v5 = vld [vmem:[#allocation5 + $0x104] ss:$24 sps:$4 sm:$0xff]  }
 0x7f7   :  { %2730 = vmatpush1.bf16.msra.mxu1 %v6706_v39 }
 0x7f8   :  { %2731 = vmatprep.subr.bf16.mxu1 %v6709_v54  ;;  %2821 = vmatpush1.bf16.msra.mxu0 %v6505_v8  ;;  %v6730_v8 = vld [vmem:[#allocation5 + $0x100] ss:$24 sps:$4 sm:$0xff]  }
 0x7f9   :  { %2822 = vmatprep.subr.bf16.mxu0 %v6508_v34  ;;  %v6733_v34 = vld [vmem:[#allocation5 + $0x134] ss:$24 sps:$4 sm:$0xff]  }
 0x7fb   :  { %2732 = vmatpush1.bf16.msra.mxu1 %v6714_v62 }
 0x7fc   :  { %2733 = vmatprep.subr.bf16.mxu1 %v6717_v37  ;;  %2823 = vmatpush1.bf16.msra.mxu0 %v6513_v11  ;;  %v6738_v11 = vld [vmem:[#allocation5 + $0x130] ss:$24 sps:$4 sm:$0xff]  }
 0x7fd   :  { %2824 = vmatprep.subr.bf16.mxu0 %v6516_v15  ;;  %v6741_v15 = vld [vmem:[#allocation5 + $0x164] ss:$24 sps:$4 sm:$0xff]  }
 0x7ff   :  { %2734 = vmatpush1.bf16.msra.mxu1 %v6722_v46 }
 0x800   :  { %2735 = vmatprep.subr.bf16.mxu1 %v6725_v5  ;;  %2825 = vmatpush1.bf16.msra.mxu0 %v6521_v42  ;;  %v6746_v42 = vld [vmem:[#allocation5 + $0x160] ss:$24 sps:$4 sm:$0xff]  }
 0x801   :  { %2826 = vmatprep.subr.bf16.mxu0 %v6524_v55  ;;  %v6749_v55 = vld [vmem:[#allocation5 + $0x194] ss:$24 sps:$4 sm:$0xff]  }
 0x803   :  { %2736 = vmatpush1.bf16.msra.mxu1 %v6730_v8 }
 0x804   :  { %2737 = vmatprep.subr.bf16.mxu1 %v6733_v34  ;;  %2827 = vmatpush1.bf16.msra.mxu0 %v6529_v9  ;;  %v6754_v9 = vld [vmem:[#allocation5 + $0x190] ss:$24 sps:$4 sm:$0xff]  }
 0x805   :  { %2828 = vmatprep.subr.bf16.mxu0 %v6532_v12  ;;  %v6757_v12 = vld [vmem:[#allocation5 + $0x1c4] ss:$24 sps:$4 sm:$0xff]  }
 0x807   :  { %2738 = vmatpush1.bf16.msra.mxu1 %v6738_v11 }
 0x808   :  { %2739 = vmatprep.subr.bf16.mxu1 %v6741_v15  ;;  %2829 = vmatpush1.bf16.msra.mxu0 %v6537_v7  ;;  %v6762_v7 = vld [vmem:[#allocation5 + $0x1c0] ss:$24 sps:$4 sm:$0xff]  }
 0x809   :  { %2830 = vmatprep.subr.bf16.mxu0 %v6540_v57  ;;  %v6765_v57 = vld [vmem:[#allocation5 + $0x1f4] ss:$24 sps:$4 sm:$0xff]  }
 0x80b   :  { %2740 = vmatpush1.bf16.msra.mxu1 %v6746_v42 }
 0x80c   :  { %2741 = vmatprep.subr.bf16.mxu1 %v6749_v55  ;;  %2831 = vmatpush1.bf16.msra.mxu0 %v6545_v33  ;;  %v6770_v33 = vld [vmem:[#allocation5 + $0x1f0] ss:$24 sps:$4 sm:$0xff]  }
 0x80d   :  { %2832 = vmatprep.subr.bf16.mxu0 %v6548_v45  ;;  %v6773_v45 = vld [vmem:[#allocation5 + $0x224] ss:$24 sps:$4 sm:$0xff]  }
 0x80f   :  { %2742 = vmatpush1.bf16.msra.mxu1 %v6754_v9 }
 0x810   :  { %2743 = vmatprep.subr.bf16.mxu1 %v6757_v12  ;;  %2833 = vmatpush1.bf16.msra.mxu0 %v6553_v59  ;;  %v7409_v59 = vld [vmem:[#allocation83_spill] sm:$0xff] }
 0x811   :  { %2834 = vmatprep.subr.bf16.mxu0 %v6556_v51  ;;  %v7410_v51 = vld [vmem:[#allocation84_spill] sm:$0xff] }
 0x813   :  { %2744 = vmatpush1.bf16.msra.mxu1 %v6762_v7 }
 0x814   :  { %2745 = vmatprep.subr.bf16.mxu1 %v6765_v57  ;;  %2835 = vmatpush1.bf16.msra.mxu0 %v6561_v40  ;;  %v7411_v40 = vld [vmem:[#allocation17_spill] sm:$0xff] }
 0x815   :  { %2836 = vmatprep.subr.bf16.mxu0 %v6564_v3  ;;  %v7412_v3 = vld [vmem:[#allocation18_spill] sm:$0xff] }
 0x817   :  { %2746 = vmatpush1.bf16.msra.mxu1 %v6770_v33 }
 0x818   :  { %2747 = vmatprep.subr.bf16.mxu1 %v6773_v45  ;;  %2837 = vmatpush1.bf16.msra.mxu0 %v6569_v22  ;;  %v7413_v22 = vld [vmem:[#allocation46_spill] sm:$0xff] }
 0x819   :  { %2838 = vmatprep.subr.bf16.mxu0 %v6572_v63  ;;  %v7414_v63 = vld [vmem:[#allocation47_spill] sm:$0xff] }
 0x81b   :  { %2748 = vmatpush1.bf16.msra.mxu1 %v7308_v49  ;;  %v7401_v49 = vld [vmem:[#allocation99_spill] sm:$0xff] }
 0x81c   :  { %2749 = vmatprep.subr.bf16.mxu1 %v7309_v29  ;;  %2839 = vmatpush1.bf16.msra.mxu0 %v6577_v1  ;;  %v7402_v29 = vld [vmem:[#allocation50_spill] sm:$0xff]  ;;  %v4964_v1 = vld [vmem:[#allocation5 + $0xf8] ss:$24 sps:$4 sm:$0xff]  }
 0x81d   :  { %2840 = vmatprep.subr.bf16.mxu0 %v6580_v25  ;;  %v4965_v25 = vld [vmem:[#allocation5 + $0x12c] ss:$24 sps:$4 sm:$0xff]  }
 0x81f   :  { %2750 = vmatpush1.bf16.msra.mxu1 %v7312_v53  ;;  %v7403_v53 = vld [vmem:[#allocation51_spill] sm:$0xff] }
 0x820   :  { %2751 = vmatprep.subr.bf16.mxu1 %v7313_v50  ;;  %2841 = vmatpush1.bf16.msra.mxu0 %v6585_v27  ;;  %v7404_v50 = vld [vmem:[#allocation52_spill] sm:$0xff]  ;;  %v4966_v27 = vld [vmem:[#allocation5 + $0x128] ss:$24 sps:$4 sm:$0xff]  }
 0x821   :  { %2842 = vmatprep.subr.bf16.mxu0 %v6588_v17  ;;  %v4967_v17 = vld [vmem:[#allocation5 + $0x15c] ss:$24 sps:$4 sm:$0xff]  }
 0x823   :  { %2752 = vmatpush1.bf16.msra.mxu1 %v7316_v13  ;;  %v7405_v13 = vld [vmem:[#allocation53_spill] sm:$0xff] }
 0x824   :  { %2753 = vmatprep.subr.bf16.mxu1 %v7317_v26  ;;  %2843 = vmatpush1.bf16.msra.mxu0 %v6593_v32  ;;  %v7406_v26 = vld [vmem:[#allocation72_spill] sm:$0xff] }
 0x825   :  { %2844 = vmatprep.subr.bf16.mxu0 %v6596_v6  ;;  %v4968_v32 = vld [vmem:[#allocation5 + $0x158] ss:$24 sps:$4 sm:$0xff]   ;;  %v4969_v6 = vld [vmem:[#allocation5 + $0x18c] ss:$24 sps:$4 sm:$0xff]  }
 0x827   :  { %2754 = vmatpush1.bf16.msra.mxu1 %v7320_v38  ;;  %v7407_v38 = vld [vmem:[#allocation73_spill] sm:$0xff] }
 0x828   :  { %2755 = vmatprep.subr.bf16.mxu1 %v7321_v2  ;;  %2845 = vmatpush1.bf16.msra.mxu0 %v6601_v48  ;;  %v7408_v2 = vld [vmem:[#allocation16_spill] sm:$0xff]  ;;  %v4970_v48 = vld [vmem:[#allocation5 + $0x188] ss:$24 sps:$4 sm:$0xff]  }
 0x829   :  { %2846 = vmatprep.subr.bf16.mxu0 %v6604_v24  ;;  %v4971_v24 = vld [vmem:[#allocation5 + $0x1bc] ss:$24 sps:$4 sm:$0xff]  }
 0x82b   :  { %2756 = vmatpush1.bf16.msra.mxu1 %v7401_v49 }
 0x82c   :  { %2857 = vmatprep.subr.bf16.mxu1 %v7402_v29  ;;  %2847 = vmatpush1.bf16.msra.mxu0 %v7403_v53  ;;  %v7418_v29 = vld [vmem:[#allocation63_spill] sm:$0xff] }
 0x82d   :  { %2898 = vmatprep.subr.bf16.mxu0 %v7404_v50 }
 0x82e   :  { %2758 = vmatmul.mubr.bf16.vlgmr.msra.gmra.mrb[56].mxu1 %v6688_v28  ;;  %v7417_v28 = vld [vmem:[#allocation62_spill] sm:$0xff] }
 0x82f   :  { %2858 = vmatpush1.bf16.msra.mxu1 %v7405_v13 }
 0x830   :  { %2859 = vmatprep.subr.bf16.mxu1 %v7406_v26  ;;  %v7419_v26 = vld [vmem:[#allocation64_spill] sm:$0xff] }
 0x833   :  { %2860 = vmatpush1.bf16.msra.mxu1 %v7407_v38 }
 0x834   :  { %2861 = vmatprep.subr.bf16.mxu1 %v7408_v2  ;;  %v7420_v2 = vld [vmem:[#allocation65_spill] sm:$0xff] }
 0x837   :  { %2862 = vmatpush1.bf16.msra.mxu1 %v7409_v59 }
 0x838   :  { %2863 = vmatprep.subr.bf16.mxu1 %v7410_v51 }
 0x83b   :  { %2864 = vmatpush1.bf16.msra.mxu1 %v7411_v40 }
 0x83c   :  { %2865 = vmatprep.subr.bf16.mxu1 %v7412_v3 }
 0x83f   :  { %2866 = vmatpush1.bf16.msra.mxu1 %v7413_v22 }
 0x840   :  { %2867 = vmatprep.subr.bf16.mxu1 %v7414_v63 }
 0x843   :  { %2868 = vmatpush1.bf16.msra.mxu1 %v4964_v1 }
 0x844   :  { %2869 = vmatprep.subr.bf16.mxu1 %v4965_v25 }
 0x847   :  { %2870 = vmatpush1.bf16.msra.mxu1 %v4966_v27 }
 0x848   :  { %2871 = vmatprep.subr.bf16.mxu1 %v4967_v17 }
 0x84b   :  { %2872 = vmatpush1.bf16.msra.mxu1 %v4968_v32 }
 0x84c   :  { %2873 = vmatprep.subr.bf16.mxu1 %v4969_v6 }
 0x84f   :  { %2874 = vmatpush1.bf16.msra.mxu1 %v4970_v48 }
 0x850   :  { %2875 = vmatprep.subr.bf16.mxu1 %v4971_v24 }
 0x853   :  { %2876 = vmatpush1.bf16.msra.mxu1 %v4972_v21 }
 0x854   :  { %2877 = vmatprep.subr.bf16.mxu1 %v4973_v43 }
 0x857   :  { %2878 = vmatpush1.bf16.msra.mxu1 %v4974_v41 }
 0x858   :  { %2879 = vmatprep.subr.bf16.mxu1 %v4975_v36 }
 0x85b   :  { %2880 = vmatpush1.bf16.msra.mxu1 %v4976_v10 }
 0x85c   :  { %2881 = vmatprep.subr.bf16.mxu1 %v4977_v44 }
 0x85f   :  { %2882 = vmatpush1.bf16.msra.mxu1 %v4978_v52 }
 0x860   :  { %2883 = vmatprep.subr.bf16.mxu1 %v4979_v58 }
 0x863   :  { %2884 = vmatpush1.bf16.msra.mxu1 %v4980_v19 }
 0x864   :  { %2885 = vmatprep.subr.bf16.mxu1 %v4981_v60 }
 0x867   :  { %2886 = vmatpush1.bf16.msra.mxu1 %v4982_v35 }
 0x868   :  { %2887 = vmatprep.subr.bf16.mxu1 %v7415_v30 }
 0x86b   :  { %2888 = vmatpush1.bf16.msra.mxu1 %v7416_v56  ;;  %v7421_v56 = vld [vmem:[#allocation78_spill] sm:$0xff] }
 0x8c1   :  { %v2677_v14 = vpop.f32.mrb[52].mxu1  ;;  %v2718_v23 = vpop.f32.mrb[68].mxu0 }
 0x8c2   :  { %v2766_v49 = vadd.f32 %v2677_v14, %v7417_v28  ;;  %v2780_v53 = vadd.f32 %v2718_v23, %v7418_v29  ;;  %v2679_v50 = vpop.f32.mrb[53].mxu1  ;;  %v2720_v13 = vpop.f32.mrb[69].mxu0  ;;  %v7422_v28 = vld [vmem:[#allocation79_spill] sm:$0xff] }
 0x8c3   :  { %v2767_v38 = vadd.f32 %v2679_v50, %v7419_v26  ;;  %v2781_v59 = vadd.f32 %v2720_v13, %v7420_v2  ;;  %v2681_v51 = vpop.f32.mrb[54].mxu1  ;;  %v2722_v40 = vpop.f32.mrb[70].mxu0 }
 0x8c4   :  { %v2682_v3 = vpop.f32.mrb[55].mxu1  ;;  %v2723_v22 = vpop.f32.mrb[71].mxu0  ;;  %v4054_v63 = vmul.f32 -1.442695, %v2766_v49  ;;  %v4056_v17 = vmul.f32 -1.442695, %v2780_v53 }
 0x8c5   :  { %v4055_v1 = vmul.f32 -1.442695, %v2767_v38  ;;  %v4057_v32 = vmul.f32 -1.442695, %v2781_v59 }
 0x8c6   :  { %4762 = vpow2.f32 %v4054_v63  ;;  %v4535_v63 = vld [vmem:[#allocation7 + $0x68] ss:$16 sps:$4 sm:$0xff]  }
 0x8c7   :  { %4764 = vpow2.f32 %v4055_v1  ;;  %v4540_v1 = vld [vmem:[#allocation7 + $0x84] ss:$16 sps:$4 sm:$0xff]  }
 0x8c8   :  { %4766 = vpow2.f32 %v4056_v17  ;;  %v4541_v17 = vld [vmem:[#allocation7 + $0x88] ss:$16 sps:$4 sm:$0xff]  }
 0x8c9   :  { %4768 = vpow2.f32 %v4057_v32  ;;  %v4546_v32 = vld [vmem:[#allocation7 + $0xa4] ss:$16 sps:$4 sm:$0xff]  }
 0x8d0   :  { %v4763_v25 = vpop.eup %4762 }
 0x8d1   :  { %v4765_v27 = vpop.eup %4764  ;;  %v2774_v6 = vadd.f32 1.0, %v4763_v25  ;;  %v4543_v25 = vld [vmem:[#allocation7 + $0x8c] ss:$16 sps:$4 sm:$0xff]  }
 0x8d2   :  { %v2775_v48 = vadd.f32 1.0, %v4765_v27  ;;  %v4767_v24 = vpop.eup %4766  ;;  %v4538_v27 = vld [vmem:[#allocation7 + $0x80] ss:$16 sps:$4 sm:$0xff]  }
 0x8d3   :  { %4770 = vrcp.f32 %v2774_v6  ;;  %v4769_v43 = vpop.eup %4768  ;;  %v2788_v30 = vadd.f32 1.0, %v4767_v24  ;;  %v4549_v6 = vld [vmem:[#allocation7 + $0xac] ss:$16 sps:$4 sm:$0xff]   ;;  %v4547_v24 = vld [vmem:[#allocation7 + $0xa8] ss:$16 sps:$4 sm:$0xff]  }
 0x8d4   :  { %4772 = vrcp.f32 %v2775_v48  ;;  %v2789_v23 = vadd.f32 1.0, %v4769_v43  ;;  %v4544_v48 = vld [vmem:[#allocation7 + $0xa0] ss:$16 sps:$4 sm:$0xff]   ;;  %v4555_v43 = vld [vmem:[#allocation7 + $0xcc] ss:$16 sps:$4 sm:$0xff]  }
 0x8dd   :  { %v4771_v10 = vpop.eup %4770 }
 0x8de   :  { %v4773_v58 = vpop.eup %4772 }
 0x901   :  { %v2759_v21 = vpop.f32.mrb[56].mxu1 }
 0x902   :  { %v2794_v41 = vadd.f32 %v2759_v21, %v5796_v0  ;;  %v2761_v36 = vpop.f32.mrb[57].mxu1  ;;  %v4552_v21 = vld [vmem:[#allocation7 + $0xc4] ss:$16 sps:$4 sm:$0xff]  }
 0x903   :  { %v2795_v44 = vadd.f32 %v2761_v36, %v5799_v16  ;;  %v2763_v52 = vpop.f32.mrb[58].mxu1  ;;  %v4553_v36 = vld [vmem:[#allocation7 + $0xc8] ss:$16 sps:$4 sm:$0xff]  }
 0x904   :  { %v2796_v19 = vmul.f32 %v4771_v10, %v2794_v41  ;;  %v2764_v60 = vpop.f32.mrb[59].mxu1  ;;  %v4550_v41 = vld [vmem:[#allocation7 + $0xc0] ss:$16 sps:$4 sm:$0xff]   ;;  %v4558_v10 = vld [vmem:[#allocation7 + $0xe4] ss:$16 sps:$4 sm:$0xff]  }
 0x905   :  { %v2797_v35 = vmul.f32 %v4773_v58, %v2795_v44  ;;  %v4561_v44 = vld [vmem:[#allocation7 + $0xec] ss:$16 sps:$4 sm:$0xff]   ;;  %v4556_v52 = vld [vmem:[#allocation7 + $0xe0] ss:$16 sps:$4 sm:$0xff]   ;;  %v4559_v58 = vld [vmem:[#allocation7 + $0xe8] ss:$16 sps:$4 sm:$0xff]  }
 0x906   :  { %v2798_v14 = vadd.f32 %v2796_v19, %v7421_v56  ;;  %v4564_v19 = vld [vmem:[#allocation7 + $0x104] ss:$16 sps:$4 sm:$0xff]   ;;  %v4567_v60 = vld [vmem:[#allocation7 + $0x10c] ss:$16 sps:$4 sm:$0xff]  }
 0x907   :  { %v2799_v49 = vadd.f32 %v2797_v35, %v7422_v28  ;;  %v4562_v35 = vld [vmem:[#allocation7 + $0x100] ss:$16 sps:$4 sm:$0xff]   ;;  %v4570_v56 = vld [vmem:[#allocation7 + $0x124] ss:$16 sps:$4 sm:$0xff]   ;;  %v4571_v28 = vld [vmem:[#allocation7 + $0x128] ss:$16 sps:$4 sm:$0xff]  }
 0x908   :  { %4774 = vtanh.f32 %v2798_v14  ;;  %v4573_v14 = vld [vmem:[#allocation7 + $0x12c] ss:$16 sps:$4 sm:$0xff]  }
 0x909   :  { %4776 = vtanh.f32 %v2799_v49  ;;  %v4576_v49 = vld [vmem:[#allocation7 + $0x144] ss:$16 sps:$4 sm:$0xff]  }
 0x90a   :  { %4778 = vrcp.f32 %v2788_v30  ;;  %v4565_v30 = vld [vmem:[#allocation7 + $0x108] ss:$16 sps:$4 sm:$0xff]  }
 0x90b   :  { %4780 = vrcp.f32 %v2789_v23  ;;  %v4568_v23 = vld [vmem:[#allocation7 + $0x120] ss:$16 sps:$4 sm:$0xff]  }
 0x912   :  { %v4775_v29 = vpop.eup %4774 }
 0x913   :  { %v4777_v53 = vpop.eup %4776  ;;  %v2802_v50 = vsub.f32 %v6680_v4, %v4775_v29  ;;  %v4984_v4 = vld [vmem:[#allocation5 + $0x254] ss:$24 sps:$4 sm:$0xff]  }
 0x914   :  { %v4779_v13 = vpop.eup %4778  ;;  %v2803_v26 = vsub.f32 %v6682_v61, %v4777_v53  ;;  %v4985_v61 = vld [vmem:[#allocation5 + $0x250] ss:$24 sps:$4 sm:$0xff]  }
 0x915   :  { %v4781_v38 = vpop.eup %4780  ;;  %v2804_v2 = vmul.f32 %v4779_v13, %v2802_v50  ;;  %v4577_v50 = vld [vmem:[#allocation7 + $0x148] ss:$16 sps:$4 sm:$0xff]   ;;  %v4582_v13 = vld [vmem:[#allocation7 + $0x164] ss:$16 sps:$4 sm:$0xff]  }
 0x916   :  { %v2805_v59 = vmul.f32 %v4781_v38, %v2803_v26  ;;  %v4585_v26 = vld [vmem:[#allocation7 + $0x16c] ss:$16 sps:$4 sm:$0xff]   ;;  %v4580_v38 = vld [vmem:[#allocation7 + $0x160] ss:$16 sps:$4 sm:$0xff]  }
 0x917   :  { %v6821_v51 = vadd.f32 %v4775_v29, %v2804_v2  ;;  %v4579_v29 = vld [vmem:[#allocation7 + $0x14c] ss:$16 sps:$4 sm:$0xff]   ;;  %v4583_v2 = vld [vmem:[#allocation7 + $0x168] ss:$16 sps:$4 sm:$0xff]  }
 0x918   :  { %v6823_v40 = vadd.f32 %v4777_v53, %v2805_v59  ;;  %v4574_v53 = vld [vmem:[#allocation7 + $0x140] ss:$16 sps:$4 sm:$0xff]   ;;  %v4588_v59 = vld [vmem:[#allocation7 + $0x184] ss:$16 sps:$4 sm:$0xff]  }
 0x919   :  { %v2814_v22 = vpack.c.bf16 %v6821_v51, %v6821_v51 }
 0x91a   :  { %v2815_v3 = vpack.c.bf16 %v6823_v40, %v6823_v40 }
 0x91c   :  { %2848 = vmatprep.mubr.bf16.mxu0 %v2815_v3  ;;  %2889 = vmatprep.mubr.bf16.mxu1 %v2815_v3 }
 0x91d   :  { %2849 = vmatmul.mubr.bf16.vlgmr.msra.gmra.mrb[72].mxu0 %v2814_v22  ;;  %2890 = vmatmul.mubr.bf16.vlgmr.msra.gmra.mrb[60].mxu1 %v2814_v22 }
 0x91e   :  { %2899 = vmatpush1.bf16.msra.mxu0 %v6491_v18  ;;  %2930 = vmatprep.mubr.bf16.mxu0 %v2815_v3  ;;  %v4983_v18 = vld [vmem:[#allocation5 + $0x220] ss:$24 sps:$4 sm:$0xff]   ;;  %v4591_v3 = vld [vmem:[#allocation7 + $0x18c] ss:$16 sps:$4 sm:$0xff]  }
 0x91f   :  { %2900 = vmatprep.subr.bf16.mxu0 %v6693_v20  ;;  %v4986_v20 = vld [vmem:[#allocation5 + $0x284] ss:$24 sps:$4 sm:$0xff]  }
 0x922   :  { %2901 = vmatpush1.bf16.msra.mxu0 %v6698_v47  ;;  %v4987_v47 = vld [vmem:[#allocation5 + $0x280] ss:$24 sps:$4 sm:$0xff]  }
 0x923   :  { %2902 = vmatprep.subr.bf16.mxu0 %v6701_v31  ;;  %v4988_v31 = vld [vmem:[#allocation5 + $0x2b4] ss:$24 sps:$4 sm:$0xff]  }
 0x926   :  { %2903 = vmatpush1.bf16.msra.mxu0 %v6706_v39  ;;  %v4989_v39 = vld [vmem:[#allocation5 + $0x2b0] ss:$24 sps:$4 sm:$0xff]  }
 0x927   :  { %2904 = vmatprep.subr.bf16.mxu0 %v6709_v54  ;;  %v4990_v54 = vld [vmem:[#allocation5 + $0x2e4] ss:$24 sps:$4 sm:$0xff]  }
 0x92a   :  { %2905 = vmatpush1.bf16.msra.mxu0 %v6714_v62  ;;  %v4991_v62 = vld [vmem:[#allocation5 + $0x2e0] ss:$24 sps:$4 sm:$0xff]  }
 0x92b   :  { %2906 = vmatprep.subr.bf16.mxu0 %v6717_v37  ;;  %v4514_v37 = vld [vmem:[#allocation7] ss:$16 sps:$4 sm:$0xff]  }
 0x92e   :  { %2907 = vmatpush1.bf16.msra.mxu0 %v6722_v46  ;;  %v4516_v46 = vld [vmem:[#allocation7 + $0x4] ss:$16 sps:$4 sm:$0xff]  }
 0x92f   :  { %2908 = vmatprep.subr.bf16.mxu0 %v6725_v5  ;;  %v4517_v5 = vld [vmem:[#allocation7 + $0x8] ss:$16 sps:$4 sm:$0xff]   ;;  %3389 = vmatprep.subr.bf16.mxu1 %v4516_v46  ;;  %v4609_v46 = vld [vmem:[#allocation7 + $0x1ec] ss:$16 sps:$4 sm:$0xff]  }
 0x930   :  { %3390 = vmatpush1.bf16.msra.mxu1 %v4514_v37  ;;  %v4606_v37 = vld [vmem:[#allocation7 + $0x1e4] ss:$16 sps:$4 sm:$0xff]  }
 0x932   :  { %2909 = vmatpush1.bf16.msra.mxu0 %v6730_v8  ;;  %v4519_v8 = vld [vmem:[#allocation7 + $0xc] ss:$16 sps:$4 sm:$0xff]  }
 0x933   :  { %2910 = vmatprep.subr.bf16.mxu0 %v6733_v34  ;;  %v4522_v34 = vld [vmem:[#allocation7 + $0x24] ss:$16 sps:$4 sm:$0xff]  }
 0x934   :  { %3391 = vmatprep.subr.bf16.mxu1 %v4522_v34  ;;  %v4610_v34 = vld [vmem:[#allocation8 + $0x40] sm:$0xff]  }
 0x936   :  { %2911 = vmatpush1.bf16.msra.mxu0 %v6738_v11  ;;  %v4525_v11 = vld [vmem:[#allocation7 + $0x2c] ss:$16 sps:$4 sm:$0xff]  }
 0x937   :  { %2912 = vmatprep.subr.bf16.mxu0 %v6741_v15  ;;  %v4520_v15 = vld [vmem:[#allocation7 + $0x20] ss:$16 sps:$4 sm:$0xff]  }
 0x938   :  { %3392 = vmatpush1.bf16.msra.mxu1 %v4520_v15 }
 0x93a   :  { %2913 = vmatpush1.bf16.msra.mxu0 %v6746_v42  ;;  %v4523_v42 = vld [vmem:[#allocation7 + $0x28] ss:$16 sps:$4 sm:$0xff]  }
 0x93b   :  { %2914 = vmatprep.subr.bf16.mxu0 %v6749_v55  ;;  %v4528_v55 = vld [vmem:[#allocation7 + $0x44] ss:$16 sps:$4 sm:$0xff]  }
 0x93c   :  { %3393 = vmatprep.subr.bf16.mxu1 %v4528_v55 }
 0x93e   :  { %2915 = vmatpush1.bf16.msra.mxu0 %v6754_v9  ;;  %v4531_v9 = vld [vmem:[#allocation7 + $0x4c] ss:$16 sps:$4 sm:$0xff]  }
 0x93f   :  { %2916 = vmatprep.subr.bf16.mxu0 %v6757_v12  ;;  %v4526_v12 = vld [vmem:[#allocation7 + $0x40] ss:$16 sps:$4 sm:$0xff]  }
 0x940   :  { %3394 = vmatpush1.bf16.msra.mxu1 %v4526_v12 }
 0x942   :  { %2917 = vmatpush1.bf16.msra.mxu0 %v6762_v7  ;;  %v4529_v7 = vld [vmem:[#allocation7 + $0x48] ss:$16 sps:$4 sm:$0xff]  }
 0x943   :  { %2918 = vmatprep.subr.bf16.mxu0 %v6765_v57  ;;  %v4534_v57 = vld [vmem:[#allocation7 + $0x64] ss:$16 sps:$4 sm:$0xff]  }
 0x944   :  { %3395 = vmatprep.subr.bf16.mxu1 %v4534_v57 }
 0x946   :  { %2919 = vmatpush1.bf16.msra.mxu0 %v6770_v33  ;;  %v4537_v33 = vld [vmem:[#allocation7 + $0x6c] ss:$16 sps:$4 sm:$0xff]  }
 0x947   :  { %2920 = vmatprep.subr.bf16.mxu0 %v6773_v45  ;;  %v4532_v45 = vld [vmem:[#allocation7 + $0x60] ss:$16 sps:$4 sm:$0xff]  }
 0x948   :  { %3396 = vmatpush1.bf16.msra.mxu1 %v4532_v45 }
 0x949   :  { %3397 = vmatprep.subr.bf16.mxu1 %v4540_v1 }
 0x94a   :  { %2921 = vmatpush1.bf16.msra.mxu0 %v4983_v18  ;;  %v4589_v18 = vld [vmem:[#allocation7 + $0x188] ss:$16 sps:$4 sm:$0xff]  }
 0x94b   :  { %2922 = vmatprep.subr.bf16.mxu0 %v4984_v4  ;;  %v4594_v4 = vld [vmem:[#allocation7 + $0x1a4] ss:$16 sps:$4 sm:$0xff]  }
 0x94c   :  { %3398 = vmatpush1.bf16.msra.mxu1 %v4538_v27 }
 0x94d   :  { %3399 = vmatprep.subr.bf16.mxu1 %v4546_v32 }
 0x94e   :  { %2923 = vmatpush1.bf16.msra.mxu0 %v4985_v61  ;;  %v4597_v61 = vld [vmem:[#allocation7 + $0x1ac] ss:$16 sps:$4 sm:$0xff]  }
 0x94f   :  { %2924 = vmatprep.subr.bf16.mxu0 %v4986_v20  ;;  %v4592_v20 = vld [vmem:[#allocation7 + $0x1a0] ss:$16 sps:$4 sm:$0xff]  }
 0x950   :  { %3400 = vmatpush1.bf16.msra.mxu1 %v4544_v48 }
 0x951   :  { %3401 = vmatprep.subr.bf16.mxu1 %v4552_v21 }
 0x952   :  { %2925 = vmatpush1.bf16.msra.mxu0 %v4987_v47  ;;  %v4595_v47 = vld [vmem:[#allocation7 + $0x1a8] ss:$16 sps:$4 sm:$0xff]  }
 0x953   :  { %2926 = vmatprep.subr.bf16.mxu0 %v4988_v31  ;;  %v4600_v31 = vld [vmem:[#allocation7 + $0x1c4] ss:$16 sps:$4 sm:$0xff]  }
 0x954   :  { %3402 = vmatpush1.bf16.msra.mxu1 %v4550_v41 }
 0x955   :  { %3403 = vmatprep.subr.bf16.mxu1 %v4558_v10 }
 0x956   :  { %2927 = vmatpush1.bf16.msra.mxu0 %v4989_v39  ;;  %v4603_v39 = vld [vmem:[#allocation7 + $0x1cc] ss:$16 sps:$4 sm:$0xff]  }
 0x957   :  { %2928 = vmatprep.subr.bf16.mxu0 %v4990_v54  ;;  %v4598_v54 = vld [vmem:[#allocation7 + $0x1c0] ss:$16 sps:$4 sm:$0xff]  }
 0x958   :  { %3404 = vmatpush1.bf16.msra.mxu1 %v4556_v52 }
 0x959   :  { %3405 = vmatprep.subr.bf16.mxu1 %v4564_v19 }
 0x95a   :  { %2929 = vmatpush1.bf16.msra.mxu0 %v4991_v62  ;;  %v4601_v62 = vld [vmem:[#allocation7 + $0x1c8] ss:$16 sps:$4 sm:$0xff]  }
 0x95b   :  { %3430 = vmatprep.subr.bf16.mxu0 %v4519_v8  ;;  %v4607_v8 = vld [vmem:[#allocation7 + $0x1e8] ss:$16 sps:$4 sm:$0xff]  }
 0x95c   :  { %3406 = vmatpush1.bf16.msra.mxu1 %v4562_v35 }
 0x95d   :  { %2931 = vmatmul.mubr.bf16.vlgmr.msra.gmra.mrb[76].mxu0 %v2814_v22  ;;  %3407 = vmatprep.subr.bf16.mxu1 %v4570_v56  ;;  %v4586_v22 = vld [vmem:[#allocation7 + $0x180] ss:$16 sps:$4 sm:$0xff]  }
 0x95e   :  { %3431 = vmatpush1.bf16.msra.mxu0 %v4517_v5  ;;  %v4604_v5 = vld [vmem:[#allocation7 + $0x1e0] ss:$16 sps:$4 sm:$0xff]  }
 0x95f   :  { %3432 = vmatprep.subr.bf16.mxu0 %v4525_v11 }
 0x960   :  { %3408 = vmatpush1.bf16.msra.mxu1 %v4568_v23 }
 0x961   :  { %3409 = vmatprep.subr.bf16.mxu1 %v4576_v49 }
 0x962   :  { %3433 = vmatpush1.bf16.msra.mxu0 %v4523_v42  ;;  %v7423_v42 = vld [vmem:[#allocation66_spill] sm:$0xff] }
 0x963   :  { %3434 = vmatprep.subr.bf16.mxu0 %v4531_v9  ;;  %v7424_v9 = vld [vmem:[#allocation67_spill] sm:$0xff] }
 0x964   :  { %3410 = vmatpush1.bf16.msra.mxu1 %v4574_v53  ;;  %v7427_v53 = vld [vmem:[#allocation80_spill] sm:$0xff] }
 0x965   :  { %3411 = vmatprep.subr.bf16.mxu1 %v4582_v13 }
 0x966   :  { %3435 = vmatpush1.bf16.msra.mxu0 %v4529_v7 }
 0x967   :  { %3436 = vmatprep.subr.bf16.mxu0 %v4537_v33  ;;  %v7425_v33 = vld [vmem:[#allocation68_spill] sm:$0xff] }
 0x968   :  { %3412 = vmatpush1.bf16.msra.mxu1 %v4580_v38 }
 0x969   :  { %3413 = vmatprep.subr.bf16.mxu1 %v4588_v59 }
 0x96a   :  { %3437 = vmatpush1.bf16.msra.mxu0 %v4535_v63  ;;  %v7426_v63 = vld [vmem:[#allocation69_spill] sm:$0xff] }
 0x96b   :  { %3438 = vmatprep.subr.bf16.mxu0 %v4543_v25 }
 0x96c   :  { %3414 = vmatpush1.bf16.msra.mxu1 %v4586_v22 }
 0x96d   :  { %3415 = vmatprep.subr.bf16.mxu1 %v4594_v4 }
 0x96e   :  { %3439 = vmatpush1.bf16.msra.mxu0 %v4541_v17 }
 0x96f   :  { %3440 = vmatprep.subr.bf16.mxu0 %v4549_v6 }
 0x970   :  { %3416 = vmatpush1.bf16.msra.mxu1 %v4592_v20 }
 0x971   :  { %3417 = vmatprep.subr.bf16.mxu1 %v4600_v31  ;;  %v4611_v31 = vld [vmem:[#allocation8] sm:$0xff]  }
 0x972   :  { %3441 = vmatpush1.bf16.msra.mxu0 %v4547_v24 }
 0x973   :  { %3442 = vmatprep.subr.bf16.mxu0 %v4555_v43 }
 0x974   :  { %3418 = vmatpush1.bf16.msra.mxu1 %v4598_v54  ;;  %v4612_v54 = vld [vmem:[#allocation8 + $0x48] sm:$0xff]  }
 0x975   :  { %3419 = vmatprep.subr.bf16.mxu1 %v4606_v37  ;;  %v4615_v37 = vld [vmem:[#allocation8 + $0x10] sm:$0xff]  }
 0x976   :  { %3443 = vmatpush1.bf16.msra.mxu0 %v4553_v36 }
 0x977   :  { %3444 = vmatprep.subr.bf16.mxu0 %v4561_v44 }
 0x978   :  { %3420 = vmatpush1.bf16.msra.mxu1 %v4604_v5  ;;  %v4618_v5 = vld [vmem:[#allocation8 + $0x60] sm:$0xff]  }
 0x979   :  { %4159 = vmatprep.subr.bf16.mxu1 %v4610_v34  ;;  %v4620_v34 = vld [vmem:[#allocation8 + $0x68] sm:$0xff]  }
 0x97a   :  { %3445 = vmatpush1.bf16.msra.mxu0 %v4559_v58 }
 0x97b   :  { %3446 = vmatprep.subr.bf16.mxu0 %v4567_v60 }
 0x97e   :  { %3447 = vmatpush1.bf16.msra.mxu0 %v4565_v30 }
 0x97f   :  { %3448 = vmatprep.subr.bf16.mxu0 %v4573_v14 }
 0x982   :  { %3449 = vmatpush1.bf16.msra.mxu0 %v4571_v28 }
 0x983   :  { %3450 = vmatprep.subr.bf16.mxu0 %v4579_v29 }
 0x986   :  { %3451 = vmatpush1.bf16.msra.mxu0 %v4577_v50 }
 0x987   :  { %3452 = vmatprep.subr.bf16.mxu0 %v4585_v26  ;;  %v7428_v26 = vld [vmem:[#allocation81_spill] sm:$0xff] }
 0x98a   :  { %3453 = vmatpush1.bf16.msra.mxu0 %v4583_v2 }
 0x98b   :  { %3454 = vmatprep.subr.bf16.mxu0 %v4591_v3 }
 0x98e   :  { %3455 = vmatpush1.bf16.msra.mxu0 %v4589_v18 }
 0x98f   :  { %3456 = vmatprep.subr.bf16.mxu0 %v4597_v61 }
 0x992   :  { %3457 = vmatpush1.bf16.msra.mxu0 %v4595_v47 }
 0x993   :  { %3458 = vmatprep.subr.bf16.mxu0 %v4603_v39 }
 0x996   :  { %3459 = vmatpush1.bf16.msra.mxu0 %v4601_v62  ;;  %v4613_v62 = vld [vmem:[#allocation8 + $0x8] sm:$0xff]  }
 0x997   :  { %3460 = vmatprep.subr.bf16.mxu0 %v4609_v46  ;;  %v4617_v46 = vld [vmem:[#allocation8 + $0x18] sm:$0xff]  }
 0x99a   :  { %3461 = vmatpush1.bf16.msra.mxu0 %v4607_v8  ;;  %v4619_v8 = vld [vmem:[#allocation8 + $0x20] sm:$0xff]  }
 0x9f0   :  { %v2850_v11 = vpop.f32.mrb[72].mxu0  ;;  %v2891_v15 = vpop.f32.mrb[60].mxu1 }
 0x9f1   :  { %v2939_v55 = vadd.f32 %v2850_v11, %v7423_v42  ;;  %v2953_v12 = vadd.f32 %v2891_v15, %v7424_v9  ;;  %v2852_v7 = vpop.f32.mrb[73].mxu0  ;;  %v2893_v57 = vpop.f32.mrb[61].mxu1  ;;  %v4621_v11 = vld [vmem:[#allocation8 + $0x28] sm:$0xff]   ;;  %v4622_v15 = vld [vmem:[#allocation8 + $0x70] sm:$0xff]   ;;  %v4625_v9 = vld [vmem:[#allocation8 + $0x38] sm:$0xff]  }
 0x9f2   :  { %v2940_v45 = vadd.f32 %v2852_v7, %v7425_v33  ;;  %v2954_v1 = vadd.f32 %v2893_v57, %v7426_v63  ;;  %v2854_v25 = vpop.f32.mrb[74].mxu0  ;;  %v2895_v27 = vpop.f32.mrb[62].mxu1  ;;  %v4623_v42 = vld [vmem:[#allocation8 + $0x30] sm:$0xff]   ;;  %v3047_v7 = vld [vmem:[%s6882_s6] sm:$0xf]  ;;  %v7429_v57 = vld [vmem:[#allocation14_spill] sm:$0xff] }
 0x9f3   :  { %v2855_v17 = vpop.f32.mrb[75].mxu0  ;;  %v2896_v32 = vpop.f32.mrb[63].mxu1  ;;  %v4058_v6 = vmul.f32 -1.442695, %v2939_v55  ;;  %v4060_v43 = vmul.f32 -1.442695, %v2953_v12  ;;  %v3052_v33 = vrot.slane %v3047_v7, %v7429_v57 }
 0x9f4   :  { %v4059_v48 = vmul.f32 -1.442695, %v2940_v45  ;;  %v4061_v41 = vmul.f32 -1.442695, %v2954_v1  ;;  %v4624_v55 = vld [vmem:[#allocation8 + $0x78] sm:$0xff]   ;;  %v4626_v12 = vld [vmem:[#allocation8 + $0xc0] sm:$0xff]  }
 0x9f5   :  { %4782 = vpow2.f32 %v4058_v6  ;;  %v7430_v45 = vld [vmem:[#allocation15_spill] sm:$0xff]  ;;  %v7431_v1 = vld [vmem:[#allocation13_spill] sm:$0xff] }
 0x9f6   :  { %4784 = vpow2.f32 %v4059_v48  ;;  %v3056_v63 = vrot.slane %v3047_v7, %v7430_v45  ;;  %v7432_v25 = vsub.s32 3, %v7431_v1 }
 0x9f7   :  { %4786 = vpow2.f32 %v4060_v43 }
 0x9f8   :  { %4788 = vpow2.f32 %v4061_v41  ;;  %v3064_v27 = vrot.slane %v3047_v7, %v7432_v25 }
 0x9ff   :  { %v4783_v24 = vpop.eup %4782 }
 0xa00   :  { %v4785_v21 = vpop.eup %4784  ;;  %v2947_v36 = vadd.f32 1.0, %v4783_v24 }
 0xa01   :  { %v2948_v10 = vadd.f32 1.0, %v4785_v21  ;;  %v4787_v44 = vpop.eup %4786 }
 0xa02   :  { %4790 = vrcp.f32 %v2947_v36  ;;  %v4789_v58 = vpop.eup %4788  ;;  %v2961_v29 = vadd.f32 1.0, %v4787_v44 }
 0xa03   :  { %4792 = vrcp.f32 %v2948_v10  ;;  %v2962_v13 = vadd.f32 1.0, %v4789_v58 }
 0xa0c   :  { %v4791_v35 = vpop.eup %4790 }
 0xa0d   :  { %v4793_v14 = vpop.eup %4792 }
 0xa30   :  { %v2932_v52 = vpop.f32.mrb[76].mxu0 }
 0xa31   :  { %v2967_v19 = vadd.f32 %v2932_v52, %v5796_v0  ;;  %v2934_v60 = vpop.f32.mrb[77].mxu0 }
 0xa32   :  { %v2968_v30 = vadd.f32 %v2934_v60, %v5799_v16  ;;  %v2936_v56 = vpop.f32.mrb[78].mxu0 }
 0xa33   :  { %v2969_v23 = vmul.f32 %v4791_v35, %v2967_v19  ;;  %v2937_v28 = vpop.f32.mrb[79].mxu0  ;;  %v4627_v35 = vld [vmem:[#allocation8 + $0x80] sm:$0xff]   ;;  %v4628_v56 = vld [vmem:[#allocation8 + $0xc8] sm:$0xff]  }
 0xa34   :  { %v2970_v49 = vmul.f32 %v4793_v14, %v2968_v30  ;;  %v4630_v28 = vld [vmem:[#allocation8 + $0xd0] sm:$0xff]  }
 0xa35   :  { %v2971_v50 = vadd.f32 %v2969_v23, %v7427_v53  ;;  %v4629_v23 = vld [vmem:[#allocation8 + $0x88] sm:$0xff]   ;;  %v4633_v53 = vld [vmem:[#allocation8 + $0x98] sm:$0xff]  }
 0xa36   :  { %v2972_v38 = vadd.f32 %v2970_v49, %v7428_v26  ;;  %v4631_v49 = vld [vmem:[#allocation8 + $0x90] sm:$0xff]   ;;  %v4636_v26 = vld [vmem:[#allocation8 + $0xe8] sm:$0xff]  }
 0xa37   :  { %4794 = vtanh.f32 %v2971_v50  ;;  %v4634_v50 = vld [vmem:[#allocation8 + $0xe0] sm:$0xff]  }
 0xa38   :  { %4796 = vtanh.f32 %v2972_v38  ;;  %v4637_v38 = vld [vmem:[#allocation8 + $0xa8] sm:$0xff]  }
 0xa39   :  { %4798 = vrcp.f32 %v2961_v29  ;;  %v4632_v29 = vld [vmem:[#allocation8 + $0xd8] sm:$0xff]  }
 0xa3a   :  { %4800 = vrcp.f32 %v2962_v13  ;;  %v4635_v13 = vld [vmem:[#allocation8 + $0xa0] sm:$0xff]  }
 0xa41   :  { %v4795_v0 = vpop.eup %4794 }
 0xa42   :  { %v4797_v2 = vpop.eup %4796  ;;  %v2975_v59 = vsub.f32 %v6821_v51, %v4795_v0  ;;  %v4614_v51 = vld [vmem:[#allocation8 + $0x50] sm:$0xff]  }
 0xa43   :  { %v4799_v16 = vpop.eup %4798  ;;  %v2976_v3 = vsub.f32 %v6823_v40, %v4797_v2  ;;  %v4616_v40 = vld [vmem:[#allocation8 + $0x58] sm:$0xff]  }
 0xa44   :  { %v4801_v22 = vpop.eup %4800  ;;  %v2977_v18 = vmul.f32 %v4799_v16, %v2975_v59  ;;  %v4638_v59 = vld [vmem:[#allocation8 + $0xf0] sm:$0xff]  }
 0xa45   :  { %v2978_v4 = vmul.f32 %v4801_v22, %v2976_v3  ;;  %v4639_v16 = vld [vmem:[#allocation8 + $0xb0] sm:$0xff]   ;;  %v4640_v22 = vld [vmem:[#allocation8 + $0xf8] sm:$0xff]  }
 0xa46   :  { %v2979_v61 = vadd.f32 %v4795_v0, %v2977_v18  ;;  %v7433_v0 = vsub.s32 2, %v7431_v1  ;;  %v4641_v18 = vld [vmem:[#allocation8 + $0xb8] sm:$0xff]  }
 0xa47   :  { %v2980_v20 = vadd.f32 %v4797_v2, %v2978_v4 }
 0xa48   :  { %v2981_v39 = vpack.c.bf16 %v2979_v61, %v2979_v61  ;;  %v3060_v2 = vrot.slane %v3047_v7, %v7433_v0 }
 0xa49   :  { %v2982_v47 = vpack.c.bf16 %v2980_v20, %v2980_v20 }
 0xa4b   :  { %3421 = vmatprep.mubr.bf16.mxu1 %v2982_v47  ;;  %3462 = vmatprep.mubr.bf16.mxu0 %v2982_v47 }
 0xa4c   :  { %3422 = vmatmul.mubr.bf16.vlgmr.msra.gmra.mrb[64].mxu1 %v2981_v39  ;;  %3463 = vmatmul.mubr.bf16.vlgmr.msra.gmra.mrb[80].mxu0 %v2981_v39 }
 0xa4d   :  { %4160 = vmatpush3.bf16.msra.mxu1 %v4611_v31 }
 0xa4e   :  { %4161 = vmatprep.subr.bf16.mxu1 %v4612_v54 }
 0xa51   :  { %4162 = vmatpush3.bf16.msra.mxu1 %v4613_v62  ;;  %v4126_v62 = vld [vmem:[%s6884_s8] ss:$0 sm:$0xff] }
 0xa52   :  { %4163 = vmatprep.subr.bf16.mxu1 %v4614_v51 }
 0xa55   :  { %4164 = vmatpush3.bf16.msra.mxu1 %v4615_v37 }
 0xa56   :  { %4165 = vmatprep.subr.bf16.mxu1 %v4616_v40 }
 0xa59   :  { %4166 = vmatpush3.bf16.msra.mxu1 %v4617_v46 }
 0xa5a   :  { %4167 = vmatprep.subr.bf16.mxu1 %v4618_v5 }
 0xa5d   :  { %4168 = vmatpush3.bf16.msra.mxu1 %v4619_v8 }
 0xa5e   :  { %4169 = vmatprep.subr.bf16.mxu1 %v4620_v34 }
 0xa61   :  { %4170 = vmatpush3.bf16.msra.mxu1 %v4621_v11 }
 0xa62   :  { %4171 = vmatprep.subr.bf16.mxu1 %v4622_v15 }
 0xa65   :  { %4172 = vmatpush3.bf16.msra.mxu1 %v4623_v42 }
 0xa66   :  { %4173 = vmatprep.subr.bf16.mxu1 %v4624_v55 }
 0xa69   :  { %4174 = vmatpush3.bf16.msra.mxu1 %v4625_v9 }
 0xa6a   :  { %4181 = vmatprep.subr.bf16.mxu1 %v4626_v12 }
 0xb1f   :  { %v3423_v17 = vpop.f32.mrb[64].mxu1  ;;  %v3464_v32 = vpop.f32.mrb[80].mxu0 }
 0xb20   :  { %v3424_v6 = vadd.f32 %v3423_v17, %v3052_v33  ;;  %v3425_v48 = vpop.f32.mrb[65].mxu1  ;;  %v3466_v24 = vpop.f32.mrb[81].mxu0  ;;  %v3465_v3 = vadd.f32 %v3464_v32, %v3060_v2 }
 0xb21   :  { %v3426_v21 = vadd.f32 %v3425_v48, %v3056_v63  ;;  %v3467_v43 = vadd.f32 %v3466_v24, %v3064_v27  ;;  %v3427_v41 = vpop.f32.mrb[66].mxu1  ;;  %v3468_v36 = vpop.f32.mrb[82].mxu0 }
 0xb22   :  { %v3471_v10 = vmax.f32 %v3424_v6, 0.0  ;;  %v3428_v44 = vpop.f32.mrb[67].mxu1  ;;  %v3469_v52 = vpop.f32.mrb[83].mxu0  ;;  %v3473_v4 = vmax.f32 %v3465_v3, 0.0 }
 0xb23   :  { %v3472_v58 = vmax.f32 %v3426_v21, 0.0  ;;  %v3474_v19 = vmax.f32 %v3467_v43, 0.0 }
 0xb24   :  { %v3475_v30 = vpack.c.bf16 %v3471_v10, %v3471_v10  ;;  %v3477_v61 = vpack.c.bf16 %v3473_v4, %v3473_v4 }
 0xb25   :  { %v3476_v60 = vpack.c.bf16 %v3472_v58, %v3472_v58  ;;  %v3478_v14 = vpack.c.bf16 %v3474_v19, %v3474_v19 }
 0xb27   :  { %3774 = vmatprep.mubr.bf16.mxu1 %v3476_v60 }
 0xb28   :  { %3775 = vmatmul.mubr.bf16.vlgmr.msra.gmra.mrb[68].mxu1 %v3475_v30 }
 0xb29   :  { %4182 = vmatpush3.bf16.msra.mxu1 %v4627_v35  ;;  %3814 = vmatprep.mubr.bf16.mxu1 %v3478_v14 }
 0xb2a   :  { %4183 = vmatprep.subr.bf16.mxu1 %v4628_v56 }
 0xb2d   :  { %4184 = vmatpush3.bf16.msra.mxu1 %v4629_v23 }
 0xb2e   :  { %4185 = vmatprep.subr.bf16.mxu1 %v4630_v28 }
 0xb31   :  { %4186 = vmatpush3.bf16.msra.mxu1 %v4631_v49 }
 0xb32   :  { %4187 = vmatprep.subr.bf16.mxu1 %v4632_v29 }
 0xb35   :  { %4188 = vmatpush3.bf16.msra.mxu1 %v4633_v53 }
 0xb36   :  { %4189 = vmatprep.subr.bf16.mxu1 %v4634_v50 }
 0xb39   :  { %4190 = vmatpush3.bf16.msra.mxu1 %v4635_v13 }
 0xb3a   :  { %4191 = vmatprep.subr.bf16.mxu1 %v4636_v26 }
 0xb3d   :  { %4192 = vmatpush3.bf16.msra.mxu1 %v4637_v38 }
 0xb3e   :  { %4193 = vmatprep.subr.bf16.mxu1 %v4638_v59 }
 0xb41   :  { %4194 = vmatpush3.bf16.msra.mxu1 %v4639_v16 }
 0xb42   :  { %4195 = vmatprep.subr.bf16.mxu1 %v4640_v22 }
 0xb45   :  { %4196 = vmatpush3.bf16.msra.mxu1 %v4641_v18 }
 0xb48   :  { %3815 = vmatmul.mubr.bf16.vlgmr.msra.gmra.mrb[72].mxu1 %v3477_v61 }
 0xbfb   :  { %v4175_v20 = vpop.f32.mrb[68].mxu1 }
 0xbfc   :  { %v4176_v47 = vpop.f32.mrb[69].mxu1 }
 0xbfd   :  { %v4177_v31 = vadd.f32 %v4176_v47, %v4175_v20  ;;  %v4178_v39 = vpop.f32.mrb[70].mxu1 }
 0xbfe   :  { %v4179_v54 = vpop.f32.mrb[71].mxu1 }
 0xbff   :  { %v3777_v40 = vadd.f32 %v4177_v31, %v4126_v62 }
 0xc1b   :  { %v4197_v51 = vpop.f32.mrb[72].mxu1 }
 0xc1c   :  { %v4198_v37 = vpop.f32.mrb[73].mxu1 }
 0xc1d   :  { %v4199_v46 = vadd.f32 %v4198_v37, %v4197_v51  ;;  %v4200_v5 = vpop.f32.mrb[74].mxu1 }
 0xc1e   :  { %v4201_v8 = vpop.f32.mrb[75].mxu1 }
 0xc1f   :  { %v3817_v34 = vadd.f32 %v4199_v46, %v3777_v40 }
 0xc21   :  { %3822 = vst [vmem:[%s6885_s9] sm:$0xff] %v3817_v34 }
 0xc22   :  { %3827 = vsyncpa [#allocation4], 1 }
 0xc23   :  { %3828 = vsyncpa [#allocation6], 1 }
 0xc24   :  { %3829 = vsyncpa [#allocation9], 1 }

</bundles_post_ra>
